<compile_context>
chip_gen: v7x
topology: tpu7x:2x2x1
jax: 0.10.0
libtpu: 0.0.40
codegen_flags: <defaults>
</compile_context>

<pallas_src>
import math
import functools

import jax
import jax.numpy as jnp
from jax import lax
from jax.experimental import pallas as pl
from jax.experimental.pallas import tpu as pltpu

# MXU operand dtype (f32 accumulation everywhere).
_COMPUTE_DTYPE = jnp.bfloat16

# Explicit VMEM limit (~80% of physical VMEM; falls back to 64 MiB).
try:
    _VMEM_LIMIT = int(pltpu.get_tpu_info().vmem_capacity_bytes * 4 // 5)
except Exception:  # pragma: no cover - non-TPU / API drift fallback
    _VMEM_LIMIT = 64 * 1024 * 1024


def _pick_row_tile(m, target=512):
    """Largest row tile <= target that divides m and is sublane aligned."""
    if m <= target:
        return m
    for t in range(target, 7, -1):
        if m % t == 0 and t % 8 == 0:
            return t
    # TODO(synk): pad m to a multiple of 8 + masked tail tile instead of a
    # whole-M fallback block (only matters for awkward b*n shapes).
    return m


def _layernorm(x, gamma):
    mean = jnp.mean(x, axis=-1, keepdims=True)
    xc = x - mean
    var = jnp.mean(xc * xc, axis=-1, keepdims=True)
    return xc * lax.rsqrt(var + 1e-5) * gamma


def _params(dims, vmem=True):
    return pltpu.CompilerParams(
        dimension_semantics=dims,
        vmem_limit_bytes=_VMEM_LIMIT if vmem else None)


# ----------------------- embed prologue (fused adds) ------------------------

def _embed_sum_kernel(*refs):
    # refs = (code_ref, audio_ref_0..A-1, pos_ref, o_ref)
    code_ref = refs[0]
    audio_refs = refs[1:-2]
    pos_ref = refs[-2]
    o_ref = refs[-1]
    acc = code_ref[0]
    for a_ref in audio_refs:
        acc = acc + a_ref[0]
    o_ref[0] = acc + pos_ref[...]


def embed_prologue(code, audio_list, pos):
    b, n, d = code.shape
    tn = _pick_row_tile(n, 512)
    specs = [pl.BlockSpec((1, tn, d), lambda bi, ni: (bi, ni, 0))
             for _ in range(1 + len(audio_list))]
    specs.append(pl.BlockSpec((tn, d), lambda bi, ni: (ni, 0)))
    return pl.pallas_call(
        _embed_sum_kernel,
        out_shape=jax.ShapeDtypeStruct((b, n, d), jnp.float32),
        grid=(b, n // tn),
        in_specs=specs,
        out_specs=pl.BlockSpec((1, tn, d), lambda bi, ni: (bi, ni, 0)),
        compiler_params=_params(("parallel", "parallel")),
    )(code, *audio_list, pos)


# ----------------------- fused pre-LN + QKV projection ----------------------

def _ln_qkv_kernel(x_ref, g_ref, w_ref, q_ref, k_ref, v_ref):
    xn = _layernorm(x_ref[...], g_ref[...]).astype(w_ref.dtype)
    qkv = jnp.dot(xn, w_ref[...], preferred_element_type=jnp.float32)
    inner = q_ref.shape[-1]
    q_ref[...] = qkv[:, :inner].astype(q_ref.dtype)
    k_ref[...] = qkv[:, inner:2 * inner].astype(k_ref.dtype)
    v_ref[...] = qkv[:, 2 * inner:].astype(v_ref.dtype)


def ln_qkv(x2d, gamma, wqkv):
    m, d = x2d.shape
    inner = wqkv.shape[1] // 3
    tm = _pick_row_tile(m)
    spec = pl.BlockSpec((tm, inner), lambda i: (i, 0))
    ce = pl.CostEstimate(
        flops=2 * m * d * 3 * inner,
        transcendentals=m,
        bytes_accessed=4 * m * d + 2 * d * 3 * inner + 2 * 3 * m * inner)
    return pl.pallas_call(
        _ln_qkv_kernel,
        out_shape=(jax.ShapeDtypeStruct((m, inner), _COMPUTE_DTYPE),) * 3,
        grid=(m // tm,),
        in_specs=[pl.BlockSpec((tm, d), lambda i: (i, 0)),
                  pl.BlockSpec((1, d), lambda i: (0, 0)),
                  pl.BlockSpec((d, 3 * inner), lambda i: (0, 0))],
        out_specs=(spec, spec, spec),
        compiler_params=_params(("parallel",)),
        cost_estimate=ce,
    )(x2d, gamma.reshape(1, d), wqkv)


# -------- flash-style attention (online softmax) + out-proj + residual ------

def _flash_attn_kernel(q_ref, k_ref, v_ref, nk_ref, nv_ref, qs_ref, ks_ref,
                       wo_ref, res_ref, o_ref,
                       qn_sc, m_sc, l_sc, acc_sc,
                       *, heads, dim_head, scale):
    kv_i = pl.program_id(2)
    last_kv = pl.num_programs(2) - 1

    qs = qs_ref[...]                       # (1, dim_head) f32
    ks = ks_ref[...]

    def l2norm(t):
        return t / jnp.maximum(
            jnp.sqrt(jnp.sum(t * t, axis=-1, keepdims=True)), 1e-12)

    # --- init: fold scale into Q once per q-tile; null-KV is the "first block"
    @pl.when(kv_i == 0)
    def _init():
        q = q_ref[0].astype(jnp.float32)   # (tq, inner)
        tq = q.shape[0]
        for h in range(heads):
            s = h * dim_head
            qh = l2norm(q[:, s:s + dim_head]) * (qs * scale)
            qn_sc[:, s:s + dim_head] = qh.astype(_COMPUTE_DTYPE)
            nk = l2norm(nk_ref[h:h + 1, :]) * ks                 # (1, dh)
            sim_null = jnp.sum(qh * nk, axis=-1, keepdims=True)  # (tq, 1) VPU
            m_sc[:, h:h + 1] = sim_null
            l_sc[:, h:h + 1] = jnp.ones_like(sim_null)           # exp(0) = 1
            acc_sc[:, s:s + dim_head] = jnp.broadcast_to(
                nv_ref[h:h + 1, :], (tq, dim_head))

    # --- online softmax update over this KV block ---
    k = k_ref[0].astype(jnp.float32)       # (tk, inner)
    v = v_ref[0]                           # (tk, inner) bf16
    dn = (((1,), (1,)), ((), ()))          # contract last dims, no batch dims
    # TODO(synk): process heads in 128-lane-aligned pairs to avoid half-vreg
    # slices when dim_head == 64 (layout micro-opt, not done here).
    for h in range(heads):
        s = h * dim_head
        qh = qn_sc[:, s:s + dim_head]                            # bf16, scaled
        kh = (l2norm(k[:, s:s + dim_head]) * ks).astype(_COMPUTE_DTYPE)
        vh = v[:, s:s + dim_head]
        sim = lax.dot_general(qh, kh, dn,
                              preferred_element_type=jnp.float32)  # (tq, tk)
        m_prev = m_sc[:, h:h + 1]
        m_new = jnp.maximum(m_prev, jnp.max(sim, axis=-1, keepdims=True))
        alpha = jnp.exp(m_prev - m_new)
        p = jnp.exp(sim - m_new)
        l_sc[:, h:h + 1] = alpha * l_sc[:, h:h + 1] + jnp.sum(
            p, axis=-1, keepdims=True)
        acc_sc[:, s:s + dim_head] = (
            alpha * acc_sc[:, s:s + dim_head]
            + jnp.dot(p.astype(_COMPUTE_DTYPE), vh,
                      preferred_element_type=jnp.float32))
        m_sc[:, h:h + 1] = m_new

    # --- epilogue: normalize, out-projection, residual add ---
    @pl.when(kv_i == last_kv)
    def _finish():
        outs = []
        for h in range(heads):
            s = h * dim_head
            inv = pl.reciprocal(l_sc[:, h:h + 1], approx=True)
            outs.append(acc_sc[:, s:s + dim_head] * inv)
        attn = jnp.concatenate(outs, axis=-1).astype(wo_ref.dtype)
        o_ref[0] = res_ref[0] + jnp.dot(attn, wo_ref[...],
                                        preferred_element_type=jnp.float32)


def attention_block(q, k, v, null_k, null_v, q_scale, k_scale, wo, res,
                    *, heads, dim_head, scale):
    b, n, inner = q.shape
    dim = wo.shape[1]
    tq = _pick_row_tile(n, 256)
    tk = _pick_row_tile(n, 512)
    kern = functools.partial(_flash_attn_kernel, heads=heads,
                             dim_head=dim_head, scale=scale)
    ce = pl.CostEstimate(
        flops=4 * b * n * n * inner + 2 * b * n * inner * dim,
        transcendentals=2 * b * n * n * heads,
        bytes_accessed=(3 * 2 * b * n * inner + 2 * 4 * b * n * dim
                        + 2 * inner * dim))
    return pl.pallas_call(
        kern,
        out_shape=jax.ShapeDtypeStruct((b, n, dim), jnp.float32),
        grid=(b, n // tq, n // tk),
        in_specs=[
            pl.BlockSpec((1, tq, inner), lambda bi, qi, ki: (bi, qi, 0)),
            pl.BlockSpec((1, tk, inner), lambda bi, qi, ki: (bi, ki, 0)),
            pl.BlockSpec((1, tk, inner), lambda bi, qi, ki: (bi, ki, 0)),
            pl.BlockSpec((heads, dim_head), lambda bi, qi, ki: (0, 0)),
            pl.BlockSpec((heads, dim_head), lambda bi, qi, ki: (0, 0)),
            pl.BlockSpec((1, dim_head), lambda bi, qi, ki: (0, 0)),
            pl.BlockSpec((1, dim_head), lambda bi, qi, ki: (0, 0)),
            pl.BlockSpec((inner, dim), lambda bi, qi, ki: (0, 0)),
            pl.BlockSpec((1, tq, dim), lambda bi, qi, ki: (bi, qi, 0)),
        ],
        out_specs=pl.BlockSpec((1, tq, dim), lambda bi, qi, ki: (bi, qi, 0)),
        scratch_shapes=[
            pltpu.VMEM((tq, inner), _COMPUTE_DTYPE),   # scaled / normed Q
            pltpu.VMEM((tq, heads), jnp.float32),      # running max
            pltpu.VMEM((tq, heads), jnp.float32),      # running denom
            pltpu.VMEM((tq, inner), jnp.float32),      # running accumulator
        ],
        compiler_params=_params(("parallel", "parallel", "arbitrary")),
        cost_estimate=ce,
    )(q, k, v, null_k, null_v,
      q_scale.reshape(1, dim_head), k_scale.reshape(1, dim_head), wo, res)


# ------------------ fused FeedForward (LN->GEGLU->LN->Linear)+residual ------

def _ffn_kernel(x_ref, g1_ref, w1_ref, g2_ref, w2_ref, o_ref):
    x = x_ref[...]
    h = _layernorm(x, g1_ref[...]).astype(w1_ref.dtype)
    h = jnp.dot(h, w1_ref[...], preferred_element_type=jnp.float32)
    inner = w2_ref.shape[0]
    a = h[:, :inner]        # GEGLU per spec: x, gate = chunk(2); gate * gelu(x)
    gate = h[:, inner:]
    g = gate * (0.5 * a * (1.0 + lax.erf(a * (1.0 / math.sqrt(2.0)))))
    g = _layernorm(g, g2_ref[...]).astype(w2_ref.dtype)
    o_ref[...] = x + jnp.dot(g, w2_ref[...], preferred_element_type=jnp.float32)


def ffn_residual(x2d, g1, w1, g2, w2):
    m, d = x2d.shape
    i2 = w1.shape[1]
    inner = w2.shape[0]
    # Smaller row tile: this kernel keeps both FFN weights + the (tm, 2*inner)
    # hidden resident; bound the tile for v7x's 64 MiB VMEM.
    # TODO(synk): two-pass hidden-dim tiling for very large dim on v7x, and
    # 128/256-aligned ff_inner padding (needs LN over the true inner dim).
    tm = _pick_row_tile(m, target=256)
    ce = pl.CostEstimate(
        flops=2 * m * d * i2 + 2 * m * inner * d,
        transcendentals=m * inner + 2 * m,
        bytes_accessed=8 * m * d + 2 * (d * i2 + inner * d))
    return pl.pallas_call(
        _ffn_kernel,
        out_shape=jax.ShapeDtypeStruct((m, d), jnp.float32),
        grid=(m // tm,),
        in_specs=[pl.BlockSpec((tm, d), lambda i: (i, 0)),
                  pl.BlockSpec((1, d), lambda i: (0, 0)),
                  pl.BlockSpec((d, i2), lambda i: (0, 0)),
                  pl.BlockSpec((1, inner), lambda i: (0, 0)),
                  pl.BlockSpec((inner, d), lambda i: (0, 0))],
        out_specs=pl.BlockSpec((tm, d), lambda i: (i, 0)),
        compiler_params=_params(("parallel",)),
        cost_estimate=ce,
    )(x2d, g1.reshape(1, d), w1, g2.reshape(1, inner), w2)


# ------------- final LayerNorm + to_logits in [b, vq, n, tok] layout --------

def _ln_logits_kernel(x_ref, g_ref, w_ref, o_ref):
    xn = _layernorm(x_ref[0], g_ref[...]).astype(w_ref.dtype)
    o_ref[0, 0] = jnp.dot(xn, w_ref[0], preferred_element_type=jnp.float32)


def ln_logits(x3d, gamma, w):
    # x3d: (b, n, d) ; w: (vq, d, tok) ; output written directly in the final
    # [b, vq, n, tok] layout (no wrapper transpose).
    b, n, d = x3d.shape
    vq, _, tok = w.shape
    tn = _pick_row_tile(n, 512)
    ce = pl.CostEstimate(
        flops=2 * b * n * d * vq * tok,
        transcendentals=b * n * vq,
        bytes_accessed=4 * b * n * d * vq + 2 * vq * d * tok + 4 * b * n * vq * tok)
    return pl.pallas_call(
        _ln_logits_kernel,
        out_shape=jax.ShapeDtypeStruct((b, vq, n, tok), jnp.float32),
        grid=(b, n // tn, vq),
        in_specs=[pl.BlockSpec((1, tn, d), lambda bi, ni, ki: (bi, ni, 0)),
                  pl.BlockSpec((1, d), lambda bi, ni, ki: (0, 0)),
                  pl.BlockSpec((1, d, tok), lambda bi, ni, ki: (ki, 0, 0))],
        out_specs=pl.BlockSpec((1, 1, tn, tok),
                               lambda bi, ni, ki: (bi, ki, ni, 0)),
        compiler_params=_params(("parallel", "parallel", "arbitrary")),
        cost_estimate=ce,
    )(x3d, gamma.reshape(1, d), w)


# --------------------------- parameters / glue ------------------------------

def sinusoidal_pe(seq_len, dim):
    position = jnp.arange(seq_len, dtype=jnp.float32)[:, None]
    div_term = jnp.exp(jnp.arange(0, dim, 2, dtype=jnp.float32)
                       * -(math.log(10000.0) / dim))
    pe = jnp.zeros((seq_len, dim), jnp.float32)
    pe = pe.at[:, 0::2].set(jnp.sin(position * div_term))
    pe = pe.at[:, 1::2].set(jnp.cos(position * div_term))
    return pe


def init_params(key, *, dim, depth, heads, dim_head, ff_mult, num_tokens,
                vq_layers, seq_len):
    inner = dim_head * heads
    ff_inner = int(dim * ff_mult * 2 / 3)
    keys = iter(jax.random.split(key, 8 * depth + vq_layers + 8))

    def nrm(shape, std=0.02, dtype=_COMPUTE_DTYPE):
        return (jax.random.normal(next(keys), shape, jnp.float32) * std
                ).astype(dtype)

    # to_logits stored (vq_layers, dim, num_tokens) so logits can be emitted
    # directly in [b, vq, n, tok] layout.
    to_logits = jnp.stack(
        [nrm((dim, num_tokens)) for _ in range(vq_layers)], axis=0)

    params = {
        'pos_emb': sinusoidal_pe(seq_len, dim),
        'null_embed': jax.random.normal(next(keys), (dim,), jnp.float32),
        'final_gamma': jnp.ones((dim,), jnp.float32),
        'to_logits': to_logits,
        'layers': [],
    }
    for _ in range(depth):
        params['layers'].append({
            'attn': {
                'norm_gamma': jnp.ones((dim,), jnp.float32),
                'wqkv': nrm((dim, 3 * inner)),   # fused [wq | wk | wv]
                'wo': nrm((inner, dim)),
                'null_kv': jax.random.normal(next(keys),
                                             (2, heads, 1, dim_head),
                                             jnp.float32),
                'q_scale': jnp.ones((dim_head,), jnp.float32),
                'k_scale': jnp.ones((dim_head,), jnp.float32),
            },
            'ff': {
                'g1': jnp.ones((dim,), jnp.float32),
                'w1': nrm((dim, 2 * ff_inner)),
                'g2': jnp.ones((ff_inner,), jnp.float32),
                'w2': nrm((ff_inner, dim)),
            },
        })
    return params


def transformer_forward(params, code_embeds, audio_embeds_list, *, heads,
                        dim_head, vq_layers=1, attn_scale=8.0,
                        cond_drop_prob=0.0, self_cond=False,
                        use_rotary_pos_enc=False):
    if cond_drop_prob != 0.0 or self_cond or use_rotary_pos_enc:
        # TODO(synk): cond-dropout null-embed masking, self-conditioning and
        # rotary embeddings (and the labels/cross-entropy branch) are not
        # replicated; fail loudly instead of silently diverging.
        raise NotImplementedError("only the default forward path is implemented")

    b, n, dim = code_embeds.shape
    inner = heads * dim_head

    # x = code_embeds + sum(audio_embeds) + sinusoidal positional encoding
    x = embed_prologue(code_embeds, list(audio_embeds_list),
                       params['pos_emb'][:n])          # (b, n, dim) f32
    x2d = x.reshape(b * n, dim)

    for layer in params['layers']:
        a = layer['attn']
        # Fused pre-LN + one wide QKV projection; bf16 intermediates.
        q2d, k2d, v2d = ln_qkv(x2d, a['norm_gamma'], a['wqkv'])
        # Flash-tiled attention with null-KV folded into the online softmax,
        # fused output projection + residual in the epilogue.
        x = attention_block(
            q2d.reshape(b, n, inner), k2d.reshape(b, n, inner),
            v2d.reshape(b, n, inner),
            a['null_kv'][0, :, 0, :], a['null_kv'][1, :, 0, :],
            a['q_scale'], a['k_scale'], a['wo'], x2d.reshape(b, n, dim),
            heads=heads, dim_head=dim_head, scale=attn_scale)
        x2d = x.reshape(b * n, dim)

        f = layer['ff']
        # FeedForward fused with its residual add.
        x2d = ffn_residual(x2d, f['g1'], f['w1'], f['g2'], f['w2'])

    # Final LayerNorm fused with to_logits, emitted directly as [b, vq, n, tok].
    logits = ln_logits(x2d.reshape(b, n, dim), params['final_gamma'],
                       params['to_logits'])
    return logits   # [b, vq_layers, n, dim_out]


# ---------------------------------- main ------------------------------------

if __name__ == "__main__":
    b, n = 2, 8
    dim, num_tokens = 32, 16
    depth, heads, dim_head = 2, 2, 16
    ff_mult, vq_layers, seq_len = 3, 1, 8

    key = jax.random.PRNGKey(0)
    kp, kc, ka1, ka2 = jax.random.split(key, 4)
    params = init_params(kp, dim=dim, depth=depth, heads=heads,
                         dim_head=dim_head, ff_mult=ff_mult,
                         num_tokens=num_tokens, vq_layers=vq_layers,
                         seq_len=seq_len)

    code_embeds = jax.random.normal(kc, (b, n, dim), jnp.float32)
    audio_embeds = [jax.random.normal(ka1, (b, n, dim), jnp.float32),
                    jax.random.normal(ka2, (b, n, dim), jnp.float32)]

    fwd = jax.jit(functools.partial(transformer_forward, heads=heads,
                                    dim_head=dim_head, vq_layers=vq_layers))
    logits = fwd(params, code_embeds, audio_embeds)
    jax.block_until_ready(logits)
    assert logits.shape == (b, vq_layers, n, num_tokens)
    assert bool(jnp.all(jnp.isfinite(logits)))
    print("KERNEL_OK")
</pallas_src>

<mosaic_0001>
module attributes {stable_mosaic.version = 11 : i64} {
  func.func @_embed_sum_kernel(%arg0: i32, %arg1: i32, %arg2: memref<1x8x32xf32, #tpu.memory_space<vmem>>, %arg3: memref<1x8x32xf32, #tpu.memory_space<vmem>>, %arg4: memref<1x8x32xf32, #tpu.memory_space<vmem>>, %arg5: memref<8x32xf32, #tpu.memory_space<vmem>>, %arg6: memref<1x8x32xf32, #tpu.memory_space<vmem>>) attributes {dimension_semantics = [#tpu.dimension_semantics<parallel>, #tpu.dimension_semantics<parallel>], iteration_bounds = array<i64: 2, 1>, scalar_prefetch = 0 : i64, scratch_operands = 0 : i64, tpu.core_type = #tpu.core_type<tc>, window_params = [{transform_indices = @transform_0, window_bounds = array<i64: 1, 8, 32>}, {transform_indices = @transform_1, window_bounds = array<i64: 1, 8, 32>}, {transform_indices = @transform_2, window_bounds = array<i64: 1, 8, 32>}, {transform_indices = @transform_3, window_bounds = array<i64: 8, 32>}, {transform_indices = @transform_4, window_bounds = array<i64: 1, 8, 32>}]} {
    %c0 = arith.constant 0 : index
    %c0_0 = arith.constant 0 : index
    %c0_1 = arith.constant 0 : index
    %0 = vector.load %arg2[%c0, %c0_0, %c0_1] : memref<1x8x32xf32, #tpu.memory_space<vmem>>, vector<1x8x32xf32>
    %1 = vector.shape_cast %0 : vector<1x8x32xf32> to vector<8x32xf32>
    %c0_2 = arith.constant 0 : index
    %c0_3 = arith.constant 0 : index
    %c0_4 = arith.constant 0 : index
    %2 = vector.load %arg3[%c0_2, %c0_3, %c0_4] : memref<1x8x32xf32, #tpu.memory_space<vmem>>, vector<1x8x32xf32>
    %3 = vector.shape_cast %2 : vector<1x8x32xf32> to vector<8x32xf32>
    %4 = arith.addf %1, %3 : vector<8x32xf32>
    %c0_5 = arith.constant 0 : index
    %c0_6 = arith.constant 0 : index
    %c0_7 = arith.constant 0 : index
    %5 = vector.load %arg4[%c0_5, %c0_6, %c0_7] : memref<1x8x32xf32, #tpu.memory_space<vmem>>, vector<1x8x32xf32>
    %6 = vector.shape_cast %5 : vector<1x8x32xf32> to vector<8x32xf32>
    %7 = arith.addf %4, %6 : vector<8x32xf32>
    %c0_8 = arith.constant 0 : index
    %c0_9 = arith.constant 0 : index
    %8 = vector.load %arg5[%c0_8, %c0_9] : memref<8x32xf32, #tpu.memory_space<vmem>>, vector<8x32xf32>
    %9 = arith.addf %7, %8 : vector<8x32xf32>
    %c0_10 = arith.constant 0 : index
    %c0_11 = arith.constant 0 : index
    %c0_12 = arith.constant 0 : index
    %10 = vector.load %arg6[%c0_10, %c0_11, %c0_12] : memref<1x8x32xf32, #tpu.memory_space<vmem>>, vector<1x8x32xf32>
    %11 = vector.shape_cast %10 : vector<1x8x32xf32> to vector<8x32xf32>
    %12 = vector.shape_cast %9 : vector<8x32xf32> to vector<1x8x32xf32>
    tpu.vector_store %arg6[%c0_10, %c0_11, %c0_12], %12 {strides = array<i32>} : memref<1x8x32xf32, #tpu.memory_space<vmem>>, vector<1x8x32xf32>,
    return
  }
  func.func @transform_0(%arg0: i32, %arg1: i32) -> (i32, i32, i32) {
    %c0_i32 = arith.constant 0 : i32
    %c0_i32_0 = arith.constant 0 : i32
    return %arg0, %arg1, %c0_i32 : i32, i32, i32
  }
  func.func @transform_1(%arg0: i32, %arg1: i32) -> (i32, i32, i32) {
    %c0_i32 = arith.constant 0 : i32
    %c0_i32_0 = arith.constant 0 : i32
    return %arg0, %arg1, %c0_i32 : i32, i32, i32
  }
  func.func @transform_2(%arg0: i32, %arg1: i32) -> (i32, i32, i32) {
    %c0_i32 = arith.constant 0 : i32
    %c0_i32_0 = arith.constant 0 : i32
    return %arg0, %arg1, %c0_i32 : i32, i32, i32
  }
  func.func @transform_3(%arg0: i32, %arg1: i32) -> (i32, i32) {
    %c0_i32 = arith.constant 0 : i32
    %c0_i32_0 = arith.constant 0 : i32
    return %arg1, %c0_i32 : i32, i32
  }
  func.func @transform_4(%arg0: i32, %arg1: i32) -> (i32, i32, i32) {
    %c0_i32 = arith.constant 0 : i32
    %c0_i32_0 = arith.constant 0 : i32
    return %arg0, %arg1, %c0_i32 : i32, i32, i32
  }
}

module attributes {stable_mosaic.version = 11 : i64} {
  func.func @_ln_qkv_kernel(%arg0: i32, %arg1: memref<16x32xf32, #tpu.memory_space<vmem>>, %arg2: memref<1x32xf32, #tpu.memory_space<vmem>>, %arg3: memref<32x96xbf16, #tpu.memory_space<vmem>>, %arg4: memref<16x32xbf16, #tpu.memory_space<vmem>>, %arg5: memref<16x32xbf16, #tpu.memory_space<vmem>>, %arg6: memref<16x32xbf16, #tpu.memory_space<vmem>>) attributes {dimension_semantics = [#tpu.dimension_semantics<parallel>], iteration_bounds = array<i64: 1>, scalar_prefetch = 0 : i64, scratch_operands = 0 : i64, tpu.core_type = #tpu.core_type<tc>, window_params = [{transform_indices = @transform_0, window_bounds = array<i64: 16, 32>}, {pipeline_mode = #tpu.pipeline_mode<synchronous>, transform_indices = @transform_1, window_bounds = array<i64: 1, 32>}, {pipeline_mode = #tpu.pipeline_mode<synchronous>, transform_indices = @transform_2, window_bounds = array<i64: 32, 96>}, {transform_indices = @transform_3, window_bounds = array<i64: 16, 32>}, {transform_indices = @transform_4, window_bounds = array<i64: 16, 32>}, {transform_indices = @transform_5, window_bounds = array<i64: 16, 32>}]} {
    %c0 = arith.constant 0 : index
    %c0_0 = arith.constant 0 : index
    %0 = vector.load %arg1[%c0, %c0_0] : memref<16x32xf32, #tpu.memory_space<vmem>>, vector<16x32xf32>
    %c0_1 = arith.constant 0 : index
    %c0_2 = arith.constant 0 : index
    %1 = vector.load %arg2[%c0_1, %c0_2] : memref<1x32xf32, #tpu.memory_space<vmem>>, vector<1x32xf32>
    %cst = arith.constant dense<0.000000e+00> : vector<16xf32>
    %2 = vector.multi_reduction <add>, %0, %cst [1] : vector<16x32xf32> to vector<16xf32>
    %3 = vector.shape_cast %2 : vector<16xf32> to vector<16x1xf32>
    %cst_3 = arith.constant 3.200000e+01 : f32
    %4 = vector.broadcast %cst_3 : f32 to vector<16x1xf32>
    %5 = arith.divf %3, %4 : vector<16x1xf32>
    %6 = vector.broadcast %5 : vector<16x1xf32> to vector<16x32xf32>
    %7 = arith.subf %0, %6 : vector<16x32xf32>
    %8 = arith.mulf %7, %7 : vector<16x32xf32>
    %cst_4 = arith.constant dense<0.000000e+00> : vector<16xf32>
    %9 = vector.multi_reduction <add>, %8, %cst_4 [1] : vector<16x32xf32> to vector<16xf32>
    %10 = vector.shape_cast %9 : vector<16xf32> to vector<16x1xf32>
    %cst_5 = arith.constant 3.200000e+01 : f32
    %11 = vector.broadcast %cst_5 : f32 to vector<16x1xf32>
    %12 = arith.divf %10, %11 : vector<16x1xf32>
    %cst_6 = arith.constant 9.99999974E-6 : f32
    %13 = vector.broadcast %cst_6 : f32 to vector<16x1xf32>
    %14 = arith.addf %12, %13 : vector<16x1xf32>
    %15 = math.rsqrt %14 : vector<16x1xf32>
    %16 = vector.broadcast %15 : vector<16x1xf32> to vector<16x32xf32>
    %17 = arith.mulf %7, %16 : vector<16x32xf32>
    %18 = vector.broadcast %1 : vector<1x32xf32> to vector<16x32xf32>
    %19 = arith.mulf %17, %18 : vector<16x32xf32>
    %20 = arith.truncf %19 : vector<16x32xf32> to vector<16x32xbf16>
    %c0_7 = arith.constant 0 : index
    %c0_8 = arith.constant 0 : index
    %21 = vector.load %arg3[%c0_7, %c0_8] : memref<32x96xbf16, #tpu.memory_space<vmem>>, vector<32x96xbf16>
    %cst_9 = arith.constant dense<0.000000e+00> : vector<16x96xf32>
    %22 = tpu.matmul %20, %21, %cst_9 {dimension_numbers = #tpu.dot_dimension_numbers<[1], [0], [0], [1], [0, 0, 1, 1], [], []>} : vector<16x32xbf16>, vector<32x96xbf16>, vector<16x96xf32> -> vector<16x96xf32>
    %23 = vector.extract_strided_slice %22 {offsets = [0, 0], sizes = [16, 32], strides = [1, 1]} : vector<16x96xf32> to vector<16x32xf32>
    %24 = arith.truncf %23 : vector<16x32xf32> to vector<16x32xbf16>
    %c0_10 = arith.constant 0 : index
    %c0_11 = arith.constant 0 : index
    %25 = vector.load %arg4[%c0_10, %c0_11] : memref<16x32xbf16, #tpu.memory_space<vmem>>, vector<16x32xbf16>
    tpu.vector_store %arg4[%c0_10, %c0_11], %24 {strides = array<i32>} : memref<16x32xbf16, #tpu.memory_space<vmem>>, vector<16x32xbf16>,
    %26 = vector.extract_strided_slice %22 {offsets = [0, 32], sizes = [16, 32], strides = [1, 1]} : vector<16x96xf32> to vector<16x32xf32>
    %27 = arith.truncf %26 : vector<16x32xf32> to vector<16x32xbf16>
    %c0_12 = arith.constant 0 : index
    %c0_13 = arith.constant 0 : index
    %28 = vector.load %arg5[%c0_12, %c0_13] : memref<16x32xbf16, #tpu.memory_space<vmem>>, vector<16x32xbf16>
    tpu.vector_store %arg5[%c0_12, %c0_13], %27 {strides = array<i32>} : memref<16x32xbf16, #tpu.memory_space<vmem>>, vector<16x32xbf16>,
    %29 = vector.extract_strided_slice %22 {offsets = [0, 64], sizes = [16, 32], strides = [1, 1]} : vector<16x96xf32> to vector<16x32xf32>
    %30 = arith.truncf %29 : vector<16x32xf32> to vector<16x32xbf16>
    %c0_14 = arith.constant 0 : index
    %c0_15 = arith.constant 0 : index
    %31 = vector.load %arg6[%c0_14, %c0_15] : memref<16x32xbf16, #tpu.memory_space<vmem>>, vector<16x32xbf16>
    tpu.vector_store %arg6[%c0_14, %c0_15], %30 {strides = array<i32>} : memref<16x32xbf16, #tpu.memory_space<vmem>>, vector<16x32xbf16>,
    return
  }
  func.func @transform_0(%arg0: i32) -> (i32, i32) {
    %c0_i32 = arith.constant 0 : i32
    %c0_i32_0 = arith.constant 0 : i32
    return %arg0, %c0_i32 : i32, i32
  }
  func.func @transform_1(%arg0: i32) -> (i32, i32) {
    %c0_i32 = arith.constant 0 : i32
    %c0_i32_0 = arith.constant 0 : i32
    %c0_i32_1 = arith.constant 0 : i32
    return %c0_i32, %c0_i32_0 : i32, i32
  }
  func.func @transform_2(%arg0: i32) -> (i32, i32) {
    %c0_i32 = arith.constant 0 : i32
    %c0_i32_0 = arith.constant 0 : i32
    %c0_i32_1 = arith.constant 0 : i32
    return %c0_i32, %c0_i32_0 : i32, i32
  }
  func.func @transform_3(%arg0: i32) -> (i32, i32) {
    %c0_i32 = arith.constant 0 : i32
    %c0_i32_0 = arith.constant 0 : i32
    return %arg0, %c0_i32 : i32, i32
  }
  func.func @transform_4(%arg0: i32) -> (i32, i32) {
    %c0_i32 = arith.constant 0 : i32
    %c0_i32_0 = arith.constant 0 : i32
    return %arg0, %c0_i32 : i32, i32
  }
  func.func @transform_5(%arg0: i32) -> (i32, i32) {
    %c0_i32 = arith.constant 0 : i32
    %c0_i32_0 = arith.constant 0 : i32
    return %arg0, %c0_i32 : i32, i32
  }
}

module attributes {stable_mosaic.version = 11 : i64} {
  func.func @_flash_attn_kernel(%arg0: i32, %arg1: i32, %arg2: i32, %arg3: memref<1x8x32xbf16, #tpu.memory_space<vmem>>, %arg4: memref<1x8x32xbf16, #tpu.memory_space<vmem>>, %arg5: memref<1x8x32xbf16, #tpu.memory_space<vmem>>, %arg6: memref<2x16xf32, #tpu.memory_space<vmem>>, %arg7: memref<2x16xf32, #tpu.memory_space<vmem>>, %arg8: memref<1x16xf32, #tpu.memory_space<vmem>>, %arg9: memref<1x16xf32, #tpu.memory_space<vmem>>, %arg10: memref<32x32xbf16, #tpu.memory_space<vmem>>, %arg11: memref<1x8x32xf32, #tpu.memory_space<vmem>>, %arg12: memref<1x8x32xf32, #tpu.memory_space<vmem>>, %arg13: memref<8x32xbf16, #tpu.memory_space<vmem>>, %arg14: memref<8x2xf32, #tpu.memory_space<vmem>>, %arg15: memref<8x2xf32, #tpu.memory_space<vmem>>, %arg16: memref<8x32xf32, #tpu.memory_space<vmem>>) attributes {dimension_semantics = [#tpu.dimension_semantics<parallel>, #tpu.dimension_semantics<parallel>, #tpu.dimension_semantics<arbitrary>], iteration_bounds = array<i64: 2, 1, 1>, scalar_prefetch = 0 : i64, scratch_operands = 4 : i64, tpu.core_type = #tpu.core_type<tc>, window_params = [{transform_indices = @transform_0, window_bounds = array<i64: 1, 8, 32>}, {transform_indices = @transform_1, window_bounds = array<i64: 1, 8, 32>}, {transform_indices = @transform_2, window_bounds = array<i64: 1, 8, 32>}, {pipeline_mode = #tpu.pipeline_mode<synchronous>, transform_indices = @transform_3, window_bounds = array<i64: 2, 16>}, {pipeline_mode = #tpu.pipeline_mode<synchronous>, transform_indices = @transform_4, window_bounds = array<i64: 2, 16>}, {pipeline_mode = #tpu.pipeline_mode<synchronous>, transform_indices = @transform_5, window_bounds = array<i64: 1, 16>}, {pipeline_mode = #tpu.pipeline_mode<synchronous>, transform_indices = @transform_6, window_bounds = array<i64: 1, 16>}, {pipeline_mode = #tpu.pipeline_mode<synchronous>, transform_indices = @transform_7, window_bounds = array<i64: 32, 32>}, {transform_indices = @transform_8, window_bounds = array<i64: 1, 8, 32>}, {transform_indices = @transform_9, window_bounds = array<i64: 1, 8, 32>}]} {
    %c0 = arith.constant 0 : index
    %c0_0 = arith.constant 0 : index
    %0 = vector.load %arg8[%c0, %c0_0] : memref<1x16xf32, #tpu.memory_space<vmem>>, vector<1x16xf32>
    %c0_1 = arith.constant 0 : index
    %c0_2 = arith.constant 0 : index
    %1 = vector.load %arg9[%c0_1, %c0_2] : memref<1x16xf32, #tpu.memory_space<vmem>>, vector<1x16xf32>
    %c0_i32 = arith.constant 0 : i32
    %2 = arith.cmpi eq, %arg2, %c0_i32 : i32
    %3 = arith.extui %2 : i1 to i32
    %c0_i32_3 = arith.constant 0 : i32
    %4 = arith.cmpi ne, %3, %c0_i32_3 : i32
    scf.if %4 {
      %c0_49 = arith.constant 0 : index
      %c0_50 = arith.constant 0 : index
      %c0_51 = arith.constant 0 : index
      %89 = vector.load %arg3[%c0_49, %c0_50, %c0_51] : memref<1x8x32xbf16, #tpu.memory_space<vmem>>, vector<1x8x32xbf16>
      %90 = vector.shape_cast %89 : vector<1x8x32xbf16> to vector<8x32xbf16>
      %91 = arith.extf %90 : vector<8x32xbf16> to vector<8x32xf32>
      %92 = vector.extract_strided_slice %91 {offsets = [0, 0], sizes = [8, 16], strides = [1, 1]} : vector<8x32xf32> to vector<8x16xf32>
      %93 = arith.mulf %92, %92 : vector<8x16xf32>
      %cst_52 = arith.constant dense<0.000000e+00> : vector<8xf32>
      %94 = vector.multi_reduction <add>, %93, %cst_52 [1] : vector<8x16xf32> to vector<8xf32>
      %95 = vector.shape_cast %94 : vector<8xf32> to vector<8x1xf32>
      %96 = math.sqrt %95 : vector<8x1xf32>
      %cst_53 = arith.constant 9.99999996E-13 : f32
      %97 = vector.broadcast %cst_53 : f32 to vector<8x1xf32>
      %98 = arith.maximumf %96, %97 : vector<8x1xf32>
      %99 = vector.broadcast %98 : vector<8x1xf32> to vector<8x16xf32>
      %100 = arith.divf %92, %99 : vector<8x16xf32>
      %cst_54 = arith.constant 8.000000e+00 : f32
      %101 = vector.broadcast %cst_54 : f32 to vector<1x16xf32>
      %102 = arith.mulf %0, %101 : vector<1x16xf32>
      %103 = vector.broadcast %102 : vector<1x16xf32> to vector<8x16xf32>
      %104 = arith.mulf %100, %103 : vector<8x16xf32>
      %105 = arith.truncf %104 : vector<8x16xf32> to vector<8x16xbf16>
      %c0_55 = arith.constant 0 : index
      %c0_56 = arith.constant 0 : index
      %106 = vector.load %arg13[%c0_55, %c0_56] : memref<8x32xbf16, #tpu.memory_space<vmem>>, vector<8x16xbf16>
      tpu.vector_store %arg13[%c0_55, %c0_56], %105 {strides = array<i32>} : memref<8x32xbf16, #tpu.memory_space<vmem>>, vector<8x16xbf16>,
      %c0_57 = arith.constant 0 : index
      %c0_58 = arith.constant 0 : index
      %107 = vector.load %arg6[%c0_57, %c0_58] : memref<2x16xf32, #tpu.memory_space<vmem>>, vector<1x16xf32>
      %108 = arith.mulf %107, %107 : vector<1x16xf32>
      %cst_59 = arith.constant dense<0.000000e+00> : vector<1xf32>
      %109 = vector.multi_reduction <add>, %108, %cst_59 [1] : vector<1x16xf32> to vector<1xf32>
      %110 = vector.shape_cast %109 : vector<1xf32> to vector<1x1xf32>
      %111 = math.sqrt %110 : vector<1x1xf32>
      %cst_60 = arith.constant 9.99999996E-13 : f32
      %112 = vector.broadcast %cst_60 : f32 to vector<1x1xf32>
      %113 = arith.maximumf %111, %112 : vector<1x1xf32>
      %114 = vector.broadcast %113 : vector<1x1xf32> to vector<1x16xf32>
      %115 = arith.divf %107, %114 : vector<1x16xf32>
      %116 = arith.mulf %115, %1 : vector<1x16xf32>
      %117 = vector.broadcast %116 : vector<1x16xf32> to vector<8x16xf32>
      %118 = arith.mulf %104, %117 : vector<8x16xf32>
      %cst_61 = arith.constant dense<0.000000e+00> : vector<8xf32>
      %119 = vector.multi_reduction <add>, %118, %cst_61 [1] : vector<8x16xf32> to vector<8xf32>
      %120 = vector.shape_cast %119 : vector<8xf32> to vector<8x1xf32>
      %c0_62 = arith.constant 0 : index
      %c0_63 = arith.constant 0 : index
      %121 = vector.load %arg14[%c0_62, %c0_63] : memref<8x2xf32, #tpu.memory_space<vmem>>, vector<8x1xf32>
      tpu.vector_store %arg14[%c0_62, %c0_63], %120 {strides = array<i32>} : memref<8x2xf32, #tpu.memory_space<vmem>>, vector<8x1xf32>,
      %cst_64 = arith.constant 1.000000e+00 : f32
      %122 = vector.broadcast %cst_64 : f32 to vector<8x1xf32>
      %c0_65 = arith.constant 0 : index
      %c0_66 = arith.constant 0 : index
      %123 = vector.load %arg15[%c0_65, %c0_66] : memref<8x2xf32, #tpu.memory_space<vmem>>, vector<8x1xf32>
      tpu.vector_store %arg15[%c0_65, %c0_66], %122 {strides = array<i32>} : memref<8x2xf32, #tpu.memory_space<vmem>>, vector<8x1xf32>,
      %c0_67 = arith.constant 0 : index
      %c0_68 = arith.constant 0 : index
      %124 = vector.load %arg7[%c0_67, %c0_68] : memref<2x16xf32, #tpu.memory_space<vmem>>, vector<1x16xf32>
      %125 = vector.shape_cast %124 : vector<1x16xf32> to vector<1x16xf32>
      %126 = vector.broadcast %125 : vector<1x16xf32> to vector<8x16xf32>
      %c0_69 = arith.constant 0 : index
      %c0_70 = arith.constant 0 : index
      %127 = vector.load %arg16[%c0_69, %c0_70] : memref<8x32xf32, #tpu.memory_space<vmem>>, vector<8x16xf32>
      tpu.vector_store %arg16[%c0_69, %c0_70], %126 {strides = array<i32>} : memref<8x32xf32, #tpu.memory_space<vmem>>, vector<8x16xf32>,
      %128 = vector.extract_strided_slice %91 {offsets = [0, 16], sizes = [8, 16], strides = [1, 1]} : vector<8x32xf32> to vector<8x16xf32>
      %129 = arith.mulf %128, %128 : vector<8x16xf32>
      %cst_71 = arith.constant dense<0.000000e+00> : vector<8xf32>
      %130 = vector.multi_reduction <add>, %129, %cst_71 [1] : vector<8x16xf32> to vector<8xf32>
      %131 = vector.shape_cast %130 : vector<8xf32> to vector<8x1xf32>
      %132 = math.sqrt %131 : vector<8x1xf32>
      %cst_72 = arith.constant 9.99999996E-13 : f32
      %133 = vector.broadcast %cst_72 : f32 to vector<8x1xf32>
      %134 = arith.maximumf %132, %133 : vector<8x1xf32>
      %135 = vector.broadcast %134 : vector<8x1xf32> to vector<8x16xf32>
      %136 = arith.divf %128, %135 : vector<8x16xf32>
      %cst_73 = arith.constant 8.000000e+00 : f32
      %137 = vector.broadcast %cst_73 : f32 to vector<1x16xf32>
      %138 = arith.mulf %0, %137 : vector<1x16xf32>
      %139 = vector.broadcast %138 : vector<1x16xf32> to vector<8x16xf32>
      %140 = arith.mulf %136, %139 : vector<8x16xf32>
      %141 = arith.truncf %140 : vector<8x16xf32> to vector<8x16xbf16>
      %c0_74 = arith.constant 0 : index
      %c16_75 = arith.constant 16 : index
      %142 = vector.load %arg13[%c0_74, %c16_75] : memref<8x32xbf16, #tpu.memory_space<vmem>>, vector<8x16xbf16>
      tpu.vector_store %arg13[%c0_74, %c16_75], %141 {strides = array<i32>} : memref<8x32xbf16, #tpu.memory_space<vmem>>, vector<8x16xbf16>,
      %c1_76 = arith.constant 1 : index
      %c0_77 = arith.constant 0 : index
      %143 = vector.load %arg6[%c1_76, %c0_77] : memref<2x16xf32, #tpu.memory_space<vmem>>, vector<1x16xf32>
      %144 = arith.mulf %143, %143 : vector<1x16xf32>
      %cst_78 = arith.constant dense<0.000000e+00> : vector<1xf32>
      %145 = vector.multi_reduction <add>, %144, %cst_78 [1] : vector<1x16xf32> to vector<1xf32>
      %146 = vector.shape_cast %145 : vector<1xf32> to vector<1x1xf32>
      %147 = math.sqrt %146 : vector<1x1xf32>
      %cst_79 = arith.constant 9.99999996E-13 : f32
      %148 = vector.broadcast %cst_79 : f32 to vector<1x1xf32>
      %149 = arith.maximumf %147, %148 : vector<1x1xf32>
      %150 = vector.broadcast %149 : vector<1x1xf32> to vector<1x16xf32>
      %151 = arith.divf %143, %150 : vector<1x16xf32>
      %152 = arith.mulf %151, %1 : vector<1x16xf32>
      %153 = vector.broadcast %152 : vector<1x16xf32> to vector<8x16xf32>
      %154 = arith.mulf %140, %153 : vector<8x16xf32>
      %cst_80 = arith.constant dense<0.000000e+00> : vector<8xf32>
      %155 = vector.multi_reduction <add>, %154, %cst_80 [1] : vector<8x16xf32> to vector<8xf32>
      %156 = vector.shape_cast %155 : vector<8xf32> to vector<8x1xf32>
      %c0_81 = arith.constant 0 : index
      %c1_82 = arith.constant 1 : index
      %157 = vector.load %arg14[%c0_81, %c1_82] : memref<8x2xf32, #tpu.memory_space<vmem>>, vector<8x1xf32>
      tpu.vector_store %arg14[%c0_81, %c1_82], %156 {strides = array<i32>} : memref<8x2xf32, #tpu.memory_space<vmem>>, vector<8x1xf32>,
      %cst_83 = arith.constant 1.000000e+00 : f32
      %158 = vector.broadcast %cst_83 : f32 to vector<8x1xf32>
      %c0_84 = arith.constant 0 : index
      %c1_85 = arith.constant 1 : index
      %159 = vector.load %arg15[%c0_84, %c1_85] : memref<8x2xf32, #tpu.memory_space<vmem>>, vector<8x1xf32>
      tpu.vector_store %arg15[%c0_84, %c1_85], %158 {strides = array<i32>} : memref<8x2xf32, #tpu.memory_space<vmem>>, vector<8x1xf32>,
      %c1_86 = arith.constant 1 : index
      %c0_87 = arith.constant 0 : index
      %160 = vector.load %arg7[%c1_86, %c0_87] : memref<2x16xf32, #tpu.memory_space<vmem>>, vector<1x16xf32>
      %161 = vector.shape_cast %160 : vector<1x16xf32> to vector<1x16xf32>
      %162 = vector.broadcast %161 : vector<1x16xf32> to vector<8x16xf32>
      %c0_88 = arith.constant 0 : index
      %c16_89 = arith.constant 16 : index
      %163 = vector.load %arg16[%c0_88, %c16_89] : memref<8x32xf32, #tpu.memory_space<vmem>>, vector<8x16xf32>
      tpu.vector_store %arg16[%c0_88, %c16_89], %162 {strides = array<i32>} : memref<8x32xf32, #tpu.memory_space<vmem>>, vector<8x16xf32>,
    } else {
    }
    %c0_4 = arith.constant 0 : index
    %c0_5 = arith.constant 0 : index
    %c0_6 = arith.constant 0 : index
    %5 = vector.load %arg4[%c0_4, %c0_5, %c0_6] : memref<1x8x32xbf16, #tpu.memory_space<vmem>>, vector<1x8x32xbf16>
    %6 = vector.shape_cast %5 : vector<1x8x32xbf16> to vector<8x32xbf16>
    %7 = arith.extf %6 : vector<8x32xbf16> to vector<8x32xf32>
    %c0_7 = arith.constant 0 : index
    %c0_8 = arith.constant 0 : index
    %c0_9 = arith.constant 0 : index
    %8 = vector.load %arg5[%c0_7, %c0_8, %c0_9] : memref<1x8x32xbf16, #tpu.memory_space<vmem>>, vector<1x8x32xbf16>
    %9 = vector.shape_cast %8 : vector<1x8x32xbf16> to vector<8x32xbf16>
    %c0_10 = arith.constant 0 : index
    %c0_11 = arith.constant 0 : index
    %10 = vector.load %arg13[%c0_10, %c0_11] : memref<8x32xbf16, #tpu.memory_space<vmem>>, vector<8x16xbf16>
    %11 = vector.extract_strided_slice %7 {offsets = [0, 0], sizes = [8, 16], strides = [1, 1]} : vector<8x32xf32> to vector<8x16xf32>
    %12 = arith.mulf %11, %11 : vector<8x16xf32>
    %cst = arith.constant dense<0.000000e+00> : vector<8xf32>
    %13 = vector.multi_reduction <add>, %12, %cst [1] : vector<8x16xf32> to vector<8xf32>
    %14 = vector.shape_cast %13 : vector<8xf32> to vector<8x1xf32>
    %15 = math.sqrt %14 : vector<8x1xf32>
    %cst_12 = arith.constant 9.99999996E-13 : f32
    %16 = vector.broadcast %cst_12 : f32 to vector<8x1xf32>
    %17 = arith.maximumf %15, %16 : vector<8x1xf32>
    %18 = vector.broadcast %17 : vector<8x1xf32> to vector<8x16xf32>
    %19 = arith.divf %11, %18 : vector<8x16xf32>
    %20 = vector.broadcast %1 : vector<1x16xf32> to vector<8x16xf32>
    %21 = arith.mulf %19, %20 : vector<8x16xf32>
    %22 = arith.truncf %21 : vector<8x16xf32> to vector<8x16xbf16>
    %23 = vector.extract_strided_slice %9 {offsets = [0, 0], sizes = [8, 16], strides = [1, 1]} : vector<8x32xbf16> to vector<8x16xbf16>
    %cst_13 = arith.constant dense<0.000000e+00> : vector<8x8xf32>
    %24 = tpu.matmul %10, %22, %cst_13 {dimension_numbers = #tpu.dot_dimension_numbers<[1], [1], [0], [0], [0, 0, 1, 0], [], []>} : vector<8x16xbf16>, vector<8x16xbf16>, vector<8x8xf32> -> vector<8x8xf32>
    %c0_14 = arith.constant 0 : index
    %c0_15 = arith.constant 0 : index
    %25 = vector.load %arg14[%c0_14, %c0_15] : memref<8x2xf32, #tpu.memory_space<vmem>>, vector<8x1xf32>
    %cst_16 = arith.constant dense<0xFF800000> : vector<8xf32>
    %26 = vector.multi_reduction <maximumf>, %24, %cst_16 [1] : vector<8x8xf32> to vector<8xf32>
    %27 = vector.shape_cast %26 : vector<8xf32> to vector<8x1xf32>
    %28 = arith.maximumf %25, %27 : vector<8x1xf32>
    %29 = arith.subf %25, %28 : vector<8x1xf32>
    %30 = math.exp %29 : vector<8x1xf32>
    %31 = vector.broadcast %28 : vector<8x1xf32> to vector<8x8xf32>
    %32 = arith.subf %24, %31 : vector<8x8xf32>
    %33 = math.exp %32 : vector<8x8xf32>
    %c0_17 = arith.constant 0 : index
    %c0_18 = arith.constant 0 : index
    %34 = vector.load %arg15[%c0_17, %c0_18] : memref<8x2xf32, #tpu.memory_space<vmem>>, vector<8x1xf32>
    %35 = arith.mulf %30, %34 : vector<8x1xf32>
    %cst_19 = arith.constant dense<0.000000e+00> : vector<8xf32>
    %36 = vector.multi_reduction <add>, %33, %cst_19 [1] : vector<8x8xf32> to vector<8xf32>
    %37 = vector.shape_cast %36 : vector<8xf32> to vector<8x1xf32>
    %38 = arith.addf %35, %37 : vector<8x1xf32>
    %c0_20 = arith.constant 0 : index
    %c0_21 = arith.constant 0 : index
    %39 = vector.load %arg15[%c0_20, %c0_21] : memref<8x2xf32, #tpu.memory_space<vmem>>, vector<8x1xf32>
    tpu.vector_store %arg15[%c0_20, %c0_21], %38 {strides = array<i32>} : memref<8x2xf32, #tpu.memory_space<vmem>>, vector<8x1xf32>,
    %c0_22 = arith.constant 0 : index
    %c0_23 = arith.constant 0 : index
    %40 = vector.load %arg16[%c0_22, %c0_23] : memref<8x32xf32, #tpu.memory_space<vmem>>, vector<8x16xf32>
    %41 = vector.broadcast %30 : vector<8x1xf32> to vector<8x16xf32>
    %42 = arith.mulf %41, %40 : vector<8x16xf32>
    %43 = arith.truncf %33 : vector<8x8xf32> to vector<8x8xbf16>
    %cst_24 = arith.constant dense<0.000000e+00> : vector<8x16xf32>
    %44 = tpu.matmul %43, %23, %cst_24 {dimension_numbers = #tpu.dot_dimension_numbers<[1], [0], [0], [1], [0, 0, 1, 1], [], []>} : vector<8x8xbf16>, vector<8x16xbf16>, vector<8x16xf32> -> vector<8x16xf32>
    %45 = arith.addf %42, %44 : vector<8x16xf32>
    %c0_25 = arith.constant 0 : index
    %c0_26 = arith.constant 0 : index
    %46 = vector.load %arg16[%c0_25, %c0_26] : memref<8x32xf32, #tpu.memory_space<vmem>>, vector<8x16xf32>
    tpu.vector_store %arg16[%c0_25, %c0_26], %45 {strides = array<i32>} : memref<8x32xf32, #tpu.memory_space<vmem>>, vector<8x16xf32>,
    %c0_27 = arith.constant 0 : index
    %c0_28 = arith.constant 0 : index
    %47 = vector.load %arg14[%c0_27, %c0_28] : memref<8x2xf32, #tpu.memory_space<vmem>>, vector<8x1xf32>
    tpu.vector_store %arg14[%c0_27, %c0_28], %28 {strides = array<i32>} : memref<8x2xf32, #tpu.memory_space<vmem>>, vector<8x1xf32>,
    %c0_29 = arith.constant 0 : index
    %c16 = arith.constant 16 : index
    %48 = vector.load %arg13[%c0_29, %c16] : memref<8x32xbf16, #tpu.memory_space<vmem>>, vector<8x16xbf16>
    %49 = vector.extract_strided_slice %7 {offsets = [0, 16], sizes = [8, 16], strides = [1, 1]} : vector<8x32xf32> to vector<8x16xf32>
    %50 = arith.mulf %49, %49 : vector<8x16xf32>
    %cst_30 = arith.constant dense<0.000000e+00> : vector<8xf32>
    %51 = vector.multi_reduction <add>, %50, %cst_30 [1] : vector<8x16xf32> to vector<8xf32>
    %52 = vector.shape_cast %51 : vector<8xf32> to vector<8x1xf32>
    %53 = math.sqrt %52 : vector<8x1xf32>
    %cst_31 = arith.constant 9.99999996E-13 : f32
    %54 = vector.broadcast %cst_31 : f32 to vector<8x1xf32>
    %55 = arith.maximumf %53, %54 : vector<8x1xf32>
    %56 = vector.broadcast %55 : vector<8x1xf32> to vector<8x16xf32>
    %57 = arith.divf %49, %56 : vector<8x16xf32>
    %58 = vector.broadcast %1 : vector<1x16xf32> to vector<8x16xf32>
    %59 = arith.mulf %57, %58 : vector<8x16xf32>
    %60 = arith.truncf %59 : vector<8x16xf32> to vector<8x16xbf16>
    %61 = vector.extract_strided_slice %9 {offsets = [0, 16], sizes = [8, 16], strides = [1, 1]} : vector<8x32xbf16> to vector<8x16xbf16>
    %cst_32 = arith.constant dense<0.000000e+00> : vector<8x8xf32>
    %62 = tpu.matmul %48, %60, %cst_32 {dimension_numbers = #tpu.dot_dimension_numbers<[1], [1], [0], [0], [0, 0, 1, 0], [], []>} : vector<8x16xbf16>, vector<8x16xbf16>, vector<8x8xf32> -> vector<8x8xf32>
    %c0_33 = arith.constant 0 : index
    %c1 = arith.constant 1 : index
    %63 = vector.load %arg14[%c0_33, %c1] : memref<8x2xf32, #tpu.memory_space<vmem>>, vector<8x1xf32>
    %cst_34 = arith.constant dense<0xFF800000> : vector<8xf32>
    %64 = vector.multi_reduction <maximumf>, %62, %cst_34 [1] : vector<8x8xf32> to vector<8xf32>
    %65 = vector.shape_cast %64 : vector<8xf32> to vector<8x1xf32>
    %66 = arith.maximumf %63, %65 : vector<8x1xf32>
    %67 = arith.subf %63, %66 : vector<8x1xf32>
    %68 = math.exp %67 : vector<8x1xf32>
    %69 = vector.broadcast %66 : vector<8x1xf32> to vector<8x8xf32>
    %70 = arith.subf %62, %69 : vector<8x8xf32>
    %71 = math.exp %70 : vector<8x8xf32>
    %c0_35 = arith.constant 0 : index
    %c1_36 = arith.constant 1 : index
    %72 = vector.load %arg15[%c0_35, %c1_36] : memref<8x2xf32, #tpu.memory_space<vmem>>, vector<8x1xf32>
    %73 = arith.mulf %68, %72 : vector<8x1xf32>
    %cst_37 = arith.constant dense<0.000000e+00> : vector<8xf32>
    %74 = vector.multi_reduction <add>, %71, %cst_37 [1] : vector<8x8xf32> to vector<8xf32>
    %75 = vector.shape_cast %74 : vector<8xf32> to vector<8x1xf32>
    %76 = arith.addf %73, %75 : vector<8x1xf32>
    %c0_38 = arith.constant 0 : index
    %c1_39 = arith.constant 1 : index
    %77 = vector.load %arg15[%c0_38, %c1_39] : memref<8x2xf32, #tpu.memory_space<vmem>>, vector<8x1xf32>
    tpu.vector_store %arg15[%c0_38, %c1_39], %76 {strides = array<i32>} : memref<8x2xf32, #tpu.memory_space<vmem>>, vector<8x1xf32>,
    %c0_40 = arith.constant 0 : index
    %c16_41 = arith.constant 16 : index
    %78 = vector.load %arg16[%c0_40, %c16_41] : memref<8x32xf32, #tpu.memory_space<vmem>>, vector<8x16xf32>
    %79 = vector.broadcast %68 : vector<8x1xf32> to vector<8x16xf32>
    %80 = arith.mulf %79, %78 : vector<8x16xf32>
    %81 = arith.truncf %71 : vector<8x8xf32> to vector<8x8xbf16>
    %cst_42 = arith.constant dense<0.000000e+00> : vector<8x16xf32>
    %82 = tpu.matmul %81, %61, %cst_42 {dimension_numbers = #tpu.dot_dimension_numbers<[1], [0], [0], [1], [0, 0, 1, 1], [], []>} : vector<8x8xbf16>, vector<8x16xbf16>, vector<8x16xf32> -> vector<8x16xf32>
    %83 = arith.addf %80, %82 : vector<8x16xf32>
    %c0_43 = arith.constant 0 : index
    %c16_44 = arith.constant 16 : index
    %84 = vector.load %arg16[%c0_43, %c16_44] : memref<8x32xf32, #tpu.memory_space<vmem>>, vector<8x16xf32>
    tpu.vector_store %arg16[%c0_43, %c16_44], %83 {strides = array<i32>} : memref<8x32xf32, #tpu.memory_space<vmem>>, vector<8x16xf32>,
    %c0_45 = arith.constant 0 : index
    %c1_46 = arith.constant 1 : index
    %85 = vector.load %arg14[%c0_45, %c1_46] : memref<8x2xf32, #tpu.memory_space<vmem>>, vector<8x1xf32>
    tpu.vector_store %arg14[%c0_45, %c1_46], %66 {strides = array<i32>} : memref<8x2xf32, #tpu.memory_space<vmem>>, vector<8x1xf32>,
    %c0_i32_47 = arith.constant 0 : i32
    %86 = arith.cmpi eq, %arg2, %c0_i32_47 : i32
    %87 = arith.extui %86 : i1 to i32
    %c0_i32_48 = arith.constant 0 : i32
    %88 = arith.cmpi ne, %87, %c0_i32_48 : i32
    scf.if %88 {
      %c0_49 = arith.constant 0 : index
      %c0_50 = arith.constant 0 : index
      %89 = vector.load %arg15[%c0_49, %c0_50] : memref<8x2xf32, #tpu.memory_space<vmem>>, vector<8x1xf32>
      %90 = tpu.reciprocal %89 {approx = true} : vector<8x1xf32> -> vector<8x1xf32>
      %c0_51 = arith.constant 0 : index
      %c0_52 = arith.constant 0 : index
      %91 = vector.load %arg16[%c0_51, %c0_52] : memref<8x32xf32, #tpu.memory_space<vmem>>, vector<8x16xf32>
      %92 = vector.broadcast %90 : vector<8x1xf32> to vector<8x16xf32>
      %93 = arith.mulf %91, %92 : vector<8x16xf32>
      %c0_53 = arith.constant 0 : index
      %c1_54 = arith.constant 1 : index
      %94 = vector.load %arg15[%c0_53, %c1_54] : memref<8x2xf32, #tpu.memory_space<vmem>>, vector<8x1xf32>
      %95 = tpu.reciprocal %94 {approx = true} : vector<8x1xf32> -> vector<8x1xf32>
      %c0_55 = arith.constant 0 : index
      %c16_56 = arith.constant 16 : index
      %96 = vector.load %arg16[%c0_55, %c16_56] : memref<8x32xf32, #tpu.memory_space<vmem>>, vector<8x16xf32>
      %97 = vector.broadcast %95 : vector<8x1xf32> to vector<8x16xf32>
      %98 = arith.mulf %96, %97 : vector<8x16xf32>
      %99 = tpu.concatenate %93, %98 in 1 : vector<8x16xf32>, vector<8x16xf32> -> vector<8x32xf32>
      %100 = arith.truncf %99 : vector<8x32xf32> to vector<8x32xbf16>
      %c0_57 = arith.constant 0 : index
      %c0_58 = arith.constant 0 : index
      %c0_59 = arith.constant 0 : index
      %101 = vector.load %arg11[%c0_57, %c0_58, %c0_59] : memref<1x8x32xf32, #tpu.memory_space<vmem>>, vector<1x8x32xf32>
      %102 = vector.shape_cast %101 : vector<1x8x32xf32> to vector<8x32xf32>
      %c0_60 = arith.constant 0 : index
      %c0_61 = arith.constant 0 : index
      %103 = vector.load %arg10[%c0_60, %c0_61] : memref<32x32xbf16, #tpu.memory_space<vmem>>, vector<32x32xbf16>
      %cst_62 = arith.constant dense<0.000000e+00> : vector<8x32xf32>
      %104 = tpu.matmul %100, %103, %cst_62 {dimension_numbers = #tpu.dot_dimension_numbers<[1], [0], [0], [1], [0, 0, 1, 1], [], []>} : vector<8x32xbf16>, vector<32x32xbf16>, vector<8x32xf32> -> vector<8x32xf32>
      %105 = arith.addf %102, %104 : vector<8x32xf32>
      %c0_63 = arith.constant 0 : index
      %c0_64 = arith.constant 0 : index
      %c0_65 = arith.constant 0 : index
      %106 = vector.load %arg12[%c0_63, %c0_64, %c0_65] : memref<1x8x32xf32, #tpu.memory_space<vmem>>, vector<1x8x32xf32>
      %107 = vector.shape_cast %106 : vector<1x8x32xf32> to vector<8x32xf32>
      %108 = vector.shape_cast %105 : vector<8x32xf32> to vector<1x8x32xf32>
      tpu.vector_store %arg12[%c0_63, %c0_64, %c0_65], %108 {strides = array<i32>} : memref<1x8x32xf32, #tpu.memory_space<vmem>>, vector<1x8x32xf32>,
    } else {
    }
    return
  }
  func.func @transform_0(%arg0: i32, %arg1: i32, %arg2: i32) -> (i32, i32, i32) {
    %c0_i32 = arith.constant 0 : i32
    %c0_i32_0 = arith.constant 0 : i32
    return %arg0, %arg1, %c0_i32 : i32, i32, i32
  }
  func.func @transform_1(%arg0: i32, %arg1: i32, %arg2: i32) -> (i32, i32, i32) {
    %c0_i32 = arith.constant 0 : i32
    %c0_i32_0 = arith.constant 0 : i32
    return %arg0, %arg2, %c0_i32 : i32, i32, i32
  }
  func.func @transform_2(%arg0: i32, %arg1: i32, %arg2: i32) -> (i32, i32, i32) {
    %c0_i32 = arith.constant 0 : i32
    %c0_i32_0 = arith.constant 0 : i32
    return %arg0, %arg2, %c0_i32 : i32, i32, i32
  }
  func.func @transform_3(%arg0: i32, %arg1: i32, %arg2: i32) -> (i32, i32) {
    %c0_i32 = arith.constant 0 : i32
    %c0_i32_0 = arith.constant 0 : i32
    %c0_i32_1 = arith.constant 0 : i32
    return %c0_i32, %c0_i32_0 : i32, i32
  }
  func.func @transform_4(%arg0: i32, %arg1: i32, %arg2: i32) -> (i32, i32) {
    %c0_i32 = arith.constant 0 : i32
    %c0_i32_0 = arith.constant 0 : i32
    %c0_i32_1 = arith.constant 0 : i32
    return %c0_i32, %c0_i32_0 : i32, i32
  }
  func.func @transform_5(%arg0: i32, %arg1: i32, %arg2: i32) -> (i32, i32) {
    %c0_i32 = arith.constant 0 : i32
    %c0_i32_0 = arith.constant 0 : i32
    %c0_i32_1 = arith.constant 0 : i32
    return %c0_i32, %c0_i32_0 : i32, i32
  }
  func.func @transform_6(%arg0: i32, %arg1: i32, %arg2: i32) -> (i32, i32) {
    %c0_i32 = arith.constant 0 : i32
    %c0_i32_0 = arith.constant 0 : i32
    %c0_i32_1 = arith.constant 0 : i32
    return %c0_i32, %c0_i32_0 : i32, i32
  }
  func.func @transform_7(%arg0: i32, %arg1: i32, %arg2: i32) -> (i32, i32) {
    %c0_i32 = arith.constant 0 : i32
    %c0_i32_0 = arith.constant 0 : i32
    %c0_i32_1 = arith.constant 0 : i32
    return %c0_i32, %c0_i32_0 : i32, i32
  }
  func.func @transform_8(%arg0: i32, %arg1: i32, %arg2: i32) -> (i32, i32, i32) {
    %c0_i32 = arith.constant 0 : i32
    %c0_i32_0 = arith.constant 0 : i32
    return %arg0, %arg1, %c0_i32 : i32, i32, i32
  }
  func.func @transform_9(%arg0: i32, %arg1: i32, %arg2: i32) -> (i32, i32, i32) {
    %c0_i32 = arith.constant 0 : i32
    %c0_i32_0 = arith.constant 0 : i32
    return %arg0, %arg1, %c0_i32 : i32, i32, i32
  }
}

module attributes {stable_mosaic.version = 11 : i64} {
  func.func @_ffn_kernel(%arg0: i32, %arg1: memref<16x32xf32, #tpu.memory_space<vmem>>, %arg2: memref<1x32xf32, #tpu.memory_space<vmem>>, %arg3: memref<32x128xbf16, #tpu.memory_space<vmem>>, %arg4: memref<1x64xf32, #tpu.memory_space<vmem>>, %arg5: memref<64x32xbf16, #tpu.memory_space<vmem>>, %arg6: memref<16x32xf32, #tpu.memory_space<vmem>>) attributes {dimension_semantics = [#tpu.dimension_semantics<parallel>], iteration_bounds = array<i64: 1>, scalar_prefetch = 0 : i64, scratch_operands = 0 : i64, tpu.core_type = #tpu.core_type<tc>, window_params = [{transform_indices = @transform_0, window_bounds = array<i64: 16, 32>}, {pipeline_mode = #tpu.pipeline_mode<synchronous>, transform_indices = @transform_1, window_bounds = array<i64: 1, 32>}, {pipeline_mode = #tpu.pipeline_mode<synchronous>, transform_indices = @transform_2, window_bounds = array<i64: 32, 128>}, {pipeline_mode = #tpu.pipeline_mode<synchronous>, transform_indices = @transform_3, window_bounds = array<i64: 1, 64>}, {pipeline_mode = #tpu.pipeline_mode<synchronous>, transform_indices = @transform_4, window_bounds = array<i64: 64, 32>}, {transform_indices = @transform_5, window_bounds = array<i64: 16, 32>}]} {
    %c0 = arith.constant 0 : index
    %c0_0 = arith.constant 0 : index
    %0 = vector.load %arg1[%c0, %c0_0] : memref<16x32xf32, #tpu.memory_space<vmem>>, vector<16x32xf32>
    %c0_1 = arith.constant 0 : index
    %c0_2 = arith.constant 0 : index
    %1 = vector.load %arg2[%c0_1, %c0_2] : memref<1x32xf32, #tpu.memory_space<vmem>>, vector<1x32xf32>
    %cst = arith.constant dense<0.000000e+00> : vector<16xf32>
    %2 = vector.multi_reduction <add>, %0, %cst [1] : vector<16x32xf32> to vector<16xf32>
    %3 = vector.shape_cast %2 : vector<16xf32> to vector<16x1xf32>
    %cst_3 = arith.constant 3.200000e+01 : f32
    %4 = vector.broadcast %cst_3 : f32 to vector<16x1xf32>
    %5 = arith.divf %3, %4 : vector<16x1xf32>
    %6 = vector.broadcast %5 : vector<16x1xf32> to vector<16x32xf32>
    %7 = arith.subf %0, %6 : vector<16x32xf32>
    %8 = arith.mulf %7, %7 : vector<16x32xf32>
    %cst_4 = arith.constant dense<0.000000e+00> : vector<16xf32>
    %9 = vector.multi_reduction <add>, %8, %cst_4 [1] : vector<16x32xf32> to vector<16xf32>
    %10 = vector.shape_cast %9 : vector<16xf32> to vector<16x1xf32>
    %cst_5 = arith.constant 3.200000e+01 : f32
    %11 = vector.broadcast %cst_5 : f32 to vector<16x1xf32>
    %12 = arith.divf %10, %11 : vector<16x1xf32>
    %cst_6 = arith.constant 9.99999974E-6 : f32
    %13 = vector.broadcast %cst_6 : f32 to vector<16x1xf32>
    %14 = arith.addf %12, %13 : vector<16x1xf32>
    %15 = math.rsqrt %14 : vector<16x1xf32>
    %16 = vector.broadcast %15 : vector<16x1xf32> to vector<16x32xf32>
    %17 = arith.mulf %7, %16 : vector<16x32xf32>
    %18 = vector.broadcast %1 : vector<1x32xf32> to vector<16x32xf32>
    %19 = arith.mulf %17, %18 : vector<16x32xf32>
    %20 = arith.truncf %19 : vector<16x32xf32> to vector<16x32xbf16>
    %c0_7 = arith.constant 0 : index
    %c0_8 = arith.constant 0 : index
    %21 = vector.load %arg3[%c0_7, %c0_8] : memref<32x128xbf16, #tpu.memory_space<vmem>>, vector<32x128xbf16>
    %cst_9 = arith.constant dense<0.000000e+00> : vector<16x128xf32>
    %22 = tpu.matmul %20, %21, %cst_9 {dimension_numbers = #tpu.dot_dimension_numbers<[1], [0], [0], [1], [0, 0, 1, 1], [], []>} : vector<16x32xbf16>, vector<32x128xbf16>, vector<16x128xf32> -> vector<16x128xf32>
    %23 = vector.extract_strided_slice %22 {offsets = [0, 0], sizes = [16, 64], strides = [1, 1]} : vector<16x128xf32> to vector<16x64xf32>
    %24 = vector.extract_strided_slice %22 {offsets = [0, 64], sizes = [16, 64], strides = [1, 1]} : vector<16x128xf32> to vector<16x64xf32>
    %cst_10 = arith.constant 5.000000e-01 : f32
    %25 = vector.broadcast %cst_10 : f32 to vector<16x64xf32>
    %26 = arith.mulf %25, %23 : vector<16x64xf32>
    %cst_11 = arith.constant 0.707106769 : f32
    %27 = vector.broadcast %cst_11 : f32 to vector<16x64xf32>
    %28 = arith.mulf %23, %27 : vector<16x64xf32>
    %29 = math.erf %28 : vector<16x64xf32>
    %cst_12 = arith.constant 1.000000e+00 : f32
    %30 = vector.broadcast %cst_12 : f32 to vector<16x64xf32>
    %31 = arith.addf %30, %29 : vector<16x64xf32>
    %32 = arith.mulf %26, %31 : vector<16x64xf32>
    %33 = arith.mulf %24, %32 : vector<16x64xf32>
    %c0_13 = arith.constant 0 : index
    %c0_14 = arith.constant 0 : index
    %34 = vector.load %arg4[%c0_13, %c0_14] : memref<1x64xf32, #tpu.memory_space<vmem>>, vector<1x64xf32>
    %cst_15 = arith.constant dense<0.000000e+00> : vector<16xf32>
    %35 = vector.multi_reduction <add>, %33, %cst_15 [1] : vector<16x64xf32> to vector<16xf32>
    %36 = vector.shape_cast %35 : vector<16xf32> to vector<16x1xf32>
    %cst_16 = arith.constant 6.400000e+01 : f32
    %37 = vector.broadcast %cst_16 : f32 to vector<16x1xf32>
    %38 = arith.divf %36, %37 : vector<16x1xf32>
    %39 = vector.broadcast %38 : vector<16x1xf32> to vector<16x64xf32>
    %40 = arith.subf %33, %39 : vector<16x64xf32>
    %41 = arith.mulf %40, %40 : vector<16x64xf32>
    %cst_17 = arith.constant dense<0.000000e+00> : vector<16xf32>
    %42 = vector.multi_reduction <add>, %41, %cst_17 [1] : vector<16x64xf32> to vector<16xf32>
    %43 = vector.shape_cast %42 : vector<16xf32> to vector<16x1xf32>
    %cst_18 = arith.constant 6.400000e+01 : f32
    %44 = vector.broadcast %cst_18 : f32 to vector<16x1xf32>
    %45 = arith.divf %43, %44 : vector<16x1xf32>
    %cst_19 = arith.constant 9.99999974E-6 : f32
    %46 = vector.broadcast %cst_19 : f32 to vector<16x1xf32>
    %47 = arith.addf %45, %46 : vector<16x1xf32>
    %48 = math.rsqrt %47 : vector<16x1xf32>
    %49 = vector.broadcast %48 : vector<16x1xf32> to vector<16x64xf32>
    %50 = arith.mulf %40, %49 : vector<16x64xf32>
    %51 = vector.broadcast %34 : vector<1x64xf32> to vector<16x64xf32>
    %52 = arith.mulf %50, %51 : vector<16x64xf32>
    %53 = arith.truncf %52 : vector<16x64xf32> to vector<16x64xbf16>
    %c0_20 = arith.constant 0 : index
    %c0_21 = arith.constant 0 : index
    %54 = vector.load %arg5[%c0_20, %c0_21] : memref<64x32xbf16, #tpu.memory_space<vmem>>, vector<64x32xbf16>
    %cst_22 = arith.constant dense<0.000000e+00> : vector<16x32xf32>
    %55 = tpu.matmul %53, %54, %cst_22 {dimension_numbers = #tpu.dot_dimension_numbers<[1], [0], [0], [1], [0, 0, 1, 1], [], []>} : vector<16x64xbf16>, vector<64x32xbf16>, vector<16x32xf32> -> vector<16x32xf32>
    %56 = arith.addf %0, %55 : vector<16x32xf32>
    %c0_23 = arith.constant 0 : index
    %c0_24 = arith.constant 0 : index
    %57 = vector.load %arg6[%c0_23, %c0_24] : memref<16x32xf32, #tpu.memory_space<vmem>>, vector<16x32xf32>
    tpu.vector_store %arg6[%c0_23, %c0_24], %56 {strides = array<i32>} : memref<16x32xf32, #tpu.memory_space<vmem>>, vector<16x32xf32>,
    return
  }
  func.func @transform_0(%arg0: i32) -> (i32, i32) {
    %c0_i32 = arith.constant 0 : i32
    %c0_i32_0 = arith.constant 0 : i32
    return %arg0, %c0_i32 : i32, i32
  }
  func.func @transform_1(%arg0: i32) -> (i32, i32) {
    %c0_i32 = arith.constant 0 : i32
    %c0_i32_0 = arith.constant 0 : i32
    %c0_i32_1 = arith.constant 0 : i32
    return %c0_i32, %c0_i32_0 : i32, i32
  }
  func.func @transform_2(%arg0: i32) -> (i32, i32) {
    %c0_i32 = arith.constant 0 : i32
    %c0_i32_0 = arith.constant 0 : i32
    %c0_i32_1 = arith.constant 0 : i32
    return %c0_i32, %c0_i32_0 : i32, i32
  }
  func.func @transform_3(%arg0: i32) -> (i32, i32) {
    %c0_i32 = arith.constant 0 : i32
    %c0_i32_0 = arith.constant 0 : i32
    %c0_i32_1 = arith.constant 0 : i32
    return %c0_i32, %c0_i32_0 : i32, i32
  }
  func.func @transform_4(%arg0: i32) -> (i32, i32) {
    %c0_i32 = arith.constant 0 : i32
    %c0_i32_0 = arith.constant 0 : i32
    %c0_i32_1 = arith.constant 0 : i32
    return %c0_i32, %c0_i32_0 : i32, i32
  }
  func.func @transform_5(%arg0: i32) -> (i32, i32) {
    %c0_i32 = arith.constant 0 : i32
    %c0_i32_0 = arith.constant 0 : i32
    return %arg0, %c0_i32 : i32, i32
  }
}

module attributes {stable_mosaic.version = 11 : i64} {
  func.func @_ln_logits_kernel(%arg0: i32, %arg1: i32, %arg2: i32, %arg3: memref<1x8x32xf32, #tpu.memory_space<vmem>>, %arg4: memref<1x32xf32, #tpu.memory_space<vmem>>, %arg5: memref<1x32x16xbf16, #tpu.memory_space<vmem>>, %arg6: memref<1x1x8x16xf32, #tpu.memory_space<vmem>>) attributes {dimension_semantics = [#tpu.dimension_semantics<parallel>, #tpu.dimension_semantics<parallel>, #tpu.dimension_semantics<arbitrary>], iteration_bounds = array<i64: 2, 1, 1>, scalar_prefetch = 0 : i64, scratch_operands = 0 : i64, tpu.core_type = #tpu.core_type<tc>, window_params = [{transform_indices = @transform_0, window_bounds = array<i64: 1, 8, 32>}, {pipeline_mode = #tpu.pipeline_mode<synchronous>, transform_indices = @transform_1, window_bounds = array<i64: 1, 32>}, {transform_indices = @transform_2, window_bounds = array<i64: 1, 32, 16>}, {transform_indices = @transform_3, window_bounds = array<i64: 1, 1, 8, 16>}]} {
    %c0 = arith.constant 0 : index
    %c0_0 = arith.constant 0 : index
    %c0_1 = arith.constant 0 : index
    %0 = vector.load %arg3[%c0, %c0_0, %c0_1] : memref<1x8x32xf32, #tpu.memory_space<vmem>>, vector<1x8x32xf32>
    %1 = vector.shape_cast %0 : vector<1x8x32xf32> to vector<8x32xf32>
    %c0_2 = arith.constant 0 : index
    %c0_3 = arith.constant 0 : index
    %2 = vector.load %arg4[%c0_2, %c0_3] : memref<1x32xf32, #tpu.memory_space<vmem>>, vector<1x32xf32>
    %cst = arith.constant dense<0.000000e+00> : vector<8xf32>
    %3 = vector.multi_reduction <add>, %1, %cst [1] : vector<8x32xf32> to vector<8xf32>
    %4 = vector.shape_cast %3 : vector<8xf32> to vector<8x1xf32>
    %cst_4 = arith.constant 3.200000e+01 : f32
    %5 = vector.broadcast %cst_4 : f32 to vector<8x1xf32>
    %6 = arith.divf %4, %5 : vector<8x1xf32>
    %7 = vector.broadcast %6 : vector<8x1xf32> to vector<8x32xf32>
    %8 = arith.subf %1, %7 : vector<8x32xf32>
    %9 = arith.mulf %8, %8 : vector<8x32xf32>
    %cst_5 = arith.constant dense<0.000000e+00> : vector<8xf32>
    %10 = vector.multi_reduction <add>, %9, %cst_5 [1] : vector<8x32xf32> to vector<8xf32>
    %11 = vector.shape_cast %10 : vector<8xf32> to vector<8x1xf32>
    %cst_6 = arith.constant 3.200000e+01 : f32
    %12 = vector.broadcast %cst_6 : f32 to vector<8x1xf32>
    %13 = arith.divf %11, %12 : vector<8x1xf32>
    %cst_7 = arith.constant 9.99999974E-6 : f32
    %14 = vector.broadcast %cst_7 : f32 to vector<8x1xf32>
    %15 = arith.addf %13, %14 : vector<8x1xf32>
    %16 = math.rsqrt %15 : vector<8x1xf32>
    %17 = vector.broadcast %16 : vector<8x1xf32> to vector<8x32xf32>
    %18 = arith.mulf %8, %17 : vector<8x32xf32>
    %19 = vector.broadcast %2 : vector<1x32xf32> to vector<8x32xf32>
    %20 = arith.mulf %18, %19 : vector<8x32xf32>
    %21 = arith.truncf %20 : vector<8x32xf32> to vector<8x32xbf16>
    %c0_8 = arith.constant 0 : index
    %c0_9 = arith.constant 0 : index
    %c0_10 = arith.constant 0 : index
    %22 = vector.load %arg5[%c0_8, %c0_9, %c0_10] : memref<1x32x16xbf16, #tpu.memory_space<vmem>>, vector<1x32x16xbf16>
    %23 = vector.shape_cast %22 : vector<1x32x16xbf16> to vector<32x16xbf16>
    %cst_11 = arith.constant dense<0.000000e+00> : vector<8x16xf32>
    %24 = tpu.matmul %21, %23, %cst_11 {dimension_numbers = #tpu.dot_dimension_numbers<[1], [0], [0], [1], [0, 0, 1, 1], [], []>} : vector<8x32xbf16>, vector<32x16xbf16>, vector<8x16xf32> -> vector<8x16xf32>
    %c0_12 = arith.constant 0 : index
    %c0_13 = arith.constant 0 : index
    %c0_14 = arith.constant 0 : index
    %c0_15 = arith.constant 0 : index
    %25 = vector.load %arg6[%c0_12, %c0_13, %c0_14, %c0_15] : memref<1x1x8x16xf32, #tpu.memory_space<vmem>>, vector<1x1x8x16xf32>
    %26 = vector.shape_cast %25 : vector<1x1x8x16xf32> to vector<8x16xf32>
    %27 = vector.shape_cast %24 : vector<8x16xf32> to vector<1x1x8x16xf32>
    tpu.vector_store %arg6[%c0_12, %c0_13, %c0_14, %c0_15], %27 {strides = array<i32>} : memref<1x1x8x16xf32, #tpu.memory_space<vmem>>, vector<1x1x8x16xf32>,
    return
  }
  func.func @transform_0(%arg0: i32, %arg1: i32, %arg2: i32) -> (i32, i32, i32) {
    %c0_i32 = arith.constant 0 : i32
    %c0_i32_0 = arith.constant 0 : i32
    return %arg0, %arg1, %c0_i32 : i32, i32, i32
  }
  func.func @transform_1(%arg0: i32, %arg1: i32, %arg2: i32) -> (i32, i32) {
    %c0_i32 = arith.constant 0 : i32
    %c0_i32_0 = arith.constant 0 : i32
    %c0_i32_1 = arith.constant 0 : i32
    return %c0_i32, %c0_i32_0 : i32, i32
  }
  func.func @transform_2(%arg0: i32, %arg1: i32, %arg2: i32) -> (i32, i32, i32) {
    %c0_i32 = arith.constant 0 : i32
    %c0_i32_0 = arith.constant 0 : i32
    %c0_i32_1 = arith.constant 0 : i32
    return %arg2, %c0_i32, %c0_i32_0 : i32, i32, i32
  }
  func.func @transform_3(%arg0: i32, %arg1: i32, %arg2: i32) -> (i32, i32, i32, i32) {
    %c0_i32 = arith.constant 0 : i32
    %c0_i32_0 = arith.constant 0 : i32
    return %arg0, %arg2, %arg1, %c0_i32 : i32, i32, i32, i32
  }
}

</mosaic_0001>

<bundles_post_ra>
// kernel: transformer_forward.8
= control target key start
LH: loop header
LB: loop body
LE: loop exit
PB: predicated region body
PF: predicated region fallthrough
CT: control target
= control target key end

     0   :  { %s1117_s0 = inlined_call_operand.hbm [shape: f32[2,8,32], index: 0, kind: input, shape index: {}]   ;;  %s1118_s1 = inlined_call_operand.hbm [shape: f32[2,8,32], index: 1, kind: input, shape index: {}]   ;;  %s1119_s2 = inlined_call_operand.hbm [shape: f32[2,8,32], index: 2, kind: input, shape index: {}]   ;;  %s1120_s3 = inlined_call_operand.hbm [shape: f32[8,32], index: 3, kind: input, shape index: {}]   ;;  %s1121_s4 = inlined_call_operand.hbm [shape: f32[2,8,32], index: 4, kind: output, shape index: {}]  }
   0x1   :  { %1138 = sst [smem:[#allocation20_spill]] %s1118_s1 }
   0x2   :  { %9 = vsyncpa [#allocation3], 0 }
   0x3   :  { %11 = vsyncpa [#allocation3 + $0x1], 0 }
   0x4   :  { %12 = vsyncpa [#allocation6], 0 }
   0x5   :  { %14 = vsyncpa [#allocation6 + $0x1], 0 }
   0x6   :  { %15 = vsyncpa [#allocation9], 0 }
   0x7   :  { %16 = vsyncpa [#allocation4], 0 }
   0x8   :  { %18 = vsyncpa [#allocation4 + $0x1], 0  ;;  %s832_s15 = smov 0   ;;  %s834_s16 = smov 0  }
   0x9   :  { %s836_s17 = smov 0   ;;  %s838_s18 = smov 0  }
   0xa   :  { %s840_s19 = smov 0   ;;  %s842_s20 = smov 0  }
   0xb LB: > { %1139 = sst [smem:[#allocation15_spill]] %s788_s17  ;;  %s36_s21 = sadd.s32 1, %s796_s19  ;;  %s800_s20 = sphi %s842_s20, %s24_s20   ;;  %s796_s19 = sphi %s840_s19, %s1169_s19   ;;  %s792_s18 = sphi %s838_s18, %s1168_s18   ;;  %s788_s17 = sphi %s836_s17, %s1167_s17   ;;  %s784_s16 = sphi %s834_s16, %s1171_s16   ;;  %s780_s15 = sphi %s832_s15, %s1170_s15  }
   0xc   : > { %1140 = sst [smem:[#allocation16_spill]] %s796_s19  ;;  %s45_s22 = sadd.s32 1, %s788_s17 }
   0xd   : > { %1141 = sst [smem:[#allocation17_spill]] %s800_s20  ;;  %p38_p0 = scmp.ge.s32.totalorder %s36_s21, 2 }
   0xe   : > { %p1122_p1 = scmp.ne.s32.totalorder %s788_s17, %s784_s16  ;;  %p53_p2 = scmp.eq.s32.totalorder %s800_s20, 0 }
   0xf   : > { %s1173_s21 = smov (%p38_p0, %s36_s21), 0  ;;  %p540_p5 = scmp.lt.s32.totalorder %s800_s20, 2 }
  0x10   : > { %1142 = sst [smem:[#allocation18_spill]] %s1173_s21  ;;  %p54_p4 = por %p53_p2, %p1122_p1 }
  0x11   : > { %s40_s23 = ssub.s32 %s796_s19, %s1173_s21  ;;  %s1123_s24 = sand.u32 1, %s788_s17  }
  0x12   : > { %p43_p6 = scmp.eq.s32.totalorder %s40_s23, 0  ;;  %s879_s25 = sshll.u32 %s1123_s24, 3 }
  0x13   : > { %s882_s26 = sshll.u32 %s796_s19, 7  ;;  %p884_p7 = pnand %p540_p5, %p54_p4 }
  0x14   : > { %s889_s28 = scalar_select %p43_p6, %s788_s17, %s45_s22  }
  0x15   : > { %s1143_s27 = scalar_select %p884_p7, 1, 0 }
  0x16   : > { %1144 = sst [smem:[#allocation19_spill]] %s889_s28  ;;  %s224_s29 = sand.u32 1, %s800_s20  }
  0x17   : > { %s1145_s1 = sld [smem:[#allocation20_spill]]  ;;  %s228_s7 = scalar_lea.vmem [#allocation5], %s879_s25 }
  0x18   : > { %s236_s8 = sshll.u32 %s228_s7, 4  ;;  %s901_s9 = scalar_lea.sflag [#allocation6], %s224_s29  ;;  %s899_s8 = int_to_ptr.vmem [resolvable:$true] %s236_s8 }
  0x19   : > { %p907_p9 = pneg %p884_p7 }
  0x1b   : > { %s1146_s11 = scalar_select %p907_p9, 1, 0 }
  0x1d   : > { %s896_s6 = scalar_lea.hbm %s1145_s1, %s882_s26  ;;  %s597_s14 = scalar_lea.hbm %s1145_s1, 256 }
  0x1e   : > { %s592_s10 = scalar_lea.hbm %s896_s6, 128  ;;  %p598_p12 = scmp.lt.u32.totalorder %s896_s6, %s1145_s1 }
  0x1f   : > { %p593_p8 = scmp.ne.s32.totalorder %s896_s6, %s592_s10  ;;  %p599_p13 = scmp.lt.u32.totalorder %s597_s14, %s592_s10 }
  0x20   : > { %p601_p2 = scmp.lt.u32.totalorder %s592_s10, %s896_s6 }
  0x21   : > { %p595_p10 = pnand %p907_p9, %p593_p8  ;;  %p600_p0 = por %p599_p13, %p598_p12 }
  0x23   : > { %p596_p11 = pneg %p595_p10  ;;  %p602_p4 = por %p601_p2, %p600_p0 }
  0x25   : > { %p603_p5 = pnand %p602_p4, %p596_p11 }
  0x27   : > { %606 = shalt.err (!%p603_p5)
}
  0x28   : > { %s607_s29 = scalar_lea.vmem %s899_s8, 128  ;;  %s802_s30 = smov [#allocation5]  }
  0x29   : > { %p608_p6 = scmp.ne.s32.totalorder %s899_s8, %s607_s29  ;;  %s612_s5 = sshll.u32 %s802_s30, 4  ;;  %s613_s5 = int_to_ptr.vmem [resolvable:$false] %s612_s5 }
  0x2a   : > { %s614_s7 = scalar_lea.vmem %s613_s5, 256  ;;  %p615_p3 = scmp.lt.s32.totalorder %s899_s8, %s613_s5 }
  0x2b   : > { %p610_p8 = pnand %p608_p6, %p907_p9  ;;  %p616_p1 = scmp.lt.s32.totalorder %s614_s7, %s607_s29 }
  0x2d   : > { %p611_p10 = pneg %p610_p8  ;;  %p617_p12 = por %p616_p1, %p615_p3 }
  0x2f   : > { %p618_p13 = pnand %p617_p12, %p611_p10 }
  0x31   : > { %621 = shalt.err (!%p618_p13)
}
  0x32   : > { %531 = dma.hbm_to_vmem [thread:$0]  (!%p884_p7), %s896_s6, 128, %s899_s8, %s901_s9  }
  0x33   : > { %s932_s10 = sadd.s32 4294967295, %s800_s20   ;;  %s489_s12 = sadd.s32 4294967294, %s800_s20  }
  0x34   : > { %p58_p1 = scmp.ne.s32.totalorder %s784_s16, %s780_s15  ;;  %p1128_p3 = scmp.eq.s32.totalorder %s932_s10, 0 }
  0x35   : > { %p166_p11 = scmp.eq.s32.totalorder %s932_s10, 1  ;;  %p172_p0 = scmp.eq.s32.totalorder %s489_s12, 1 }
  0x36   : > { %p490_p2 = scmp.ge.s32.totalorder %s800_s20, 1  ;;  %p942_p4 = por %p1128_p3, %p58_p1 }
  0x37   : > { %p1148_p5 = scmp.ne.s32.totalorder %s788_s17, %s784_s16  ;;  %p953_p8 = por %p172_p0, %p58_p1 }
  0x38   : > { %s1147_s13 = scalar_select %p942_p4, 1, 0 }
  0x39   : > { %p949_p6 = por %p166_p11, %p1148_p5  ;;  %p179_p10 = scmp.lt.s32.totalorder %s800_s20, 3 }
  0x3a   : > { %s1150_s8 = scalar_select %p953_p8, 1, 0 }
  0x3b   : > { %s1149_s6 = scalar_select %p949_p6, 1, 0 }
  0x3c   : > { %p958_p12 = pnand %p490_p2, %p179_p10  ;;  %s803_s22 = smov [#allocation8]  }
  0x3d   : > { %s194_s23 = sshll.u32 %s803_s22, 4  ;;  %s970_s5 = scalar_lea.hbm %s1117_s0, %s882_s26  ;;  %s962_s23 = int_to_ptr.vmem [resolvable:$true] %s194_s23 }
  0x3e   : > { %s1151_s14 = scalar_select %p958_p12, 1, 0 }
  0x3f   : > { %p521_p13 = pneg %p958_p12  ;;  %s209_s7 = scalar_lea.vmem [#allocation2], %s879_s25 }
  0x40   : > { %s217_s12 = sshll.u32 %s209_s7, 4  ;;  %s1153_s22 = sand.u32 1, %s788_s17   ;;  %s218_s12 = int_to_ptr.vmem [resolvable:$true] %s217_s12 }
  0x41   : > { %p975_p1 = pnand %p521_p13, %p1128_p3  ;;  %s206_s1 = scalar_lea.sflag [#allocation3], %s1153_s22 }
  0x42   : > { %s622_s21 = scalar_lea.hbm %s970_s5, 128  ;;  %s627_s19 = scalar_lea.hbm %s1117_s0, 256 }
  0x43   : > { %s1152_s24 = scalar_select %p975_p1, 1, 0 }
  0x44   : > { %p623_p11 = scmp.ne.s32.totalorder %s970_s5, %s622_s21  ;;  %p628_p5 = scmp.lt.u32.totalorder %s970_s5, %s1117_s0 }
  0x45   : > { %p629_p10 = scmp.lt.u32.totalorder %s627_s19, %s622_s21  ;;  %p631_p3 = scmp.lt.u32.totalorder %s622_s21, %s970_s5 }
  0x46   : > { %p625_p0 = pnand %p623_p11, %p907_p9 }
  0x47   : > { %p630_p13 = por %p629_p10, %p628_p5 }
  0x48   : > { %p626_p2 = pneg %p625_p0 }
  0x49   : > { %p632_p8 = por %p631_p3, %p630_p13 }
  0x4b   : > { %p633_p6 = pnand %p632_p8, %p626_p2 }
  0x4d   : > { %636 = shalt.err (!%p633_p6)
}
  0x4e   : > { %s637_s7 = scalar_lea.vmem %s218_s12, 128  ;;  %s804_s22 = smov [#allocation2]  }
  0x4f   : > { %p638_p4 = scmp.ne.s32.totalorder %s218_s12, %s637_s7  ;;  %s642_s17 = sshll.u32 %s804_s22, 4  ;;  %s643_s17 = int_to_ptr.vmem [resolvable:$false] %s642_s17 }
  0x50   : > { %s644_s29 = scalar_lea.vmem %s643_s17, 256  ;;  %p645_p12 = scmp.lt.s32.totalorder %s218_s12, %s643_s17 }
  0x51   : > { %p640_p11 = pnand %p638_p4, %p907_p9  ;;  %p646_p1 = scmp.lt.s32.totalorder %s644_s29, %s637_s7 }
  0x53   : > { %p641_p0 = pneg %p640_p11  ;;  %p647_p7 = por %p646_p1, %p645_p12 }
  0x55   : > { %p648_p5 = pnand %p647_p7, %p641_p0 }
  0x57   : > { %651 = shalt.err (!%p648_p5)
}
  0x58   : > { %p1154_p10 = scmp.ne.s32.totalorder %s1143_s27, 0  ;;  %s652_s21 = scalar_lea.hbm %s1120_s3, 128 }
  0x59   : > { %p653_p3 = scmp.ne.s32.totalorder %s1120_s3, %s652_s21  ;;  %p1155_p4 = scmp.ne.s32.totalorder %s1152_s24, 0 }
  0x5a   : > { %528 = dma.hbm_to_vmem [thread:$0]  (!%p1154_p10), %s970_s5, 128, %s218_s12, %s206_s1  }
  0x5b   : > { %p654_p6 = pneg %p1155_p4  ;;  %p659_p7 = scmp.lt.u32.totalorder %s652_s21, %s1120_s3 }
  0x5d   : > { %p655_p8 = pnand %p654_p6, %p653_p3 }
  0x5f   : > { %p656_p2 = pneg %p655_p8 }
  0x61   : > { %p661_p12 = pnand %p659_p7, %p656_p2 }
  0x63   : > { %664 = shalt.err (!%p661_p12)
}
  0x64   : > { %s665_s1 = scalar_lea.vmem %s962_s23, 128  ;;  %p673_p0 = scmp.lt.s32.totalorder %s962_s23, %s962_s23 }
  0x65   : > { %p666_p1 = scmp.ne.s32.totalorder %s962_s23, %s665_s1  ;;  %p674_p5 = scmp.lt.s32.totalorder %s665_s1, %s665_s1 }
  0x67   : > { %p668_p13 = pnand %p666_p1, %p654_p6  ;;  %p675_p10 = por %p674_p5, %p673_p0 }
  0x69   : > { %p669_p11 = pneg %p668_p13 }
  0x6b   : > { %p676_p9 = pnand %p675_p10, %p669_p11 }
  0x6d   : > { %679 = shalt.err (!%p676_p9)
}
  0x6e   : > { %524 = dma.hbm_to_vmem [thread:$0]  (!%p1155_p4), %s1120_s3, 128, %s962_s23, [#allocation9]  }
  0x6f   : > { %s1023_s19 = scalar_lea.hbm %s1119_s2, %s882_s26  ;;  %s247_s20 = scalar_lea.vmem [#allocation7], %s879_s25 }
  0x70   : > { %s255_s21 = sshll.u32 %s247_s20, 4  ;;  %s680_s24 = scalar_lea.hbm %s1023_s19, 128  ;;  %s256_s21 = int_to_ptr.vmem [resolvable:$true] %s255_s21 }
  0x71   : > { %p681_p9 = scmp.ne.s32.totalorder %s1023_s19, %s680_s24  ;;  %p1156_p10 = scmp.ne.s32.totalorder %s1146_s11, 0 }
  0x72   : > { %s685_s23 = scalar_lea.hbm %s1119_s2, 256  ;;  %p686_p4 = scmp.lt.u32.totalorder %s1023_s19, %s1119_s2 }
  0x73   : > { %p683_p3 = pnand %p681_p9, %p1156_p10  ;;  %p687_p8 = scmp.lt.u32.totalorder %s685_s23, %s680_s24 }
  0x74   : > { %p689_p7 = scmp.lt.u32.totalorder %s680_s24, %s1023_s19 }
  0x75   : > { %p684_p6 = pneg %p683_p3  ;;  %p688_p2 = por %p687_p8, %p686_p4 }
  0x77   : > { %p690_p12 = por %p689_p7, %p688_p2 }
  0x79   : > { %p691_p1 = pnand %p690_p12, %p684_p6 }
  0x7b   : > { %694 = shalt.err (!%p691_p1)
}
  0x7c   : > { %s695_s25 = scalar_lea.vmem %s256_s21, 128  ;;  %s805_s26 = smov [#allocation7]  }
  0x7d   : > { %p696_p13 = scmp.ne.s32.totalorder %s256_s21, %s695_s25  ;;  %s700_s1 = sshll.u32 %s805_s26, 4  ;;  %s701_s1 = int_to_ptr.vmem [resolvable:$false] %s700_s1 }
  0x7e   : > { %s702_s5 = scalar_lea.vmem %s701_s1, 256  ;;  %p703_p5 = scmp.lt.s32.totalorder %s256_s21, %s701_s1 }
  0x7f   : > { %p698_p11 = pnand %p696_p13, %p1156_p10  ;;  %p704_p9 = scmp.lt.s32.totalorder %s702_s5, %s695_s25 }
  0x81   : > { %p699_p0 = pneg %p698_p11  ;;  %p705_p3 = por %p704_p9, %p703_p5 }
  0x83   : > { %p706_p4 = pnand %p705_p3, %p699_p0 }
  0x85   : > { %709 = shalt.err (!%p706_p4)
}
  0x86   : > { %p1157_p8 = scmp.ne.s32.totalorder %s1143_s27, 0  ;;  %p1158_p6 = scmp.ne.s32.totalorder %s1151_s14, 0 }
  0x87   : > { %s1047_s11 = sand.u32 (!%p1158_p6), 1, %s784_s16   ;;  %p1159_p10 = scmp.ne.s32.totalorder (!%p1158_p6), %s1147_s13, 0 }
  0x88   : > { %534 = dma.hbm_to_vmem [thread:$0]  (!%p1157_p8), %s1023_s19, 128, %s256_s21, %s901_s9  }
  0x89   : > { %264 = sbr.rel (%p1158_p6) target bundleno = 177 (0xb1), region = 36  ;;  %s500_s12 = sshll.u32 (!%p1158_p6), %s1047_s11, 3 }
  0x8a   : > { %s267_s22 = scalar_lea.sflag (!%p1158_p6), [#allocation3], %s1047_s11  ;;  %s270_s29 = scalar_lea.vmem (!%p1158_p6), [#allocation2], %s500_s12 }
  0x90   : > { %763 = dma.done.wait (%p1159_p10), %s267_s22, 128  }
  0x91   : > { %765 = vsyncadd (%p1159_p10), %s267_s22, 4294967168  ;;  %s275_s27 = sand.u32 1, %s932_s10   ;;  %s279_s14 = scalar_lea.vmem [#allocation5], %s500_s12 }
  0x92   : > { %s276_s9 = scalar_lea.sflag [#allocation6], %s275_s27 }
  0x93   : > { %767 = dma.done.wait (%p1159_p10), %s276_s9, 256  }
  0x94   : > { %769 = vsyncadd (%p1159_p10), %s276_s9, 4294967040  ;;  %s288_s19 = scalar_lea.vmem [#allocation7], %s500_s12  ;;  %p1160_p2 = scmp.eq.s32.totalorder %s932_s10, 0 }
  0x96   : > { %771 = dma.done.wait (%p1160_p2), [#allocation9], 128   ;;  %p1161_p7 = pmov %p1160_p2 }
  0x97   : > { %v327_v0 = vld [vmem:[%s270_s29] sm:$0xff]  ;;  %v328_v1 = vld [vmem:[%s279_s14] sm:$0xff]  ;;  %s326_s20 = scalar_lea.vmem [#allocation10], %s500_s12  ;;  %s506_s24 = sshll.u32 %s792_s18, 7  ;;  %vm334_vm0 = vcmask 261120  }
  0x98   : > { %773 = vsyncadd (%p1161_p7), [#allocation9], 4294967168  ;;  %v330_v2 = vld [vmem:[%s288_s19] sm:$0xff]  ;;  %v329_v3 = vadd.f32 %v328_v1, %v327_v0  ;;  %v332_v4 = vld [vmem:[#allocation8] sm:$0xff]  ;;  %s351_s21 = sshll.u32 %s326_s20, 4  ;;  %s1070_s10 = scalar_lea.hbm %s1121_s4, %s506_s24  ;;  %s1065_s21 = int_to_ptr.vmem [resolvable:$true] %s351_s21 }
  0x99   : > { %s337_s30 = scalar_lea.sflag [#allocation4], %s1047_s11  ;;  %s710_s23 = scalar_lea.vmem %s1065_s21, 128 }
  0x9a   : > { %v331_v5 = vadd.f32 %v330_v2, %v329_v3  ;;  %p711_p12 = scmp.ne.s32.totalorder %s1065_s21, %s710_s23  ;;  %p1162_p1 = scmp.ne.s32.totalorder %s1149_s6, 0 }
  0x9b   : > { %s806_s18 = smov [#allocation10]  }
  0x9c   : > { %v333_v6 = vadd.f32 %v332_v4, %v331_v5  ;;  %p712_p13 = pnand %p711_p12, %p1162_p1  ;;  %s714_s17 = sshll.u32 %s806_s18, 4  ;;  %s715_s17 = int_to_ptr.vmem [resolvable:$false] %s714_s17 }
  0x9d   : > { %s716_s7 = scalar_lea.vmem %s715_s17, 256  ;;  %p717_p0 = scmp.lt.s32.totalorder %s1065_s21, %s715_s17 }
  0x9e   : > { %335 = vst.msk [vmem:[%s326_s20] sm:$0xff] %vm334_vm0, %v333_v6  ;;  %p713_p11 = pneg %p712_p13  ;;  %p718_p5 = scmp.lt.s32.totalorder %s716_s7, %s710_s23 }
  0xa0   : > { %p719_p9 = por %p718_p5, %p717_p0 }
  0xa2   : > { %p720_p3 = pnand %p719_p9, %p713_p11 }
  0xa4   : > { %723 = shalt.err (!%p720_p3)
}
  0xa5   : > { %s724_s25 = scalar_lea.hbm %s1070_s10, 128  ;;  %s728_s5 = scalar_lea.hbm %s1121_s4, 256 }
  0xa6   : > { %p725_p4 = scmp.ne.s32.totalorder %s1070_s10, %s724_s25  ;;  %p729_p10 = scmp.lt.u32.totalorder %s1070_s10, %s1121_s4 }
  0xa7   : > { %p730_p2 = scmp.lt.u32.totalorder %s728_s5, %s724_s25  ;;  %p732_p12 = scmp.lt.u32.totalorder %s724_s25, %s1070_s10 }
  0xa8   : > { %p726_p8 = pnand %p725_p4, %p1162_p1 }
  0xa9   : > { %p731_p7 = por %p730_p2, %p729_p10 }
  0xaa   : > { %p727_p6 = pneg %p726_p8 }
  0xab   : > { %p733_p13 = por %p732_p12, %p731_p7 }
  0xad   : > { %p734_p11 = pnand %p733_p13, %p727_p6 }
  0xaf   : > { %737 = shalt.err (!%p734_p11)
}
  0xb0   : > { %519 = dma.vmem_to_hbm [thread:$0]  (%p1162_p1), %s1065_s21, 128, %s1070_s10, %s337_s30  }
  0xb1 PF: > { %s1163_s22 = sld [smem:[#allocation17_spill]]  ;;  %s363_s29 = sand.u32 1, %s780_s15  }
  0xb2   : > { %p1164_p0 = scmp.ne.s32.totalorder %s1150_s8, 0  ;;  %s364_s27 = scalar_lea.sflag [#allocation4], %s363_s29 }
  0xb7   : > { %p1165_p5 = scmp.ge.s32.totalorder %s1163_s22, 2 }
  0xb9   : > { %p536_p9 = pnand %p1165_p5, %p1164_p0 }
  0xbb   : > { %775 = dma.done.wait (!%p536_p9), %s364_s27, 128  }
  0xbc   : > { %777 = vsyncadd (!%p536_p9), %s364_s27, 4294967168  ;;  %s24_s20 = sadd.s32 1, %s1163_s22   ;;  %s1166_s9 = sld [smem:[#allocation15_spill]] }
  0xbd   : > { %p21_p3 = scmp.ge.s32.totalorder %s24_s20, 4   ;;  %s1167_s17 = sld [smem:[#allocation19_spill]] }
  0xbe   : > { %s1168_s18 = sld [smem:[#allocation16_spill]]  ;;  %s1169_s19 = sld [smem:[#allocation18_spill]] }
  0xbf   : > { %s1170_s15 = smov %s784_s16  ;;  %23 = sbr.rel (!%p21_p3) target bundleno = 11 (0xb), region = 110 }
  0xc2   : > { %s1171_s16 = smov %s1166_s9 }
  0xc6   :  { %369 = vsyncpa [#allocation3], 1 }
  0xc7   :  { %371 = vsyncpa [#allocation3 + $0x1], 1 }
  0xc8   :  { %372 = vsyncpa [#allocation6], 1 }
  0xc9   :  { %374 = vsyncpa [#allocation6 + $0x1], 1 }
  0xca   :  { %375 = vsyncpa [#allocation9], 1 }
  0xcb   :  { %376 = vsyncpa [#allocation4], 1 }
  0xcc   :  { %378 = vsyncpa [#allocation4 + $0x1], 1 }

// kernel: transformer_forward.9
= control target key start
LH: loop header
LB: loop body
LE: loop exit
PB: predicated region body
PF: predicated region fallthrough
CT: control target
= control target key end

     0   :  { %11 = vsyncpa [#allocation3], 0  ;;  %s560_s0 = inlined_call_operand.hbm [shape: f32[16,32], index: 0, kind: input, shape index: {}]   ;;  %s561_s1 = inlined_call_operand.hbm [shape: f32[1,32], index: 1, kind: input, shape index: {}]   ;;  %s562_s2 = inlined_call_operand.hbm [shape: bf16[32,96], index: 2, kind: input, shape index: {}]   ;;  %s563_s3 = inlined_call_operand.hbm [shape: bf16[16,32], index: 3, kind: output, shape index: {0}]   ;;  %s564_s4 = inlined_call_operand.hbm [shape: bf16[16,32], index: 4, kind: output, shape index: {1}]   ;;  %s565_s5 = inlined_call_operand.hbm [shape: bf16[16,32], index: 5, kind: output, shape index: {2}]  }
   0x1   :  { %12 = vsyncpa [#allocation6], 0 }
   0x2   :  { %13 = vsyncpa [#allocation4], 0 }
   0x3   :  { %14 = vsyncpa [#allocation10], 0  ;;  %s413_s18 = smov [#allocation5]   ;;  %s414_s20 = smov [#allocation2]  }
   0x4   :  { %s33_s19 = sshll.u32 %s413_s18, 4  ;;  %s20_s21 = sshll.u32 %s414_s20, 4  ;;  %s34_s19 = int_to_ptr.vmem [resolvable:$true] %s33_s19  ;;  %s456_s21 = int_to_ptr.vmem [resolvable:$true] %s20_s21 }
   0x5   :  { %s273_s24 = scalar_lea.hbm %s561_s1, 16 }
   0x6   :  { %p274_p0 = scmp.ne.s32.totalorder %s561_s1, %s273_s24  ;;  %p277_p1 = scmp.lt.u32.totalorder %s273_s24, %s561_s1 }
   0x8   :  { %p279_p2 = pnand %p277_p1, %p274_p0 }
   0xa   :  { %282 = shalt.err (!%p279_p2)
}
   0xb   :  { %s283_s29 = scalar_lea.vmem %s34_s19, 16  ;;  %s287_s30 = scalar_lea.vmem %s34_s19, 32 }
   0xc   :  { %p284_p3 = scmp.ne.s32.totalorder %s34_s19, %s283_s29  ;;  %p288_p4 = scmp.lt.s32.totalorder %s34_s19, %s34_s19 }
   0xd   :  { %p289_p5 = scmp.lt.s32.totalorder %s287_s30, %s283_s29 }
   0xf   :  { %p290_p6 = por %p289_p5, %p288_p4 }
  0x11   :  { %p291_p7 = pnand %p290_p6, %p284_p3 }
  0x13   :  { %294 = shalt.err (!%p291_p7)
}
  0x14   :  { %36 = dma.hbm_to_vmem [thread:$0]  %s561_s1, 16, %s34_s19, [#allocation6]  }
  0x15   :  { %s295_s10 = scalar_lea.hbm %s560_s0, 256 }
  0x16   :  { %p296_p8 = scmp.ne.s32.totalorder %s560_s0, %s295_s10  ;;  %p299_p9 = scmp.lt.u32.totalorder %s295_s10, %s560_s0 }
  0x18   :  { %p301_p10 = pnand %p299_p9, %p296_p8 }
  0x1a   :  { %304 = shalt.err (!%p301_p10)
}
  0x1b   :  { %s305_s15 = scalar_lea.vmem %s456_s21, 256  ;;  %p310_p12 = scmp.lt.s32.totalorder %s456_s21, %s456_s21 }
  0x1c   :  { %p306_p11 = scmp.ne.s32.totalorder %s456_s21, %s305_s15  ;;  %p311_p13 = scmp.lt.s32.totalorder %s305_s15, %s305_s15 }
  0x1e   :  { %p312_p0 = por %p311_p13, %p310_p12 }
  0x20   :  { %p313_p1 = pnand %p312_p0, %p306_p11 }
  0x22   :  { %316 = shalt.err (!%p313_p1)
}
  0x23   :  { %s415_s1 = smov 128   ;;  %s416_s16 = smov 8  }
  0x24   :  { %26 = dma.hbm_to_vmem [thread:$0]  %s560_s0, 256, %s456_s21, [#allocation3], %s415_s1, %s415_s1, %s416_s16  }
  0x25   :  { %s417_s19 = smov [#allocation7]   ;;  %s317_s24 = scalar_lea.hbm %s562_s2, 256 }
  0x26   :  { %s42_s20 = sshll.u32 %s417_s19, 4  ;;  %p318_p2 = scmp.ne.s32.totalorder %s562_s2, %s317_s24  ;;  %s43_s20 = int_to_ptr.vmem [resolvable:$true] %s42_s20 }
  0x27   :  { %p321_p3 = scmp.lt.u32.totalorder %s317_s24, %s562_s2 }
  0x29   :  { %p323_p4 = pnand %p321_p3, %p318_p2 }
  0x2b   :  { %326 = shalt.err (!%p323_p4)
}
  0x2c   :  { %s327_s29 = scalar_lea.vmem %s43_s20, 256  ;;  %p332_p6 = scmp.lt.s32.totalorder %s43_s20, %s43_s20 }
  0x2d   :  { %p328_p5 = scmp.ne.s32.totalorder %s43_s20, %s327_s29  ;;  %p333_p7 = scmp.lt.s32.totalorder %s327_s29, %s327_s29 }
  0x2f   :  { %p334_p8 = por %p333_p7, %p332_p6 }
  0x31   :  { %p335_p9 = pnand %p334_p8, %p328_p5 }
  0x33   :  { %338 = shalt.err (!%p335_p9)
}
  0x34   :  { %s418_s0 = smov 64   ;;  %s419_s21 = smov 4  }
  0x35   :  { %48 = dma.hbm_to_vmem [thread:$0]  %s562_s2, 256, %s43_s20, [#allocation6], %s418_s0, %s418_s0, %s419_s21  }
  0x36   :  { %405 = dma.done.wait [#allocation3], 256  }
  0x37   :  { %406 = vsyncadd [#allocation3], 4294967040 }
  0x38   :  { %407 = dma.done.wait [#allocation6], 272  }
  0x39   :  { %408 = vsyncadd [#allocation6], 4294967024  ;;  %vm62_vm0 = vcmask 261120   ;;  %v59_v0 = vld [vmem:[#allocation2] sm:$0xff]  ;;  %v60_v1 = vld [vmem:[#allocation2 + $0x8] sm:$0xff]  ;;  %v420_v15 = vmov 0.0  }
  0x3a   :  { %v63_v2 = vsel %vm62_vm0, %v59_v0, 0.0  ;;  %v66_v3 = vsel %vm62_vm0, %v60_v1, 0.0  ;;  %v267_v14 = vld [vmem:[#allocation7] sm:$0xff]   ;;  %246 = vmatprep.subr.bf16.mxu0 %v420_v15  ;;  %vm421_vm1 = vmmov 0   ;;  %v268_v16 = vld [vmem:[#allocation7 + $0x8] sm:$0xff]   ;;  %vm167_vm2 = vcmask 257024  }
  0x3b   :  { %64 = vadd.xlane.f32.xlu0 %v63_v2  ;;  %250 = vmatprep.mubr.msk.bf16.mxu0 %vm421_vm1, %v420_v15  ;;  %v235_v26 = vld [vmem:[#allocation5] ss:$0 sm:$0xff]  ;;  %s422_s2 = smov [#allocation8]   ;;  %s423_s8 = smov 96  }
  0x3c   :  { %247 = vmatpush3.bf16.msra.mxu0 %v267_v14  ;;  %s191_s7 = sshll.u32 %s422_s2, 4  ;;  %s192_s7 = int_to_ptr.vmem [resolvable:$true] %s191_s7 }
  0x3d   :  { %248 = vmatprep.subr.bf16.mxu0 %v420_v15  ;;  %s339_s9 = scalar_lea.vmem %s192_s7, 128  ;;  %p344_p11 = scmp.lt.s32.totalorder %s192_s7, %s192_s7 }
  0x3e   :  { %p340_p10 = scmp.ne.s32.totalorder %s192_s7, %s339_s9  ;;  %p345_p12 = scmp.lt.s32.totalorder %s339_s9, %s339_s9 }
  0x3f   :  { %67 = vadd.xlane.f32.xlu0 %v66_v3 }
  0x40   :  { %249 = vmatpush3.bf16.msra.mxu0 %v268_v16  ;;  %p346_p13 = por %p345_p12, %p344_p11 }
  0x42   :  { %p347_p0 = pnand %p346_p13, %p340_p10 }
  0xc8   :  { %v65_v4 = vpop.xlane.xlu0 %64 }
  0xc9   :  { %v70_v5 = vmul.f32 0.03125, %v65_v4 }
  0xcb   :  { %v72_v6 = vsub.f32 %v59_v0, %v70_v5 }
  0xcc   :  { %v68_v7 = vpop.xlane.xlu0 %67 }
  0xcd   :  { %v71_v8 = vmul.f32 0.03125, %v68_v7  ;;  %v74_v9 = vmul.f32 %v72_v6, %v72_v6 }
  0xcf   :  { %v73_v10 = vsub.f32 %v60_v1, %v71_v8  ;;  %v76_v11 = vsel %vm62_vm0, %v74_v9, 0.0 }
  0xd0   :  { %77 = vadd.xlane.f32.xlu1 %v76_v11 }
  0xd1   :  { %v75_v12 = vmul.f32 %v73_v10, %v73_v10 }
  0xd3   :  { %v79_v13 = vsel %vm62_vm0, %v75_v12, 0.0 }
  0xd4   :  { %80 = vadd.xlane.f32.xlu1 %v79_v13 }
 0x15d   :  { %v78_v17 = vpop.xlane.xlu1 %77 }
 0x15e   :  { %v82_v18 = vmul.f32 0.03125, %v78_v17 }
 0x160   :  { %v84_v19 = vadd.f32 1e-05, %v82_v18 }
 0x161   :  { %v81_v20 = vpop.xlane.xlu1 %80 }
 0x162   :  { %269 = vrsqrt.f32 %v84_v19  ;;  %v83_v21 = vmul.f32 0.03125, %v81_v20 }
 0x164   :  { %v85_v22 = vadd.f32 1e-05, %v83_v21 }
 0x166   :  { %271 = vrsqrt.f32 %v85_v22 }
 0x16c   :  { %v270_v23 = vpop.eup %269 }
 0x16d   :  { %v88_v24 = vmul.f32 %v270_v23, %v72_v6 }
 0x16f   :  { %v96_v28 = vmul.f32 %v235_v26, %v88_v24 }
 0x170   :  { %v272_v25 = vpop.eup %271 }
 0x171   :  { %v89_v27 = vmul.f32 %v272_v25, %v73_v10 }
 0x173   :  { %v97_v29 = vmul.f32 %v235_v26, %v89_v27 }
 0x175   :  { %v98_v30 = vpack.c.bf16 %v97_v29, %v96_v28 }
 0x177   :  { %251 = vmatmul.mubr.msk.bf16.vlgmr.msra.gmra.mrb[0].mxu0 %vm62_vm0, %v98_v30 }
 0x24a   :  { %v152_v31 = vpop.f32.mrb[0].mxu0 }
 0x24b   :  { %v241_v32 = vpack.c.bf16 %v152_v31, %v152_v31  ;;  %v252_v33 = vpop.f32.mrb[1].mxu0 }
 0x24c   :  { %v155_v34 = vpop.f32.mrb[2].mxu0 }
 0x24d   :  { %v242_v35 = vpack.c.bf16 %v155_v34, %v155_v34  ;;  %178 = vrot.lane.b32.xlu1 %v241_v32, %s418_s0  ;;  %170 = vrot.lane.b32.xlu0 %v241_v32, %s423_s8  ;;  %v253_v36 = vpop.f32.mrb[3].mxu0  ;;  %168 = vst.msk [vmem:[#allocation8] sm:$0xf] %vm167_vm2, %v241_v32 }
 0x24f   :  { %169 = vst.msk [vmem:[#allocation8 + $0x4] sm:$0xf] %vm167_vm2, %v242_v35 }
 0x250   :  { %350 = shalt.err (!%p347_p0)
}
 0x251   :  { %s351_s12 = scalar_lea.hbm %s563_s3, 128 }
 0x252   :  { %p352_p1 = scmp.ne.s32.totalorder %s563_s3, %s351_s12  ;;  %p355_p2 = scmp.lt.u32.totalorder %s351_s12, %s563_s3 }
 0x254   :  { %p357_p3 = pnand %p355_p2, %p352_p1 }
 0x256   :  { %360 = shalt.err (!%p357_p3)
}
 0x257   :  { %197 = dma.vmem_to_hbm [thread:$0]  %s192_s7, 128, %s563_s3, [#allocation4], %s418_s0, %s418_s0, %s419_s21  }
 0x258   :  { %172 = vrot.lane.b32.xlu1 %v242_v35, %s423_s8  ;;  %s424_s18 = smov [#allocation9]   ;;  %s425_s20 = smov [#allocation11]  }
 0x259   :  { %s203_s19 = sshll.u32 %s424_s18, 4  ;;  %s215_s22 = sshll.u32 %s425_s20, 4  ;;  %s204_s19 = int_to_ptr.vmem [resolvable:$true] %s203_s19  ;;  %s216_s22 = int_to_ptr.vmem [resolvable:$true] %s215_s22 }
 0x25a   :  { %s361_s23 = scalar_lea.vmem %s204_s19, 128  ;;  %p366_p5 = scmp.lt.s32.totalorder %s204_s19, %s204_s19 }
 0x25b   :  { %p362_p4 = scmp.ne.s32.totalorder %s204_s19, %s361_s23  ;;  %p367_p6 = scmp.lt.s32.totalorder %s361_s23, %s361_s23 }
 0x25c   :  { %180 = vrot.lane.b32.xlu1 %v242_v35, %s418_s0 }
 0x25d   :  { %p368_p7 = por %p367_p6, %p366_p5 }
 0x25f   :  { %p369_p8 = pnand %p368_p7, %p362_p4 }
 0x2bf   :  { %v179_v37 = vpop.permute.xlu1 %178  ;;  %v171_v38 = vpop.permute.xlu0 %170 }
 0x2c0   :  { %184 = vst.msk [vmem:[#allocation11] sm:$0xf] %vm167_vm2, %v179_v37  ;;  %176 = vst.msk [vmem:[#allocation9] sm:$0xf] %vm167_vm2, %v171_v38 }
 0x2ca   :  { %v173_v39 = vpop.permute.xlu1 %172 }
 0x2cb   :  { %177 = vst.msk [vmem:[#allocation9 + $0x4] sm:$0xf] %vm167_vm2, %v173_v39 }
 0x2cc   :  { %372 = shalt.err (!%p369_p8)
}
 0x2cd   :  { %s373_s25 = scalar_lea.hbm %s564_s4, 128 }
 0x2ce   :  { %p374_p9 = scmp.ne.s32.totalorder %s564_s4, %s373_s25  ;;  %p377_p10 = scmp.lt.u32.totalorder %s373_s25, %s564_s4 }
 0x2d0   :  { %p379_p11 = pnand %p377_p10, %p374_p9 }
 0x2d2   :  { %382 = shalt.err (!%p379_p11)
}
 0x2d3   :  { %209 = dma.vmem_to_hbm [thread:$0]  %s204_s19, 128, %s564_s4, [#allocation10], %s418_s0, %s418_s0, %s419_s21   ;;  %v181_v40 = vpop.permute.xlu1 %180 }
 0x2d4   :  { %185 = vst.msk [vmem:[#allocation11 + $0x4] sm:$0xf] %vm167_vm2, %v181_v40  ;;  %s383_s2 = scalar_lea.vmem %s216_s22, 128  ;;  %p388_p13 = scmp.lt.s32.totalorder %s216_s22, %s216_s22 }
 0x2d5   :  { %p384_p12 = scmp.ne.s32.totalorder %s216_s22, %s383_s2  ;;  %p389_p0 = scmp.lt.s32.totalorder %s383_s2, %s383_s2 }
 0x2d7   :  { %p390_p1 = por %p389_p0, %p388_p13 }
 0x2d9   :  { %p391_p2 = pnand %p390_p1, %p384_p12 }
 0x2db   :  { %394 = shalt.err (!%p391_p2)
}
 0x2dc   :  { %s395_s9 = scalar_lea.hbm %s565_s5, 128 }
 0x2dd   :  { %p396_p3 = scmp.ne.s32.totalorder %s565_s5, %s395_s9  ;;  %p399_p4 = scmp.lt.u32.totalorder %s395_s9, %s565_s5 }
 0x2df   :  { %p401_p5 = pnand %p399_p4, %p396_p3 }
 0x2e1   :  { %404 = shalt.err (!%p401_p5)
}
 0x2e2   :  { %221 = dma.vmem_to_hbm [thread:$0]  %s216_s22, 128, %s565_s5, [#allocation10], %s418_s0, %s418_s0, %s419_s21  }
 0x2e3   :  { %409 = dma.done.wait [#allocation4], 128  }
 0x2e4   :  { %410 = vsyncadd [#allocation4], 4294967168 }
 0x2e5   :  { %411 = dma.done.wait [#allocation10], 256  }
 0x2e6   :  { %412 = vsyncadd [#allocation10], 4294967040 }
 0x2e7   :  { %231 = vsyncpa [#allocation3], 1 }
 0x2e8   :  { %232 = vsyncpa [#allocation6], 1 }
 0x2e9   :  { %233 = vsyncpa [#allocation4], 1 }
 0x2ea   :  { %234 = vsyncpa [#allocation10], 1 }

// kernel: transformer_forward.10
= control target key start
LH: loop header
LB: loop body
LE: loop exit
PB: predicated region body
PF: predicated region fallthrough
CT: control target
= control target key end

     0   :  { %s2558_s0 = inlined_call_operand.hbm [shape: bf16[2,8,32], index: 0, kind: input, shape index: {}]   ;;  %s2559_s1 = inlined_call_operand.hbm [shape: bf16[2,8,32], index: 1, kind: input, shape index: {}]   ;;  %s2560_s2 = inlined_call_operand.hbm [shape: bf16[2,8,32], index: 2, kind: input, shape index: {}]   ;;  %s2561_s3 = inlined_call_operand.hbm [shape: f32[2,16], index: 3, kind: input, shape index: {}]   ;;  %s2562_s4 = inlined_call_operand.hbm [shape: f32[2,16], index: 4, kind: input, shape index: {}]   ;;  %s2563_s5 = inlined_call_operand.hbm [shape: f32[1,16], index: 5, kind: input, shape index: {}]   ;;  %s2564_s6 = inlined_call_operand.hbm [shape: f32[1,16], index: 6, kind: input, shape index: {}]   ;;  %s2565_s7 = inlined_call_operand.hbm [shape: bf16[32,32], index: 7, kind: input, shape index: {}]   ;;  %s2566_s8 = inlined_call_operand.hbm [shape: f32[2,8,32], index: 8, kind: input, shape index: {}]   ;;  %s2567_s9 = inlined_call_operand.hbm [shape: f32[2,8,32], index: 9, kind: output, shape index: {}]  }
   0x1   :  { %2590 = sst [smem:[#allocation37_spill]] %s2558_s0 }
   0x2   :  { %2591 = sst [smem:[#allocation38_spill]] %s2559_s1 }
   0x3   :  { %2592 = sst [smem:[#allocation39_spill]] %s2561_s3 }
   0x4   :  { %2593 = sst [smem:[#allocation40_spill]] %s2563_s5 }
   0x5   :  { %2594 = sst [smem:[#allocation41_spill]] %s2567_s9 }
   0x6   :  { %14 = vsyncpa [#allocation7], 0 }
   0x7   :  { %16 = vsyncpa [#allocation7 + $0x1], 0 }
   0x8   :  { %17 = vsyncpa [#allocation10], 0 }
   0x9   :  { %19 = vsyncpa [#allocation10 + $0x1], 0 }
   0xa   :  { %20 = vsyncpa [#allocation13], 0 }
   0xb   :  { %21 = vsyncpa [#allocation16], 0 }
   0xc   :  { %22 = vsyncpa [#allocation19], 0 }
   0xd   :  { %23 = vsyncpa [#allocation8], 0 }
   0xe   :  { %25 = vsyncpa [#allocation8 + $0x1], 0  ;;  %s2006_s30 = smov 0   ;;  %s2008_s10 = smov 0  }
   0xf   :  { %s2010_s11 = smov 0   ;;  %s2012_s12 = smov 0  }
  0x10   :  { %s2014_s13 = smov 0   ;;  %s2016_s14 = smov 0  }
  0x11 LB: > { %2595 = sst [smem:[#allocation29_spill]] %s1915_s30  ;;  %s2037_s15 = sadd.s32 4294967295, %s1935_s14   ;;  %s1935_s14 = sphi %s2016_s14, %s31_s14   ;;  %s1931_s13 = sphi %s2014_s13, %s2649_s13   ;;  %s1927_s12 = sphi %s2012_s12, %s2648_s12   ;;  %s1923_s11 = sphi %s2010_s11, %s2647_s11   ;;  %s1919_s10 = sphi %s2008_s10, %s2646_s10   ;;  %s1915_s30 = sphi %s2006_s30, %s2643_s30  }
  0x12   : > { %2596 = sst [smem:[#allocation30_spill]] %s1919_s10  ;;  %p1310_p0 = scmp.ge.s32.totalorder %s1935_s14, 1 }
  0x13   : > { %2597 = sst [smem:[#allocation31_spill]] %s1927_s12  ;;  %p2568_p1 = scmp.eq.s32.totalorder %s2037_s15, 0 }
  0x14   : > { %p300_p2 = scmp.lt.s32.totalorder %s1935_s14, 3  ;;  %s1937_s17 = smov [#allocation12]  }
  0x15   : > { %s313_s18 = sshll.u32 %s1937_s17, 4  ;;  %s1938_s19 = smov [#allocation15]   ;;  %s314_s18 = int_to_ptr.vmem [resolvable:$true] %s313_s18 }
  0x16   : > { %p2042_p3 = pnand %p1310_p0, %p300_p2  ;;  %s335_s20 = sshll.u32 %s1938_s19, 4  ;;  %s2055_s20 = int_to_ptr.vmem [resolvable:$true] %s335_s20 }
  0x17   : > { %s2600_s3 = sld [smem:[#allocation39_spill]] }
  0x18   : > { %s2598_s16 = scalar_select %p2042_p3, 1, 0 }
  0x19   : > { %p1424_p5 = pneg %p2042_p3 }
  0x1b   : > { %p2051_p6 = pnand %p1424_p5, %p2568_p1 }
  0x1d   : > { %s2599_s21 = scalar_select %p2051_p6, 1, 0 }
  0x1e   : > { %s1573_s24 = scalar_lea.hbm %s2600_s3, 32  ;;  %p2065_p8 = pneg %p2051_p6 }
  0x1f   : > { %p1574_p7 = scmp.ne.s32.totalorder %s2600_s3, %s1573_s24  ;;  %p1580_p11 = scmp.lt.u32.totalorder %s1573_s24, %s2600_s3 }
  0x20   : > { %s2601_s27 = scalar_select %p2065_p8, 1, 0 }
  0x21   : > { %p1576_p9 = pnand %p2065_p8, %p1574_p7 }
  0x23   : > { %p1577_p10 = pneg %p1576_p9 }
  0x25   : > { %p1582_p12 = pnand %p1580_p11, %p1577_p10 }
  0x27   : > { %1585 = shalt.err (!%p1582_p12)
}
  0x28   : > { %s1586_s17 = scalar_lea.vmem %s314_s18, 32  ;;  %p1594_p5 = scmp.lt.s32.totalorder %s314_s18, %s314_s18 }
  0x29   : > { %p1587_p13 = scmp.ne.s32.totalorder %s314_s18, %s1586_s17  ;;  %p1595_p4 = scmp.lt.s32.totalorder %s1586_s17, %s1586_s17 }
  0x2b   : > { %p1589_p0 = pnand %p1587_p13, %p2065_p8  ;;  %p1596_p1 = por %p1595_p4, %p1594_p5 }
  0x2d   : > { %p1590_p2 = pneg %p1589_p0 }
  0x2f   : > { %p1597_p3 = pnand %p1596_p1, %p1590_p2 }
  0x31   : > { %1600 = shalt.err (!%p1597_p3)
}
  0x32   : > { %1427 = dma.hbm_to_vmem [thread:$0]  (!%p2051_p6), %s2600_s3, 32, %s314_s18, [#allocation13]  }
  0x33   : > { %s2602_s5 = sld [smem:[#allocation40_spill]] }
  0x39   : > { %s1601_s25 = scalar_lea.hbm %s2602_s5, 16 }
  0x3a   : > { %p1602_p7 = scmp.ne.s32.totalorder %s2602_s5, %s1601_s25  ;;  %p1608_p1 = scmp.lt.u32.totalorder %s1601_s25, %s2602_s5 }
  0x3c   : > { %p1604_p9 = pnand %p1602_p7, %p2065_p8 }
  0x3e   : > { %p1605_p4 = pneg %p1604_p9 }
  0x40   : > { %p1610_p3 = pnand %p1608_p1, %p1605_p4 }
  0x42   : > { %1613 = shalt.err (!%p1610_p3)
}
  0x43   : > { %s1614_s18 = scalar_lea.vmem %s2055_s20, 16  ;;  %s1621_s19 = scalar_lea.vmem %s2055_s20, 32 }
  0x44   : > { %p1615_p10 = scmp.ne.s32.totalorder %s2055_s20, %s1614_s18  ;;  %p1622_p13 = scmp.lt.s32.totalorder %s2055_s20, %s2055_s20 }
  0x45   : > { %p1623_p0 = scmp.lt.s32.totalorder %s1621_s19, %s1614_s18 }
  0x46   : > { %p1617_p11 = pnand %p1615_p10, %p2065_p8 }
  0x47   : > { %p1624_p2 = por %p1623_p0, %p1622_p13 }
  0x48   : > { %p1618_p12 = pneg %p1617_p11 }
  0x4a   : > { %p1625_p5 = pnand %p1624_p2, %p1618_p12 }
  0x4c   : > { %1628 = shalt.err (!%p1625_p5)
}
  0x4d   : > { %1433 = dma.hbm_to_vmem [thread:$0]  (!%p2051_p6), %s2602_s5, 16, %s2055_s20, [#allocation16]  }
  0x4e   : > { %s1309_s24 = sadd.s32 4294967294, %s1935_s14   ;;  %s50_s25 = sadd.s32 1, %s1931_s13 }
  0x4f   : > { %p52_p7 = scmp.ge.s32.totalorder %s50_s25, 2  ;;  %s59_s26 = sadd.s32 1, %s1923_s11 }
  0x50   : > { %p66_p9 = scmp.ne.s32.totalorder %s1923_s11, %s1919_s10  ;;  %p67_p4 = scmp.eq.s32.totalorder %s1935_s14, 0 }
  0x51   : > { %s2651_s25 = smov (%p52_p7, %s50_s25), 0  ;;  %p72_p3 = scmp.ne.s32.totalorder %s1919_s10, %s1915_s30 }
  0x52   : > { %2603 = sst [smem:[#allocation32_spill]] %s2651_s25  ;;  %p2113_p1 = por %p67_p4, %p66_p9 }
  0x53   : > { %s54_s20 = ssub.s32 %s1931_s13, %s2651_s25  ;;  %p287_p10 = scmp.eq.s32.totalorder %s2037_s15, 1 }
  0x54   : > { %p57_p11 = scmp.eq.s32.totalorder %s54_s20, 0  ;;  %p2605_p12 = scmp.eq.s32.totalorder %s2037_s15, 0 }
  0x55   : > { %p2128_p0 = por %p287_p10, %p66_p9  ;;  %p293_p2 = scmp.eq.s32.totalorder %s1309_s24, 1 }
  0x56   : > { %p2124_p13 = por %p2605_p12, %p72_p3  ;;  %p1462_p7 = scmp.lt.s32.totalorder %s1935_s14, 2 }
  0x57   : > { %s2608_s17 = scalar_select %p2128_p0, 1, 0 }
  0x58   : > { %s2606_s29 = scalar_select %p2124_p13, 1, 0 }
  0x59   : > { %2609 = sst [smem:[#allocation34_spill]] %s2608_s17  ;;  %p2135_p5 = por %p293_p2, %p72_p3 }
  0x5a   : > { %2607 = sst [smem:[#allocation33_spill]] %s2606_s29  ;;  %s2571_s23 = sand.u32 1, %s1923_s11  }
  0x5b   : > { %s2133_s18 = scalar_select %p57_p11, %s1923_s11, %s59_s26  }
  0x5c   : > { %s2611_s19 = scalar_select %p2135_p5, 1, 0 }
  0x5d   : > { %2610 = sst [smem:[#allocation35_spill]] %s2133_s18  ;;  %s2144_s20 = sshll.u32 %s2571_s23, 2 }
  0x5e   : > { %2612 = sst [smem:[#allocation36_spill]] %s2611_s19  ;;  %s2147_s3 = sshll.u32 %s1931_s13, 6 }
  0x5f   : > { %s2613_s0 = sld [smem:[#allocation37_spill]]  ;;  %s374_s26 = scalar_lea.vmem [#allocation6], %s2144_s20 }
  0x60   : > { %s382_s22 = sshll.u32 %s374_s26, 4  ;;  %p2160_p9 = pnand %p1462_p7, %p2113_p1  ;;  %s2156_s22 = int_to_ptr.vmem [resolvable:$true] %s382_s22 }
  0x61   : > { %s2615_s1 = sld [smem:[#allocation38_spill]]  ;;  %s2616_s25 = sand.u32 1, %s1935_s14  }
  0x62   : > { %s2614_s23 = scalar_select %p2160_p9, 1, 0 }
  0x63   : > { %s2172_s30 = scalar_lea.sflag [#allocation7], %s2616_s25  ;;  %p2178_p3 = pneg %p2160_p9 }
  0x65   : > { %s2153_s24 = scalar_lea.hbm %s2613_s0, %s2147_s3  ;;  %s1634_s18 = scalar_lea.hbm %s2613_s0, 128 }
  0x66   : > { %s1629_s9 = scalar_lea.hbm %s2153_s24, 64  ;;  %p1635_p11 = scmp.lt.u32.totalorder %s2153_s24, %s2613_s0 }
  0x67   : > { %s2168_s5 = scalar_lea.hbm %s2615_s1, %s2147_s3  ;;  %p1630_p4 = scmp.ne.s32.totalorder %s2153_s24, %s1629_s9 }
  0x68   : > { %s2617_s26 = scalar_select %p2178_p3, 1, 0 }
  0x69   : > { %p1632_p1 = pnand %p2178_p3, %p1630_p4  ;;  %p1636_p12 = scmp.lt.u32.totalorder %s1634_s18, %s1629_s9 }
  0x6a   : > { %p1638_p7 = scmp.lt.u32.totalorder %s1629_s9, %s2153_s24 }
  0x6b   : > { %p1633_p10 = pneg %p1632_p1  ;;  %p1637_p2 = por %p1636_p12, %p1635_p11 }
  0x6d   : > { %p1639_p5 = por %p1638_p7, %p1637_p2 }
  0x6f   : > { %p1640_p0 = pnand %p1639_p5, %p1633_p10 }
  0x71   : > { %1643 = shalt.err (!%p1640_p0)
}
  0x72   : > { %s1644_s25 = scalar_lea.vmem %s2156_s22, 64  ;;  %s1939_s17 = smov [#allocation6]  }
  0x73   : > { %p1645_p4 = scmp.ne.s32.totalorder %s2156_s22, %s1644_s25  ;;  %s1649_s28 = sshll.u32 %s1939_s17, 4  ;;  %s1650_s28 = int_to_ptr.vmem [resolvable:$false] %s1649_s28 }
  0x74   : > { %s1651_s12 = scalar_lea.vmem %s1650_s28, 128  ;;  %p1652_p6 = scmp.lt.s32.totalorder %s2156_s22, %s1650_s28 }
  0x75   : > { %p1647_p1 = pnand %p1645_p4, %p2178_p3  ;;  %p1653_p8 = scmp.lt.s32.totalorder %s1651_s12, %s1644_s25 }
  0x77   : > { %p1648_p13 = pneg %p1647_p1  ;;  %p1654_p11 = por %p1653_p8, %p1652_p6 }
  0x79   : > { %p1655_p12 = pnand %p1654_p11, %p1648_p13 }
  0x7b   : > { %1658 = shalt.err (!%p1655_p12)
}
  0x7c   : > { %1443 = dma.hbm_to_vmem [thread:$0]  (!%p2160_p9), %s2153_s24, 64, %s2156_s22, %s2172_s30  }
  0x7d   : > { %s393_s9 = scalar_lea.vmem [#allocation9], %s2144_s20  ;;  %s1940_s19 = smov [#allocation14]  }
  0x7e   : > { %s401_s18 = sshll.u32 %s393_s9, 4  ;;  %s2205_s25 = sshll.u32 %s1940_s19, 4  ;;  %s2203_s18 = int_to_ptr.vmem [resolvable:$true] %s401_s18  ;;  %s325_s25 = int_to_ptr.vmem [resolvable:$true] %s2205_s25 }
  0x7f   : > { %s2618_s17 = sand.u32 1, %s1935_s14   ;;  %s1659_s12 = scalar_lea.hbm %s2168_s5, 64 }
  0x80   : > { %s2209_s28 = scalar_lea.sflag [#allocation10], %s2618_s17  ;;  %p1660_p6 = scmp.ne.s32.totalorder %s2168_s5, %s1659_s12 }
  0x81   : > { %s1664_s10 = scalar_lea.hbm %s2615_s1, 128  ;;  %p1665_p0 = scmp.lt.u32.totalorder %s2168_s5, %s2615_s1 }
  0x82   : > { %p1662_p8 = pnand %p1660_p6, %p2178_p3  ;;  %p1666_p5 = scmp.lt.u32.totalorder %s1664_s10, %s1659_s12 }
  0x83   : > { %p1668_p2 = scmp.lt.u32.totalorder %s1659_s12, %s2168_s5 }
  0x84   : > { %p1663_p13 = pneg %p1662_p8  ;;  %p1667_p10 = por %p1666_p5, %p1665_p0 }
  0x86   : > { %p1669_p7 = por %p1668_p2, %p1667_p10 }
  0x88   : > { %p1670_p4 = pnand %p1669_p7, %p1663_p13 }
  0x8a   : > { %1673 = shalt.err (!%p1670_p4)
}
  0x8b   : > { %s1674_s9 = scalar_lea.vmem %s2203_s18, 64  ;;  %s1941_s0 = smov [#allocation9]  }
  0x8c   : > { %p1675_p1 = scmp.ne.s32.totalorder %s2203_s18, %s1674_s9  ;;  %s1679_s29 = sshll.u32 %s1941_s0, 4  ;;  %s1680_s29 = int_to_ptr.vmem [resolvable:$false] %s1679_s29 }
  0x8d   : > { %s1681_s19 = scalar_lea.vmem %s1680_s29, 128  ;;  %p1682_p6 = scmp.lt.s32.totalorder %s2203_s18, %s1680_s29 }
  0x8e   : > { %p1677_p11 = pnand %p1675_p1, %p2178_p3  ;;  %p1683_p8 = scmp.lt.s32.totalorder %s1681_s19, %s1674_s9 }
  0x90   : > { %p1678_p12 = pneg %p1677_p11  ;;  %p1684_p0 = por %p1683_p8, %p1682_p6 }
  0x92   : > { %p1685_p5 = pnand %p1684_p0, %p1678_p12 }
  0x94   : > { %1688 = shalt.err (!%p1685_p5)
}
  0x95   : > { %1446 = dma.hbm_to_vmem [thread:$0]  (!%p2160_p9), %s2168_s5, 64, %s2203_s18, %s2209_s28  }
  0x96   : > { %s1689_s12 = scalar_lea.hbm %s2562_s4, 32  ;;  %p2619_p10 = scmp.ne.s32.totalorder %s2601_s27, 0 }
  0x97   : > { %p1690_p13 = scmp.ne.s32.totalorder %s2562_s4, %s1689_s12  ;;  %p1696_p4 = scmp.lt.u32.totalorder %s1689_s12, %s2562_s4 }
  0x99   : > { %p1692_p2 = pnand %p1690_p13, %p2619_p10 }
  0x9b   : > { %p1693_p7 = pneg %p1692_p2 }
  0x9d   : > { %p1698_p1 = pnand %p1696_p4, %p1693_p7 }
  0x9f   : > { %1701 = shalt.err (!%p1698_p1)
}
  0xa0   : > { %s1702_s29 = scalar_lea.vmem %s325_s25, 32  ;;  %p1710_p8 = scmp.lt.s32.totalorder %s325_s25, %s325_s25 }
  0xa1   : > { %p1703_p11 = scmp.ne.s32.totalorder %s325_s25, %s1702_s29  ;;  %p1711_p0 = scmp.lt.s32.totalorder %s1702_s29, %s1702_s29 }
  0xa3   : > { %p1705_p12 = pnand %p1703_p11, %p2619_p10  ;;  %p1712_p5 = por %p1711_p0, %p1710_p8 }
  0xa5   : > { %p1706_p6 = pneg %p1705_p12 }
  0xa7   : > { %p1713_p9 = pnand %p1712_p5, %p1706_p6 }
  0xa9   : > { %1716 = shalt.err (!%p1713_p9)
}
  0xaa   : > { %p2620_p13 = scmp.ne.s32.totalorder %s2599_s21, 0  ;;  %s1942_s19 = smov [#allocation17]  }
  0xab   : > { %s346_s10 = sshll.u32 %s1942_s19, 4  ;;  %s1943_s17 = smov [#allocation18]   ;;  %s347_s10 = int_to_ptr.vmem [resolvable:$true] %s346_s10 }
  0xac   : > { %1430 = dma.hbm_to_vmem [thread:$0]  (!%p2620_p13), %s2562_s4, 32, %s325_s25, [#allocation13]  }
  0xad   : > { %s356_s12 = sshll.u32 %s1943_s17, 4  ;;  %s1717_s9 = scalar_lea.hbm %s2564_s6, 16  ;;  %s357_s12 = int_to_ptr.vmem [resolvable:$true] %s356_s12 }
  0xae   : > { %p1718_p9 = scmp.ne.s32.totalorder %s2564_s6, %s1717_s9  ;;  %p1724_p4 = scmp.lt.u32.totalorder %s1717_s9, %s2564_s6 }
  0xb0   : > { %p1720_p2 = pnand %p1718_p9, %p2619_p10 }
  0xb2   : > { %p1721_p7 = pneg %p1720_p2 }
  0xb4   : > { %p1726_p1 = pnand %p1724_p4, %p1721_p7 }
  0xb6   : > { %1729 = shalt.err (!%p1726_p1)
}
  0xb7   : > { %s1730_s25 = scalar_lea.vmem %s347_s10, 16  ;;  %s1737_s18 = scalar_lea.vmem %s347_s10, 32 }
  0xb8   : > { %p1731_p11 = scmp.ne.s32.totalorder %s347_s10, %s1730_s25  ;;  %p1738_p8 = scmp.lt.s32.totalorder %s347_s10, %s347_s10 }
  0xb9   : > { %p1739_p0 = scmp.lt.s32.totalorder %s1737_s18, %s1730_s25 }
  0xba   : > { %p1733_p12 = pnand %p1731_p11, %p2619_p10 }
  0xbb   : > { %p1740_p5 = por %p1739_p0, %p1738_p8 }
  0xbc   : > { %p1734_p6 = pneg %p1733_p12 }
  0xbe   : > { %p1741_p3 = pnand %p1740_p5, %p1734_p6 }
  0xc0   : > { %1744 = shalt.err (!%p1741_p3)
}
  0xc1   : > { %1436 = dma.hbm_to_vmem [thread:$0]  (!%p2620_p13), %s2564_s6, 16, %s347_s10, [#allocation16]  }
  0xc2   : > { %s1745_s24 = scalar_lea.hbm %s2565_s7, 256 }
  0xc3   : > { %p1746_p9 = scmp.ne.s32.totalorder %s2565_s7, %s1745_s24  ;;  %p1752_p3 = scmp.lt.u32.totalorder %s1745_s24, %s2565_s7 }
  0xc5   : > { %p1748_p2 = pnand %p1746_p9, %p2619_p10 }
  0xc7   : > { %p1749_p7 = pneg %p1748_p2 }
  0xc9   : > { %p1754_p4 = pnand %p1752_p3, %p1749_p7 }
  0xcb   : > { %1757 = shalt.err (!%p1754_p4)
}
  0xcc   : > { %s1758_s25 = scalar_lea.vmem %s357_s12, 256  ;;  %p1766_p6 = scmp.lt.s32.totalorder %s357_s12, %s357_s12 }
  0xcd   : > { %p1759_p1 = scmp.ne.s32.totalorder %s357_s12, %s1758_s25  ;;  %p1767_p8 = scmp.lt.s32.totalorder %s1758_s25, %s1758_s25 }
  0xcf   : > { %p1761_p11 = pnand %p1759_p1, %p2619_p10  ;;  %p1768_p0 = por %p1767_p8, %p1766_p6 }
  0xd1   : > { %p1762_p12 = pneg %p1761_p11 }
  0xd3   : > { %p1769_p5 = pnand %p1768_p0, %p1762_p12 }
  0xd5   : > { %1772 = shalt.err (!%p1769_p5)
}
  0xd6   : > { %s1944_s10 = smov 64   ;;  %s1945_s18 = smov 4  }
  0xd7   : > { %1439 = dma.hbm_to_vmem [thread:$0]  (!%p2620_p13), %s2565_s7, 256, %s357_s12, [#allocation19], %s1944_s10, %s1944_s10, %s1945_s18  }
  0xd8   : > { %s2292_s22 = scalar_lea.hbm %s2560_s2, %s2147_s3  ;;  %s412_s24 = scalar_lea.vmem [#allocation11], %s2144_s20 }
  0xd9   : > { %s420_s9 = sshll.u32 %s412_s24, 4  ;;  %s2621_s0 = sand.u32 1, %s1923_s11   ;;  %s421_s9 = int_to_ptr.vmem [resolvable:$true] %s420_s9 }
  0xda   : > { %s2297_s29 = sshll.u32 %s2621_s0, 3  ;;  %s1773_s21 = scalar_lea.hbm %s2292_s22, 64 }
  0xdb   : > { %p1774_p10 = scmp.ne.s32.totalorder %s2292_s22, %s1773_s21  ;;  %p2622_p9 = scmp.ne.s32.totalorder %s2617_s26, 0 }
  0xdc   : > { %s1778_s3 = scalar_lea.hbm %s2560_s2, 128  ;;  %p1779_p7 = scmp.lt.u32.totalorder %s2292_s22, %s2560_s2 }
  0xdd   : > { %p1776_p2 = pnand %p1774_p10, %p2622_p9  ;;  %p1780_p3 = scmp.lt.u32.totalorder %s1778_s3, %s1773_s21 }
  0xde   : > { %p1782_p1 = scmp.lt.u32.totalorder %s1773_s21, %s2292_s22 }
  0xdf   : > { %p1777_p13 = pneg %p1776_p2  ;;  %p1781_p4 = por %p1780_p3, %p1779_p7 }
  0xe1   : > { %p1783_p11 = por %p1782_p1, %p1781_p4 }
  0xe3   : > { %p1784_p12 = pnand %p1783_p11, %p1777_p13 }
  0xe5   : > { %1787 = shalt.err (!%p1784_p12)
}
  0xe6   : > { %s1788_s20 = scalar_lea.vmem %s421_s9, 64  ;;  %s1946_s18 = smov [#allocation11]  }
  0xe7   : > { %p1789_p6 = scmp.ne.s32.totalorder %s421_s9, %s1788_s20  ;;  %s1793_s19 = sshll.u32 %s1946_s18, 4  ;;  %s1794_s19 = int_to_ptr.vmem [resolvable:$false] %s1793_s19 }
  0xe8   : > { %s1795_s17 = scalar_lea.vmem %s1794_s19, 128  ;;  %p1796_p5 = scmp.lt.s32.totalorder %s421_s9, %s1794_s19 }
  0xe9   : > { %p1791_p8 = pnand %p1789_p6, %p2622_p9  ;;  %p1797_p10 = scmp.lt.s32.totalorder %s1795_s17, %s1788_s20 }
  0xeb   : > { %p1792_p0 = pneg %p1791_p8  ;;  %p1798_p2 = por %p1797_p10, %p1796_p5 }
  0xed   : > { %p1799_p3 = pnand %p1798_p2, %p1792_p0 }
  0xef   : > { %1802 = shalt.err (!%p1799_p3)
}
  0xf0   : > { %p2623_p7 = scmp.ne.s32.totalorder %s2614_s23, 0  ;;  %s1324_s27 = sshll.u32 %s1931_s13, 7 }
  0xf1   : > { %s2321_s0 = scalar_lea.hbm %s2566_s8, %s1324_s27  ;;  %s431_s21 = scalar_lea.vmem [#allocation20], %s2297_s29 }
  0xf2   : > { %1449 = dma.hbm_to_vmem [thread:$0]  (!%p2623_p7), %s2292_s22, 64, %s421_s9, %s2209_s28  }
  0xf3   : > { %s439_s12 = sshll.u32 %s431_s21, 4  ;;  %s1803_s5 = scalar_lea.hbm %s2321_s0, 128  ;;  %s440_s12 = int_to_ptr.vmem [resolvable:$true] %s439_s12 }
  0xf4   : > { %p1804_p13 = scmp.ne.s32.totalorder %s2321_s0, %s1803_s5  ;;  %s1808_s22 = scalar_lea.hbm %s2566_s8, 256 }
  0xf5   : > { %p1809_p11 = scmp.lt.u32.totalorder %s2321_s0, %s2566_s8  ;;  %p1810_p12 = scmp.lt.u32.totalorder %s1808_s22, %s1803_s5 }
  0xf6   : > { %p1806_p4 = pnand %p1804_p13, %p2622_p9  ;;  %p1812_p8 = scmp.lt.u32.totalorder %s1803_s5, %s2321_s0 }
  0xf7   : > { %p1811_p6 = por %p1810_p12, %p1809_p11 }
  0xf8   : > { %p1807_p1 = pneg %p1806_p4 }
  0xf9   : > { %p1813_p0 = por %p1812_p8, %p1811_p6 }
  0xfb   : > { %p1814_p5 = pnand %p1813_p0, %p1807_p1 }
  0xfd   : > { %1817 = shalt.err (!%p1814_p5)
}
  0xfe   : > { %s1818_s29 = scalar_lea.vmem %s440_s12, 128  ;;  %s1947_s10 = smov [#allocation20]  }
  0xff   : > { %p1819_p10 = scmp.ne.s32.totalorder %s440_s12, %s1818_s29  ;;  %s1823_s20 = sshll.u32 %s1947_s10, 4  ;;  %s1824_s20 = int_to_ptr.vmem [resolvable:$false] %s1823_s20 }
 0x100   : > { %s1825_s18 = scalar_lea.vmem %s1824_s20, 256  ;;  %p1826_p13 = scmp.lt.s32.totalorder %s440_s12, %s1824_s20 }
 0x101   : > { %p1821_p2 = pnand %p1819_p10, %p2622_p9  ;;  %p1827_p4 = scmp.lt.s32.totalorder %s1825_s18, %s1818_s29 }
 0x103   : > { %p1822_p3 = pneg %p1821_p2  ;;  %p1828_p7 = por %p1827_p4, %p1826_p13 }
 0x105   : > { %p1829_p11 = pnand %p1828_p7, %p1822_p3 }
 0x107   : > { %1832 = shalt.err (!%p1829_p11)
}
 0x108   : > { %p2624_p12 = scmp.ne.s32.totalorder %s2614_s23, 0  ;;  %p2625_p1 = scmp.ne.s32.totalorder %s2598_s16, 0 }
 0x109   : > { %s2626_s26 = sld [smem:[#allocation30_spill]] (!%p2625_p1)  ;;  %s2627_s19 = sld [smem:[#allocation33_spill]] (!%p2625_p1) }
 0x10a   : > { %1452 = dma.hbm_to_vmem [thread:$0]  (!%p2624_p12), %s2321_s0, 128, %s440_s12, %s2172_s30  }
 0x10b   : > { %448 = sbr.rel (%p2625_p1) target bundleno = 2261 (0x8d5), region = 56  ;;  %s450_s17 = sand.u32 (!%p2625_p1), 1, %s2037_s15  }
 0x10c   : > { %s451_s24 = scalar_lea.sflag (!%p2625_p1), [#allocation7], %s450_s17 }
 0x10f   : > { %s2346_s27 = sand.u32 (!%p2625_p1), 1, %s2626_s26   ;;  %p2628_p9 = scmp.ne.s32.totalorder (!%p2625_p1), %s2627_s19, 0 }
 0x110   : > { %s2349_s1 = sshll.u32 (!%p2625_p1), %s2346_s27, 2 }
 0x111   : > { %s454_s21 = scalar_lea.vmem (!%p2625_p1), [#allocation6], %s2349_s1 }
 0x112   : > { %1886 = dma.done.wait (%p2628_p9), %s451_s24, 64  }
 0x113   : > { %1888 = vsyncadd (%p2628_p9), %s451_s24, 4294967232  ;;  %s460_s30 = scalar_lea.sflag [#allocation10], %s450_s17  ;;  %s463_s16 = scalar_lea.vmem [#allocation9], %s2349_s1 }
 0x114   : > { %1890 = dma.done.wait (%p2628_p9), %s460_s30, 128  }
 0x115   : > { %1892 = vsyncadd (%p2628_p9), %s460_s30, 4294967168  ;;  %s472_s23 = scalar_lea.vmem [#allocation11], %s2349_s1  ;;  %p2629_p7 = scmp.eq.s32.totalorder %s2037_s15, 0 }
 0x117   : > { %1894 = dma.done.wait (%p2629_p7), [#allocation13], 64   ;;  %p2630_p6 = pmov %p2629_p7 }
 0x119   : > { %1896 = vsyncadd (%p2630_p6), [#allocation13], 4294967232  ;;  %p2631_p8 = pmov %p2630_p6 }
 0x11a   : > { %p2632_p0 = pmov %p2630_p6 }
 0x11b   : > { %1898 = dma.done.wait (%p2631_p8), [#allocation16], 32  }
 0x11c   : > { %1900 = vsyncadd (%p2632_p0), [#allocation16], 4294967264  ;;  %p2633_p5 = pmov %p2632_p0 }
 0x11d   : > { %p2634_p10 = pmov %p2632_p0 }
 0x11e   : > { %1902 = dma.done.wait (%p2633_p5), [#allocation19], 256  }
 0x11f   : > { %1904 = vsyncadd (%p2634_p10), [#allocation19], 4294967040  ;;  %s1334_s0 = sshll.u32 %s2346_s27, 3 }
 0x120   : > { %s2377_s12 = scalar_lea.vmem [#allocation20], %s1334_s0 }
 0x121   : > { %1906 = dma.done.wait (%p2628_p9), %s451_s24, 128  }
 0x122   : > { %1908 = vsyncadd (%p2628_p9), %s451_s24, 4294967168  ;;  %v558_v0 = vld [vmem:[%s454_s21] sm:$0xf]  ;;  %s1948_s15 = smov 112   ;;  %vm561_vm0 = vcmask 130048   ;;  %v577_v10 = vlaneseq  ;;  %s1949_s5 = smov 16  }
 0x123   : > { %v2383_v1 = vunpack.c.l.bf16 %v558_v0  ;;  %v690_v4 = vld [vmem:[%s463_s16] sm:$0xf]  ;;  %v552_v12 = vld [vmem:[#allocation15] sm:$0x1]  ;;  %v2402_v16 = vld [vmem:[#allocation12 + $0x1] sm:$0x1] }
 0x124   : > { %v2389_v5 = vunpack.c.l.bf16 %v690_v4  ;;  %v578_v11 = vshrl.u32 %v577_v10, 7  ;;  %v575_v13 = vmul.f32 8.0, %v552_v12  ;;  %v1950_v17 = vmov 0.0   ;;  %v553_v46 = vld [vmem:[#allocation17] sm:$0x1]  ;;  %s2635_s3 = sld [smem:[#allocation31_spill]] }
 0x125   : > { %v560_v2 = vmul.f32 %v2383_v1, %v2383_v1  ;;  %1362 = vmatprep.subr.bf16.mxu0 %v1950_v17  ;;  %1368 = vmatprep.subr.bf16.mxu1 %v1950_v17  ;;  %v645_v18 = vmul.f32 %v2402_v16, %v2402_v16  ;;  %vm588_vm1 = vcmask 122880   ;;  %vm1951_vm2 = vmmov 0   ;;  %s2636_s28 = sld [smem:[#allocation34_spill]]  ;;  %s550_s9 = scalar_lea.vmem [#allocation21], %s1334_s0 }
 0x126   : > { %v2393_v6 = vmul.f32 %v2389_v5, %v2389_v5  ;;  %v2398_v14 = vsub.s32 0, %v578_v11  ;;  %1364 = vmatprep.mubr.msk.bf16.mxu0 %vm1951_vm2, %v1950_v17  ;;  %1370 = vmatprep.mubr.msk.bf16.mxu1 %vm1951_vm2, %v1950_v17  ;;  %vm584_vm5 = vcmask 125952   ;;  %vm642_vm10 = vcmask 257152   ;;  %s1111_s25 = sshll.u32 %s550_s9, 4  ;;  %s2637_s20 = sld [smem:[#allocation41_spill]]  ;;  %s2511_s25 = int_to_ptr.vmem [resolvable:$true] %s1111_s25 }
 0x127   : > { %621 = vrot.lane.b32.xlu0 %v560_v2, %s1948_s15  ;;  %v562_v3 = vsel %vm561_vm0, %v560_v2, 0.0  ;;  %v646_v19 = vsel %vm588_vm1, %v645_v18, 0.0  ;;  %vm611_vm13 = vcmask 7168   ;;  %v1952_v12 = vmov 1.0   ;;  %s1097_s26 = scalar_lea.sflag [#allocation8], %s2346_s27  ;;  %s1833_s19 = scalar_lea.vmem %s2511_s25, 128 }
 0x128   : > { %v696_v9 = vsel %vm561_vm0, %v2393_v6, 0.0  ;;  %v580_v15 = vrot.slane %v575_v13, %v2398_v14  ;;  %v2420_v50 = vrot.slane %v553_v46, %v2398_v14  ;;  %613 = vst.msk [vmem:[#allocation4] sm:$0xff] %vm611_vm13, %v1952_v12  ;;  %p1834_p2 = scmp.ne.s32.totalorder %s2511_s25, %s1833_s19  ;;  %s1955_s17 = smov [#allocation21]  }
 0x129   : > { %s1837_s1 = sshll.u32 %s1955_s17, 4  ;;  %s1838_s1 = int_to_ptr.vmem [resolvable:$false] %s1837_s1 }
 0x12a   : > { %s1348_s22 = sshll.u32 %s2635_s3, 7  ;;  %s1839_s24 = scalar_lea.vmem %s1838_s1, 256 }
 0x12b   : > { %p2638_p3 = scmp.ne.s32.totalorder %s2636_s28, 0  ;;  %p1840_p11 = scmp.lt.s32.totalorder %s2511_s25, %s1838_s1 }
 0x12c   : > { %s2509_s18 = scalar_lea.hbm %s2637_s20, %s1348_s22  ;;  %p1841_p12 = scmp.lt.s32.totalorder %s1839_s24, %s1833_s19 }
 0x12d   : > { %p1835_p13 = pnand %p1834_p2, %p2638_p3 }
 0x12e   : > { %p1842_p1 = por %p1841_p12, %p1840_p11 }
 0x12f   : > { %p1836_p4 = pneg %p1835_p13 }
 0x131   : > { %p1843_p9 = pnand %p1842_p1, %p1836_p4 }
 0x146   : > { %563 = vadd.xlane.f32.xlu0 %v562_v3 }
 0x199   : > { %v622_v7 = vpop.permute.xlu0 %621 }
 0x19a   : > { %v624_v8 = vsel %vm561_vm0, %v622_v7, 0.0  ;;  %v586_v7 = vld [vmem:[#allocation12] sm:$0x1] }
 0x19b   : > { %625 = vadd.xlane.f32.xlu1 %v624_v8  ;;  %v587_v8 = vmul.f32 %v586_v7, %v586_v7 }
 0x19f   : > { %697 = vadd.xlane.f32.xlu1 %v696_v9  ;;  %v589_v9 = vsel %vm588_vm1, %v587_v8, 0.0  ;;  %vm676_vm1 = vcmask 15368  }
 0x1a0   : > { %678 = vst.msk [vmem:[#allocation4] sm:$0xff] %vm676_vm1, %v1952_v12 }
 0x1b0   : > { %637 = vrot.lane.b32.xlu1 %v580_v15, %s1949_s5 }
 0x1d3   : > { %v564_v20 = vpop.xlane.xlu0 %563 }
 0x1d4   : > { %647 = vadd.xlane.f32.xlu1 %v646_v19  ;;  %1539 = vrsqrt.f32 %v564_v20  ;;  %vm567_vm3 = vcmp.eq.f32.partialorder %v564_v20, inf  ;;  %v570_v22 = vand.u32 2147483648, %v564_v20  ;;  %vm569_vm4 = vcmp.eq.f32.partialorder %v564_v20, 0.0 }
 0x1de   : > { %v1540_v21 = vpop.eup %1539 }
 0x1df   : > { %v566_v23 = vmul.f32 %v1540_v21, %v564_v20 }
 0x1e1   : > { %v568_v24 = vsel %vm567_vm3, %v564_v20, %v566_v23  ;;  %vm764_vm3 = vcmask 64512  }
 0x1e2   : > { %v571_v25 = vsel %vm569_vm4, %v570_v22, %v568_v24  ;;  %vm799_vm4 = vcmask 1043456  }
 0x1e3   : > { %v572_v26 = vmax.f32 %v571_v25, 1e-12 }
 0x1e5   : > { %1541 = vrcp.f32 %v572_v26 }
 0x1ef   : > { %v1542_v27 = vpop.eup %1541 }
 0x1f0   : > { %v574_v28 = vmul.f32 %v1542_v27, %v2383_v1 }
 0x1f2   : > { %v2414_v29 = vmul.f32 %v580_v15, %v574_v28 }
 0x1f4   : > { %v583_v30 = vpack.c.bf16 %v2414_v29, %v2414_v29 }
 0x1f6   : > { %585 = vst.msk [vmem:[#allocation2] sm:$0xf] %vm584_vm5, %v583_v30 }
 0x228   : > { %v626_v31 = vpop.xlane.xlu1 %625 }
 0x229   : > { %1543 = vrsqrt.f32 %v626_v31  ;;  %vm629_vm6 = vcmp.eq.f32.partialorder %v626_v31, inf  ;;  %v632_v35 = vand.u32 2147483648, %v626_v31  ;;  %vm631_vm7 = vcmp.eq.f32.partialorder %v626_v31, 0.0 }
 0x22c   : > { %v698_v32 = vpop.xlane.xlu1 %697 }
 0x22d   : > { %1545 = vrsqrt.f32 %v698_v32  ;;  %vm701_vm8 = vcmp.eq.f32.partialorder %v698_v32, inf  ;;  %v704_v41 = vand.u32 2147483648, %v698_v32  ;;  %vm703_vm9 = vcmp.eq.f32.partialorder %v698_v32, 0.0 }
 0x230   : > { %v638_v48 = vpop.permute.xlu1 %637 }
 0x233   : > { %v1544_v33 = vpop.eup %1543 }
 0x234   : > { %v628_v34 = vmul.f32 %v1544_v33, %v626_v31 }
 0x236   : > { %v630_v36 = vsel %vm629_vm6, %v626_v31, %v628_v34 }
 0x237   : > { %v1546_v37 = vpop.eup %1545  ;;  %v633_v38 = vsel %vm631_vm7, %v632_v35, %v630_v36  ;;  %vm1050_vm7 = vcmask 261120  }
 0x238   : > { %v700_v39 = vmul.f32 %v1546_v37, %v698_v32  ;;  %v634_v40 = vmax.f32 %v633_v38, 1e-12 }
 0x23a   : > { %v702_v42 = vsel %vm701_vm8, %v698_v32, %v700_v39  ;;  %1547 = vrcp.f32 %v634_v40 }
 0x23b   : > { %v705_v43 = vsel %vm703_vm9, %v704_v41, %v702_v42 }
 0x23c   : > { %v706_v44 = vmax.f32 %v705_v43, 1e-12 }
 0x23e   : > { %1549 = vrcp.f32 %v706_v44  ;;  %v692_v44 = vld [vmem:[%s472_s23] sm:$0xf] }
 0x244   : > { %v1548_v45 = vpop.eup %1547 }
 0x245   : > { %v636_v47 = vmul.f32 %v1548_v45, %v2383_v1 }
 0x247   : > { %v640_v49 = vmul.f32 %v638_v48, %v636_v47 }
 0x248   : > { %v1550_v51 = vpop.eup %1549 }
 0x249   : > { %v641_v52 = vpack.c.bf16 %v640_v49, %v640_v49  ;;  %v708_v53 = vmul.f32 %v1550_v51, %v2389_v5 }
 0x24b   : > { %643 = vst.msk [vmem:[#allocation2] sm:$0xf] %vm642_vm10, %v641_v52  ;;  %v715_v54 = vmul.f32 %v2420_v50, %v708_v53 }
 0x24d   : > { %v716_v55 = vpack.c.bf16 %v715_v54, %v715_v54 }
 0x24f   : > { %v721_v56 = vsel %vm561_vm0, %v716_v55, 0 }
 0x250   : > { %1363 = vmatpush3.bf16.xpose.msra.mxu0 %v721_v56 }
 0x251   : > { %1380 = vmatprep.subr.bf16.mxu0 %v1950_v17 }
 0x252   : > { %v693_v57 = vld [vmem:[#allocation2] sm:$0xf] }
 0x253   : > { %v1535_v56 = vld [vmem:[#allocation2] ss:$0 sps:$4 sm:$0xff]  }
 0x257   : > { %1365 = vmatmul.mubr.msk.bf16.vlgmr.msra.gmra.mrb[0].mxu0 %vm561_vm0, %v693_v57 }
 0x258   : > { %1382 = vmatprep.mubr.msk.bf16.mxu0 %vm1951_vm2, %v1950_v17 }
 0x261   : > { %v648_v58 = vpop.xlane.xlu1 %647 }
 0x262   : > { %1551 = vrsqrt.f32 %v648_v58  ;;  %vm651_vm11 = vcmp.eq.f32.partialorder %v648_v58, inf  ;;  %v654_v61 = vand.u32 2147483648, %v648_v58  ;;  %vm653_vm12 = vcmp.eq.f32.partialorder %v648_v58, 0.0 }
 0x26c   : > { %v1552_v59 = vpop.eup %1551 }
 0x26d   : > { %v650_v60 = vmul.f32 %v1552_v59, %v648_v58 }
 0x26f   : > { %v652_v62 = vsel %vm651_vm11, %v648_v58, %v650_v60 }
 0x270   : > { %v655_v63 = vsel %vm653_vm12, %v654_v61, %v652_v62 }
 0x271   : > { %v656_v0 = vmax.f32 %v655_v63, 1e-12 }
 0x273   : > { %1553 = vrcp.f32 %v656_v0 }
 0x27d   : > { %v1554_v1 = vpop.eup %1553 }
 0x27e   : > { %v658_v2 = vmul.f32 %v1554_v1, %v2402_v16 }
 0x280   : > { %v659_v3 = vmul.f32 %v658_v2, %v553_v46 }
 0x282   : > { %v663_v4 = vrot.slane %v659_v3, %v2398_v14 }
 0x284   : > { %665 = vrot.lane.b32.xlu0 %v663_v4, %s1949_s5 }
 0x2a3   : > { %590 = vadd.xlane.f32.xlu0 %v589_v9 }
 0x2f6   : > { %v666_v10 = vpop.permute.xlu0 %665 }
 0x2f7   : > { %v668_v11 = vmul.f32 %v666_v10, %v640_v49 }
 0x2f9   : > { %670 = vrot.lane.b32.xlu1 %v668_v11, %s1948_s15  ;;  %v1954_v11 = vmov 1  }
 0x2fa   : > { %1534 = vset.pattern.permute.xlu0 %v1954_v11 }
 0x2fd   : > { %848 = vrot.lane.b32.xlu1 %v2393_v6, %s1948_s15 }
 0x32a   : > { %v2437_v13 = vpop.f32.mrb[0].mxu0 }
 0x32b   : > { %v1366_v15 = vpop.f32.mrb[1].mxu0 }
 0x32c   : > { %v760_v16 = vpop.f32.mrb[2].mxu0 }
 0x32d   : > { %v1367_v18 = vpop.f32.mrb[3].mxu0  ;;  %v1342_v16 = vcombine.low %v692_v44, %v692_v44 }
 0x330   : > { %v591_v19 = vpop.xlane.xlu0 %590 }
 0x331   : > { %1555 = vrsqrt.f32 %v591_v19  ;;  %vm594_vm14 = vcmp.eq.f32.partialorder %v591_v19, inf  ;;  %v597_v21 = vand.u32 2147483648, %v591_v19  ;;  %vm596_vm15 = vcmp.eq.f32.partialorder %v591_v19, 0.0 }
 0x33b   : > { %v1556_v20 = vpop.eup %1555 }
 0x33c   : > { %v593_v22 = vmul.f32 %v1556_v20, %v591_v19 }
 0x33e   : > { %v595_v23 = vsel %vm594_vm14, %v591_v19, %v593_v22 }
 0x33f   : > { %v598_v24 = vsel %vm596_vm15, %v597_v21, %v595_v23 }
 0x340   : > { %v599_v25 = vmax.f32 %v598_v24, 1e-12 }
 0x342   : > { %1557 = vrcp.f32 %v599_v25 }
 0x34c   : > { %v1558_v6 = vpop.eup %1557 }
 0x34d   : > { %v601_v26 = vmul.f32 %v1558_v6, %v586_v7 }
 0x34f   : > { %v602_v27 = vmul.f32 %v601_v26, %v553_v46  ;;  %v801_v46 = vsel %vm799_vm4, %v692_v44, 0 }
 0x350   : > { %1369 = vmatpush3.bf16.msra.mxu1 %v801_v46 }
 0x351   : > { %v606_v28 = vrot.slane %v602_v27, %v2398_v14  ;;  %v765_v14 = vsel %vm764_vm3, %v2437_v13, -inf  ;;  %1374 = vmatprep.subr.bf16.mxu1 %v1950_v17 }
 0x353   : > { %v607_v30 = vmul.f32 %v606_v28, %v2414_v29  ;;  %v1953_v29 = vmov 0  }
 0x354   : > { %1531 = vset.pattern.permute.xlu1 %v1953_v29 }
 0x355   : > { %v608_v31 = vsel %vm561_vm0, %v607_v30, 0.0 }
 0x356   : > { %609 = vadd.xlane.f32.xlu1 %v608_v31  ;;  %v1336_v31 = vld [vmem:[#allocation14] ss:$0 sm:$0xff] }
 0x357   : > { %619 = vst.msk [vmem:[#allocation5] sm:$0xff] %vm561_vm0, %v1336_v31 }
 0x36b   : > { %v671_v32 = vpop.permute.xlu1 %670 }
 0x36c   : > { %v673_v33 = vsel %vm561_vm0, %v671_v32, 0.0  ;;  %v1337_v32 = vld [vmem:[#allocation14 + $0x1] ss:$0 sm:$0xff] }
 0x36d   : > { %674 = vadd.xlane.f32.xlu0 %v673_v33 }
 0x36f   : > { %v849_v34 = vpop.permute.xlu1 %848 }
 0x370   : > { %v851_v35 = vsel %vm561_vm0, %v849_v34, 0.0  ;;  %v780_v34 = vld [vmem:[#allocation4] sm:$0xff] }
 0x371   : > { %852 = vadd.xlane.f32.xlu0 %v851_v35 }
 0x375   : > { %766 = vmax.xlane.f32.xlu0 %v765_v14 }
 0x38b   : > { %864 = vrot.lane.b32.xlu0 %v2420_v50, %s1949_s5 }
 0x3e3   : > { %v610_v36 = vpop.xlane.xlu1 %609 }
 0x3e4   : > { %612 = vst.msk [vmem:[#allocation3] sm:$0xff] %vm611_vm13, %v610_v36 }
 0x3fa   : > { %v675_v37 = vpop.xlane.xlu0 %674 }
 0x3fb   : > { %677 = vst.msk [vmem:[#allocation3] sm:$0xff] %vm676_vm1, %v675_v37 }
 0x3fe   : > { %v853_v38 = vpop.xlane.xlu0 %852 }
 0x3ff   : > { %1559 = vrsqrt.f32 %v853_v38  ;;  %vm856_vm5 = vcmp.eq.f32.partialorder %v853_v38, inf  ;;  %v859_v47 = vand.u32 2147483648, %v853_v38  ;;  %vm858_vm6 = vcmp.eq.f32.partialorder %v853_v38, 0.0 }
 0x402   : > { %v2452_v39 = vld [vmem:[#allocation3] sm:$0xff]  ;;  %v767_v40 = vpop.xlane.xlu0 %766 }
 0x403   : > { %v2455_v41 = vmax.f32 %v2452_v39, %v767_v40 }
 0x405   : > { %v769_v42 = vsub.f32 %v2452_v39, %v2455_v41  ;;  %845 = vst.msk [vmem:[#allocation3] sm:$0xff] %vm611_vm13, %v2455_v41  ;;  %774 = vperm.xlu1 %1531, %v2455_v41  }
 0x406   : > { %v865_v52 = vpop.permute.xlu0 %864 }
 0x407   : > { %v770_v20 = vmul.f32 1.442695, %v769_v42 }
 0x409   : > { %v1560_v43 = vpop.eup %1559  ;;  %1532 = vset.pattern.permute.xlu1 %v1954_v11 }
 0x40a   : > { %v855_v45 = vmul.f32 %v1560_v43, %v853_v38 }
 0x40c   : > { %v857_v48 = vsel %vm856_vm5, %v853_v38, %v855_v45  ;;  %v923_v12 = vld [vmem:[#allocation3] sm:$0xff] }
 0x40d   : > { %v860_v49 = vsel %vm858_vm6, %v859_v47, %v857_v48  ;;  %v1537_v47 = vld [vmem:[#allocation18] sm:$0xff]  }
 0x40e   : > { %v861_v50 = vmax.f32 %v860_v49, 1e-12 }
 0x410   : > { %1561 = vrcp.f32 %v861_v50 }
 0x41a   : > { %v1562_v51 = vpop.eup %1561 }
 0x41b   : > { %v863_v53 = vmul.f32 %v1562_v51, %v2389_v5 }
 0x41d   : > { %v867_v54 = vmul.f32 %v865_v52, %v863_v53  ;;  %v1538_v52 = vld [vmem:[#allocation18 + $0x8] sm:$0xff]  }
 0x41f   : > { %v868_v55 = vpack.c.bf16 %v867_v54, %v867_v54 }
 0x421   : > { %875 = vrot.lane.b32.xlu0 %v868_v55, %s1948_s15 }
 0x425   : > { %872 = vrot.lane.b32.xlu0 %v1535_v56, %s1948_s15 }
 0x484   : > { %v775_v57 = vpop.permute.xlu1 %774 }
 0x485   : > { %v777_v58 = vsub.f32 %v2437_v13, %v775_v57 }
 0x487   : > { %v778_v59 = vmul.f32 1.442695, %v777_v58 }
 0x489   : > { %1563 = vpow2.f32 %v778_v59 }
 0x48a   : > { %1565 = vpow2.f32 %v770_v20 }
 0x493   : > { %v1564_v60 = vpop.eup %1563  ;;  %v876_v61 = vpop.permute.xlu0 %875 }
 0x494   : > { %v881_v62 = vsel %vm561_vm0, %v876_v61, 0  ;;  %v795_v63 = vpack.c.bf16 %v1564_v60, %v1564_v60  ;;  %v782_v19 = vsel %vm764_vm3, %v1564_v60, 0.0  ;;  %v1566_v21 = vpop.eup %1565 }
 0x495   : > { %v781_v35 = vmul.f32 %v1566_v21, %v780_v34 }
 0x496   : > { %1371 = vmatmul.mubr.msk.bf16.vlgmr.msra.gmra.mrb[0].mxu1 %vm764_vm3, %v795_v63 }
 0x497   : > { %1375 = vmatpush3.bf16.xpose.msra.mxu1 %v881_v62  ;;  %1376 = vmatprep.mubr.msk.bf16.mxu1 %vm1951_vm2, %v1950_v17  ;;  %v873_v5 = vpop.permute.xlu0 %872 }
 0x498   : > { %1386 = vmatprep.subr.bf16.mxu1 %v1950_v17 }
 0x49e   : > { %1377 = vmatmul.mubr.msk.bf16.vlgmr.msra.gmra.mrb[4].mxu1 %vm561_vm0, %v873_v5  ;;  %v1033_v5 = vld [vmem:[%s2377_s12] sm:$0xff] }
 0x49f   : > { %1390 = vmatprep.mubr.msk.bf16.mxu1 %vm1951_vm2, %v1950_v17  ;;  %vm688_vm2 = vcmask 261248   ;;  %1387 = vmatpush3.bf16.msra.mxu1 %v1537_v47 }
 0x4a0   : > { %1388 = vmatprep.subr.bf16.mxu1 %v1950_v17 }
 0x4a3   : > { %1389 = vmatpush3.bf16.msra.mxu1 %v1538_v52 }
 0x569   : > { %v2478_v0 = vpop.f32.mrb[0].mxu1 }
 0x56a   : > { %v1372_v1 = vpop.f32.mrb[1].mxu1 }
 0x56b   : > { %v840_v2 = vpop.f32.mrb[2].mxu1 }
 0x56c   : > { %v1373_v3 = vpop.f32.mrb[3].mxu1 }
 0x571   : > { %v917_v4 = vpop.f32.mrb[4].mxu1 }
 0x572   : > { %v1378_v7 = vpop.f32.mrb[5].mxu1  ;;  %v924_v8 = vsel %vm764_vm3, %v917_v4, -inf }
 0x573   : > { %925 = vmax.xlane.f32.xlu0 %v924_v8  ;;  %v920_v9 = vpop.f32.mrb[6].mxu1 }
 0x574   : > { %v1379_v10 = vpop.f32.mrb[7].mxu1 }
 0x600   : > { %v926_v13 = vpop.xlane.xlu0 %925 }
 0x601   : > { %v927_v15 = vmax.f32 %v923_v12, %v926_v13 }
 0x603   : > { %v928_v18 = vsub.f32 %v923_v12, %v927_v15  ;;  %1013 = vst.msk [vmem:[#allocation3] sm:$0xff] %vm676_vm1, %v927_v15  ;;  %933 = vperm.xlu1 %1532, %v927_v15  }
 0x605   : > { %v929_v30 = vmul.f32 1.442695, %v928_v18 }
 0x607   : > { %958 = vrot.lane.b32.xlu1 %v1342_v16, %s1948_s15 }
 0x608   : > { %1533 = vset.pattern.permute.xlu1 %v1953_v29 }
 0x62b   : > { %783 = vadd.xlane.f32.xlu1 %v782_v19 }
 0x63c   : > { %791 = vperm.xlu1 %1533, %v1566_v21  }
 0x682   : > { %v934_v22 = vpop.permute.xlu1 %933 }
 0x683   : > { %v936_v23 = vsub.f32 %v917_v4, %v934_v22 }
 0x685   : > { %v937_v24 = vmul.f32 1.442695, %v936_v23 }
 0x686   : > { %v959_v25 = vpop.permute.xlu1 %958 }
 0x687   : > { %1567 = vpow2.f32 %v937_v24  ;;  %v964_v6 = vsel %vm799_vm4, %v959_v25, 0 }
 0x688   : > { %1381 = vmatpush3.bf16.msra.mxu0 %v964_v6  ;;  %1569 = vpow2.f32 %v929_v30 }
 0x691   : > { %v1568_v26 = vpop.eup %1567 }
 0x692   : > { %v941_v27 = vsel %vm764_vm3, %v1568_v26, 0.0  ;;  %v954_v28 = vpack.c.bf16 %v1568_v26, %v1568_v26  ;;  %v1570_v33 = vpop.eup %1569 }
 0x693   : > { %942 = vadd.xlane.f32.xlu0 %v941_v27 }
 0x694   : > { %1383 = vmatmul.mubr.msk.bf16.vlgmr.msra.gmra.mrb[4].mxu0 %vm764_vm3, %v954_v28 }
 0x6a9   : > { %685 = vrot.lane.b32.xlu0 %v1337_v32, %s1949_s5 }
 0x6ad   : > { %950 = vperm.xlu0 %1534, %v1570_v33  }
 0x6b8   : > { %v784_v14 = vpop.xlane.xlu1 %783 }
 0x6b9   : > { %v785_v29 = vadd.f32 %v784_v14, %v781_v35 }
 0x6bb   : > { %787 = vst.msk [vmem:[#allocation4] sm:$0xff] %vm611_vm13, %v785_v29 }
 0x6bc   : > { %v792_v42 = vpop.permute.xlu1 %791 }
 0x6c2   : > { %v939_v36 = vld [vmem:[#allocation4] sm:$0xff] }
 0x6c3   : > { %v940_v37 = vmul.f32 %v1570_v33, %v939_v36 }
 0x720   : > { %v943_v38 = vpop.xlane.xlu0 %942 }
 0x721   : > { %v944_v39 = vadd.f32 %v943_v38, %v940_v37 }
 0x723   : > { %946 = vst.msk [vmem:[#allocation4] sm:$0xff] %vm676_vm1, %v944_v39 }
 0x724   : > { %v686_v40 = vpop.permute.xlu0 %685 }
 0x725   : > { %689 = vst.msk [vmem:[#allocation5] sm:$0xff] %vm688_vm2, %v686_v40 }
 0x72a   : > { %v1017_v41 = vld [vmem:[#allocation4] sm:$0xff] }
 0x72b   : > { %1571 = vrcp.f32 %v1017_v41 }
 0x72c   : > { %v788_v43 = vld [vmem:[#allocation5] sm:$0xff]  ;;  %v951_v54 = vpop.permute.xlu0 %950 }
 0x72d   : > { %v794_v44 = vmul.f32 %v792_v42, %v788_v43 }
 0x72f   : > { %v843_v45 = vadd.f32 %v2478_v0, %v794_v44 }
 0x731   : > { %844 = vst.msk [vmem:[#allocation5] sm:$0xff] %vm561_vm0, %v843_v45 }
 0x735   : > { %v1572_v46 = vpop.eup %1571 }
 0x736   : > { %1022 = vperm.xlu1 %1533, %v1572_v46  }
 0x738   : > { %v947_v53 = vld [vmem:[#allocation5] sm:$0xff] }
 0x739   : > { %v953_v55 = vmul.f32 %v951_v54, %v947_v53 }
 0x767   : > { %v1000_v48 = vpop.f32.mrb[4].mxu0 }
 0x768   : > { %1007 = vrot.lane.b32.xlu0 %v1000_v48, %s1949_s5  ;;  %v1384_v49 = vpop.f32.mrb[5].mxu0 }
 0x769   : > { %v1003_v50 = vpop.f32.mrb[6].mxu0 }
 0x76a   : > { %v1385_v51 = vpop.f32.mrb[7].mxu0 }
 0x76c   : > { %1027 = vperm.xlu0 %1534, %v1572_v46  }
 0x7b5   : > { %v1023_v58 = vpop.permute.xlu1 %1022 }
 0x7da   : > { %v1008_v56 = vpop.permute.xlu0 %1007 }
 0x7db   : > { %v1010_v57 = vadd.f32 %v1008_v56, %v953_v55 }
 0x7dd   : > { %1012 = vst.msk [vmem:[#allocation5] sm:$0xff] %vm688_vm2, %v1010_v57 }
 0x7e4   : > { %v1019_v17 = vld [vmem:[#allocation5] sm:$0xff] }
 0x7e5   : > { %v1025_v60 = vmul.f32 %v1023_v58, %v1019_v17 }
 0x7eb   : > { %v1028_v59 = vpop.permute.xlu0 %1027 }
 0x7ec   : > { %v1030_v61 = vmul.f32 %v1028_v59, %v1019_v17 }
 0x7ee   : > { %v1031_v62 = vsel %vm561_vm0, %v1025_v60, %v1030_v61 }
 0x7ef   : > { %v1032_v63 = vpack.c.bf16 %v1031_v62, %v1031_v62 }
 0x7f1   : > { %1391 = vmatmul.mubr.msk.bf16.vlgmr.msra.gmra.mrb[8].mxu1 %vm1050_vm7, %v1032_v63 }
 0x8c4   : > { %v1088_v0 = vpop.f32.mrb[8].mxu1 }
 0x8c5   : > { %v1094_v1 = vadd.f32 %v1088_v0, %v1033_v5  ;;  %v1392_v2 = vpop.f32.mrb[9].mxu1 }
 0x8c6   : > { %v1091_v3 = vpop.f32.mrb[10].mxu1 }
 0x8c7   : > { %v1393_v4 = vpop.f32.mrb[11].mxu1  ;;  %1095 = vst.msk [vmem:[%s550_s9] sm:$0xff] %vm1050_vm7, %v1094_v1 }
 0x8c8   : > { %1846 = shalt.err (!%p1843_p9)
}
 0x8c9   : > { %s1847_s27 = scalar_lea.hbm %s2509_s18, 128  ;;  %s1851_s16 = scalar_lea.hbm %s2637_s20, 256 }
 0x8ca   : > { %p1848_p7 = scmp.ne.s32.totalorder %s2509_s18, %s1847_s27  ;;  %p1852_p0 = scmp.lt.u32.totalorder %s2509_s18, %s2637_s20 }
 0x8cb   : > { %p1853_p5 = scmp.lt.u32.totalorder %s1851_s16, %s1847_s27  ;;  %p1855_p2 = scmp.lt.u32.totalorder %s1847_s27, %s2509_s18 }
 0x8cc   : > { %p1849_p6 = pnand %p1848_p7, %p2638_p3 }
 0x8cd   : > { %p1854_p10 = por %p1853_p5, %p1852_p0 }
 0x8ce   : > { %p1850_p8 = pneg %p1849_p6 }
 0x8cf   : > { %p1856_p13 = por %p1855_p2, %p1854_p10 }
 0x8d1   : > { %p1857_p4 = pnand %p1856_p13, %p1850_p8 }
 0x8d3   : > { %1860 = shalt.err (!%p1857_p4)
}
 0x8d4   : > { %1422 = dma.vmem_to_hbm [thread:$0]  (%p2638_p3), %s2511_s25, 128, %s2509_s18, %s1097_s26  }
 0x8d5 PF: > { %s2639_s12 = sld [smem:[#allocation29_spill]]  ;;  %s2640_s15 = sld [smem:[#allocation36_spill]] }
 0x8d6   : > { %p2642_p12 = scmp.ge.s32.totalorder %s1935_s14, 2 }
 0x8db   : > { %s1123_s5 = sand.u32 1, %s2639_s12   ;;  %p2641_p11 = scmp.ne.s32.totalorder %s2640_s15, 0 }
 0x8dc   : > { %s1124_s3 = scalar_lea.sflag [#allocation8], %s1123_s5 }
 0x8dd   : > { %p1454_p1 = pnand %p2642_p12, %p2641_p11 }
 0x8df   : > { %1910 = dma.done.wait (!%p1454_p1), %s1124_s3, 128  }
 0x8e0   : > { %1912 = vsyncadd (!%p1454_p1), %s1124_s3, 4294967168  ;;  %s31_s14 = sadd.s32 1, %s1935_s14   ;;  %s2643_s30 = sld [smem:[#allocation30_spill]] }
 0x8e1   : > { %p28_p9 = scmp.ge.s32.totalorder %s31_s14, 4   ;;  %s2644_s28 = sld [smem:[#allocation35_spill]] }
 0x8e2   : > { %s2645_s22 = sld [smem:[#allocation32_spill]]  ;;  %s2646_s10 = smov %s1923_s11 }
 0x8e3   : > { %s2648_s12 = smov %s1931_s13  ;;  %30 = sbr.rel (!%p28_p9) target bundleno = 17 (0x11), region = 164 }
 0x8e7   : > { %s2647_s11 = smov %s2644_s28 }
 0x8e8   : > { %s2649_s13 = smov %s2645_s22 }
 0x8ea   :  { %1129 = vsyncpa [#allocation7], 1 }
 0x8eb   :  { %1131 = vsyncpa [#allocation7 + $0x1], 1 }
 0x8ec   :  { %1132 = vsyncpa [#allocation10], 1 }
 0x8ed   :  { %1134 = vsyncpa [#allocation10 + $0x1], 1 }
 0x8ee   :  { %1135 = vsyncpa [#allocation13], 1 }
 0x8ef   :  { %1136 = vsyncpa [#allocation16], 1 }
 0x8f0   :  { %1137 = vsyncpa [#allocation19], 1 }
 0x8f1   :  { %1138 = vsyncpa [#allocation8], 1 }
 0x8f2   :  { %1140 = vsyncpa [#allocation8 + $0x1], 1 }

// kernel: transformer_forward.15
= control target key start
LH: loop header
LB: loop body
LE: loop exit
PB: predicated region body
PF: predicated region fallthrough
CT: control target
= control target key end

     0   :  { %8 = vsyncpa [#allocation3], 0  ;;  %s1030_s0 = inlined_call_operand.hbm [shape: f32[2,8,32], index: 0, kind: input, shape index: {}]   ;;  %s1031_s1 = inlined_call_operand.hbm [shape: f32[1,32], index: 1, kind: input, shape index: {}]   ;;  %s1032_s2 = inlined_call_operand.hbm [shape: bf16[1,32,16], index: 2, kind: input, shape index: {}]   ;;  %s1033_s3 = inlined_call_operand.hbm [shape: f32[2,1,8,16], index: 3, kind: output, shape index: {}]  }
   0x1   :  { %10 = vsyncpa [#allocation3 + $0x1], 0 }
   0x2   :  { %11 = vsyncpa [#allocation6], 0 }
   0x3   :  { %12 = vsyncpa [#allocation4], 0 }
   0x4   :  { %14 = vsyncpa [#allocation4 + $0x1], 0  ;;  %s780_s12 = smov 0   ;;  %s782_s13 = smov 0  }
   0x5   :  { %s784_s14 = smov 0   ;;  %s786_s15 = smov 0  }
   0x6   :  { %s788_s16 = smov 0   ;;  %s790_s17 = smov 0  }
   0x7 LB: > { %s455_s18 = sadd.s32 4294967295, %s750_s17   ;;  %s456_s19 = sadd.s32 4294967294, %s750_s17   ;;  %s750_s17 = sphi %s790_s17, %s20_s17   ;;  %s746_s16 = sphi %s788_s16, %s1056_s16   ;;  %s742_s15 = sphi %s786_s15, %s1055_s15   ;;  %s738_s14 = sphi %s784_s14, %s1054_s14   ;;  %s734_s13 = sphi %s782_s13, %s1053_s13   ;;  %s730_s12 = sphi %s780_s12, %s1052_s12  }
   0x8   : > { %p61_p0 = scmp.ne.s32.totalorder %s734_s13, %s730_s12  ;;  %p814_p1 = scmp.eq.s32.totalorder %s455_s18, 0 }
   0x9   : > { %p818_p2 = scmp.eq.s32.totalorder %s455_s18, 1  ;;  %p142_p3 = scmp.eq.s32.totalorder %s456_s19, 1 }
   0xa   : > { %s1038_s20 = scalar_select %p814_p1, 1, 0 }
   0xb   : > { %s1039_s21 = scalar_select %p818_p2, 1, 0 }
   0xc   : > { %p824_p4 = por %p814_p1, %p61_p0  ;;  %p457_p5 = scmp.ge.s32.totalorder %s750_s17, 1 }
   0xd   : > { %p829_p6 = por %p142_p3, %p61_p0  ;;  %p149_p7 = scmp.lt.s32.totalorder %s750_s17, 3 }
   0xe   : > { %s1040_s22 = scalar_select %p824_p4, 1, 0 }
   0xf   : > { %s1041_s23 = scalar_select %p829_p6, 1, 0 }
  0x10   : > { %p834_p8 = pnand %p457_p5, %p149_p7  ;;  %s752_s25 = smov [#allocation5]  }
  0x11   : > { %s162_s26 = sshll.u32 %s752_s25, 4  ;;  %s753_s27 = smov [#allocation7]   ;;  %s163_s26 = int_to_ptr.vmem [resolvable:$true] %s162_s26 }
  0x12   : > { %s1042_s24 = scalar_select %p834_p8, 1, 0 }
  0x13   : > { %p499_p10 = pneg %p834_p8  ;;  %s175_s28 = sshll.u32 %s753_s27, 4  ;;  %s847_s28 = int_to_ptr.vmem [resolvable:$true] %s175_s28 }
  0x14   : > { %s578_s5 = scalar_lea.hbm %s1031_s1, 16 }
  0x15   : > { %p843_p11 = pnand %p499_p10, %p814_p1  ;;  %p579_p12 = scmp.ne.s32.totalorder %s1031_s1, %s578_s5 }
  0x16   : > { %p585_p5 = scmp.lt.u32.totalorder %s578_s5, %s1031_s1 }
  0x17   : > { %p580_p13 = pneg %p843_p11 }
  0x19   : > { %p581_p0 = pnand %p580_p13, %p579_p12 }
  0x1b   : > { %p582_p3 = pneg %p581_p0 }
  0x1d   : > { %p587_p7 = pnand %p585_p5, %p582_p3 }
  0x1f   : > { %590 = shalt.err (!%p587_p7)
}
  0x20   : > { %s591_s10 = scalar_lea.vmem %s163_s26, 16  ;;  %s598_s11 = scalar_lea.vmem %s163_s26, 32 }
  0x21   : > { %p592_p10 = scmp.ne.s32.totalorder %s163_s26, %s591_s10  ;;  %p599_p1 = scmp.lt.s32.totalorder %s163_s26, %s163_s26 }
  0x22   : > { %p600_p4 = scmp.lt.s32.totalorder %s598_s11, %s591_s10 }
  0x23   : > { %p594_p9 = pnand %p592_p10, %p580_p13 }
  0x24   : > { %p601_p8 = por %p600_p4, %p599_p1 }
  0x25   : > { %p595_p6 = pneg %p594_p9 }
  0x27   : > { %p602_p2 = pnand %p601_p8, %p595_p6 }
  0x29   : > { %605 = shalt.err (!%p602_p2)
}
  0x2a   : > { %502 = dma.hbm_to_vmem [thread:$0]  (!%p843_p11), %s1031_s1, 16, %s163_s26, [#allocation6]  }
  0x2b   : > { %s606_s30 = scalar_lea.hbm %s1032_s2, 256 }
  0x2c   : > { %p607_p9 = scmp.ne.s32.totalorder %s1032_s2, %s606_s30  ;;  %p613_p2 = scmp.lt.u32.totalorder %s606_s30, %s1032_s2 }
  0x2e   : > { %p609_p1 = pnand %p607_p9, %p580_p13 }
  0x30   : > { %p610_p4 = pneg %p609_p1 }
  0x32   : > { %p615_p6 = pnand %p613_p2, %p610_p4 }
  0x34   : > { %618 = shalt.err (!%p615_p6)
}
  0x35   : > { %s619_s26 = scalar_lea.vmem %s847_s28, 256  ;;  %p627_p3 = scmp.lt.s32.totalorder %s847_s28, %s847_s28 }
  0x36   : > { %p620_p8 = scmp.ne.s32.totalorder %s847_s28, %s619_s26  ;;  %p628_p5 = scmp.lt.s32.totalorder %s619_s26, %s619_s26 }
  0x38   : > { %p622_p12 = pnand %p620_p8, %p580_p13  ;;  %p629_p7 = por %p628_p5, %p627_p3 }
  0x3a   : > { %p623_p0 = pneg %p622_p12 }
  0x3c   : > { %p630_p10 = pnand %p629_p7, %p623_p0 }
  0x3e   : > { %633 = shalt.err (!%p630_p10)
}
  0x3f   : > { %s754_s8 = smov 64   ;;  %s755_s9 = smov 4  }
  0x40   : > { %505 = dma.hbm_to_vmem [thread:$0]  (!%p843_p11), %s1032_s2, 256, %s847_s28, [#allocation6], %s754_s8, %s754_s8, %s755_s9  }
  0x41   : > { %s39_s18 = sadd.s32 1, %s746_s16  ;;  %s48_s19 = sadd.s32 1, %s738_s14 }
  0x42   : > { %p41_p13 = scmp.ge.s32.totalorder %s39_s18, 2  ;;  %p55_p9 = scmp.ne.s32.totalorder %s738_s14, %s734_s13 }
  0x43   : > { %p56_p1 = scmp.eq.s32.totalorder %s750_s17, 0  ;;  %p516_p4 = scmp.lt.s32.totalorder %s750_s17, 2 }
  0x44   : > { %s1058_s18 = smov (%p41_p13, %s39_s18), 0  ;;  %p1044_p6 = scmp.ne.s32.totalorder %s1039_s21, 0 }
  0x45   : > { %p57_p2 = por %p56_p1, %p55_p9  ;;  %s43_s29 = ssub.s32 %s746_s16, %s1058_s18 }
  0x46   : > { %p906_p8 = por %p1044_p6, %p55_p9  ;;  %s189_s27 = sand.u32 1, %s738_s14  }
  0x47   : > { %p46_p12 = scmp.eq.s32.totalorder %s43_s29, 0  ;;  %s461_s28 = sshll.u32 %s189_s27, 3 }
  0x48   : > { %s462_s30 = sshll.u32 %s746_s16, 7  ;;  %s193_s21 = scalar_lea.vmem [#allocation2], %s461_s28 }
  0x49   : > { %s915_s4 = scalar_select %p46_p12, %s738_s14, %s48_s19  }
  0x4a   : > { %s920_s7 = scalar_lea.hbm %s1030_s0, %s462_s30  ;;  %s201_s26 = sshll.u32 %s193_s21, 4  ;;  %s928_s26 = int_to_ptr.vmem [resolvable:$true] %s201_s26 }
  0x4b   : > { %p924_p11 = pnand %p516_p4, %p57_p2  ;;  %s190_s9 = scalar_lea.sflag [#allocation3], %s189_s27 }
  0x4c   : > { %s634_s10 = scalar_lea.hbm %s920_s7, 128  ;;  %s639_s29 = scalar_lea.hbm %s1030_s0, 256 }
  0x4d   : > { %p635_p0 = scmp.ne.s32.totalorder %s920_s7, %s634_s10  ;;  %p636_p3 = pneg %p924_p11 }
  0x4e   : > { %p640_p10 = scmp.lt.u32.totalorder %s920_s7, %s1030_s0  ;;  %p641_p13 = scmp.lt.u32.totalorder %s639_s29, %s634_s10 }
  0x4f   : > { %p637_p5 = pnand %p636_p3, %p635_p0  ;;  %p643_p1 = scmp.lt.u32.totalorder %s634_s10, %s920_s7 }
  0x50   : > { %p642_p9 = por %p641_p13, %p640_p10 }
  0x51   : > { %p638_p7 = pneg %p637_p5 }
  0x52   : > { %p644_p4 = por %p643_p1, %p642_p9 }
  0x54   : > { %p645_p2 = pnand %p644_p4, %p638_p7 }
  0x56   : > { %648 = shalt.err (!%p645_p2)
}
  0x57   : > { %s649_s27 = scalar_lea.vmem %s928_s26, 128  ;;  %s756_s5 = smov [#allocation2]  }
  0x58   : > { %p650_p6 = scmp.ne.s32.totalorder %s928_s26, %s649_s27  ;;  %s654_s6 = sshll.u32 %s756_s5, 4  ;;  %s655_s6 = int_to_ptr.vmem [resolvable:$false] %s654_s6 }
  0x59   : > { %s656_s21 = scalar_lea.vmem %s655_s6, 256  ;;  %p657_p5 = scmp.lt.s32.totalorder %s928_s26, %s655_s6 }
  0x5a   : > { %p652_p12 = pnand %p650_p6, %p636_p3  ;;  %p658_p10 = scmp.lt.s32.totalorder %s656_s21, %s649_s27 }
  0x5c   : > { %p653_p0 = pneg %p652_p12  ;;  %p659_p13 = por %p658_p10, %p657_p5 }
  0x5e   : > { %p660_p9 = pnand %p659_p13, %p653_p0 }
  0x60   : > { %663 = shalt.err (!%p660_p9)
}
  0x61   : > { %509 = dma.hbm_to_vmem [thread:$0]  (!%p924_p11), %s920_s7, 128, %s928_s26, %s190_s9  }
  0x62   : > { %p1047_p7 = scmp.ne.s32.totalorder %s1042_s24, 0 }
  0x63   : > { %s958_s10 = sand.u32 (!%p1047_p7), 1, %s734_s13   ;;  %p1048_p3 = scmp.ne.s32.totalorder (!%p1047_p7), %s1040_s22, 0 }
  0x64   : > { %210 = sbr.rel (%p1047_p7) target bundleno = 652 (0x28c), region = 32  ;;  %s464_s11 = sshll.u32 (!%p1047_p7), %s958_s10, 3 }
  0x65   : > { %s213_s19 = scalar_lea.sflag (!%p1047_p7), [#allocation3], %s958_s10  ;;  %s216_s29 = scalar_lea.vmem (!%p1047_p7), [#allocation2], %s464_s11 }
  0x6b   : > { %717 = dma.done.wait (%p1048_p3), %s213_s19, 128  }
  0x6c   : > { %719 = vsyncadd (%p1048_p3), %s213_s19, 4294967168  ;;  %p1049_p11 = scmp.ne.s32.totalorder %s1038_s20, 0 }
  0x6e   : > { %721 = dma.done.wait (%p1049_p11), [#allocation6], 272  }
  0x6f   : > { %723 = vsyncadd (%p1049_p11), [#allocation6], 4294967024  ;;  %vm250_vm0 = vcmask 261120   ;;  %v248_v0 = vld [vmem:[%s216_s29] sm:$0xff]  ;;  %v574_v7 = vld [vmem:[#allocation7] sm:$0xff]   ;;  %v757_v8 = vmov 0.0  }
  0x70   : > { %v251_v1 = vsel %vm250_vm0, %v248_v0, 0.0  ;;  %479 = vmatprep.subr.bf16.mxu0 %v757_v8  ;;  %vm758_vm1 = vmmov 0   ;;  %v575_v9 = vld [vmem:[#allocation7 + $0x8] sm:$0xff]   ;;  %v468_v14 = vld [vmem:[#allocation5] ss:$0 sm:$0xff]  ;;  %s473_s20 = sshll.u32 %s742_s15, 7 }
  0x71   : > { %252 = vadd.xlane.f32.xlu0 %v251_v1  ;;  %483 = vmatprep.mubr.msk.bf16.mxu0 %vm758_vm1, %v757_v8  ;;  %s246_s22 = scalar_lea.vmem [#allocation8], %s464_s11  ;;  %vm332_vm2 = vcmask 130048   ;;  %s981_s8 = scalar_lea.hbm %s1033_s3, %s473_s20 }
  0x72   : > { %480 = vmatpush3.bf16.msra.mxu0 %v574_v7  ;;  %s350_s24 = sshll.u32 %s246_s22, 4  ;;  %s335_s9 = scalar_lea.sflag [#allocation4], %s958_s10  ;;  %s983_s24 = int_to_ptr.vmem [resolvable:$true] %s350_s24 }
  0x73   : > { %481 = vmatprep.subr.bf16.mxu0 %v757_v8  ;;  %s664_s15 = scalar_lea.vmem %s983_s24, 128  ;;  %s759_s28 = smov [#allocation8]  }
  0x74   : > { %p665_p1 = scmp.ne.s32.totalorder %s983_s24, %s664_s15  ;;  %s668_s30 = sshll.u32 %s759_s28, 4  ;;  %s669_s30 = int_to_ptr.vmem [resolvable:$false] %s668_s30 }
  0x75   : > { %s670_s27 = scalar_lea.vmem %s669_s30, 256  ;;  %p671_p6 = scmp.lt.s32.totalorder %s983_s24, %s669_s30 }
  0x76   : > { %482 = vmatpush3.bf16.msra.mxu0 %v575_v9  ;;  %p666_p4 = pnand %p665_p1, %p906_p8  ;;  %p672_p12 = scmp.lt.s32.totalorder %s670_s27, %s664_s15 }
  0x78   : > { %p667_p2 = pneg %p666_p4  ;;  %p673_p0 = por %p672_p12, %p671_p6 }
  0x7a   : > { %p674_p5 = pnand %p673_p0, %p667_p2 }
  0xfe   : > { %v253_v2 = vpop.xlane.xlu0 %252 }
  0xff   : > { %v255_v3 = vmul.f32 0.03125, %v253_v2 }
 0x101   : > { %v256_v4 = vsub.f32 %v248_v0, %v255_v3 }
 0x103   : > { %v257_v5 = vmul.f32 %v256_v4, %v256_v4 }
 0x105   : > { %v258_v6 = vsel %vm250_vm0, %v257_v5, 0.0 }
 0x106   : > { %259 = vadd.xlane.f32.xlu0 %v258_v6 }
 0x193   : > { %v260_v10 = vpop.xlane.xlu0 %259 }
 0x194   : > { %v261_v11 = vmul.f32 0.03125, %v260_v10 }
 0x196   : > { %v262_v12 = vadd.f32 1e-05, %v261_v11 }
 0x198   : > { %576 = vrsqrt.f32 %v262_v12 }
 0x1a2   : > { %v577_v13 = vpop.eup %576 }
 0x1a3   : > { %v264_v15 = vmul.f32 %v577_v13, %v256_v4 }
 0x1a5   : > { %v271_v16 = vmul.f32 %v468_v14, %v264_v15 }
 0x1a7   : > { %v272_v17 = vpack.c.bf16 %v271_v16, %v271_v16 }
 0x1a9   : > { %484 = vmatmul.mubr.msk.bf16.vlgmr.msra.gmra.mrb[0].mxu0 %vm250_vm0, %v272_v17 }
 0x27c   : > { %v326_v18 = vpop.f32.mrb[0].mxu0 }
 0x27d   : > { %333 = vst.msk [vmem:[%s246_s22] sm:$0xff] %vm332_vm2, %v326_v18  ;;  %v485_v19 = vpop.f32.mrb[1].mxu0 }
 0x27e   : > { %v329_v20 = vpop.f32.mrb[2].mxu0 }
 0x27f   : > { %677 = shalt.err (!%p674_p5)
}
 0x280   : > { %s678_s5 = scalar_lea.hbm %s981_s8, 128  ;;  %s682_s10 = scalar_lea.hbm %s1033_s3, 256 }
 0x281   : > { %p679_p10 = scmp.ne.s32.totalorder %s981_s8, %s678_s5  ;;  %p683_p7 = scmp.lt.u32.totalorder %s981_s8, %s1033_s3 }
 0x282   : > { %p684_p3 = scmp.lt.u32.totalorder %s682_s10, %s678_s5  ;;  %p686_p1 = scmp.lt.u32.totalorder %s678_s5, %s981_s8 }
 0x283   : > { %p680_p13 = pnand %p679_p10, %p906_p8 }
 0x284   : > { %p685_p11 = por %p684_p3, %p683_p7 }
 0x285   : > { %p681_p9 = pneg %p680_p13 }
 0x286   : > { %p687_p4 = por %p686_p1, %p685_p11 }
 0x288   : > { %p688_p2 = pnand %p687_p4, %p681_p9 }
 0x28a   : > { %691 = shalt.err (!%p688_p2)
}
 0x28b   : > { %497 = dma.vmem_to_hbm [thread:$0]  (%p906_p8), %s983_s24, 128, %s981_s8, %s335_s9   ;;  %v486_v21 = vpop.f32.mrb[3].mxu0 }
 0x28c PF: > { %s362_s29 = sand.u32 1, %s730_s12   ;;  %p1050_p6 = scmp.ne.s32.totalorder %s1041_s23, 0 }
 0x28d   : > { %p1051_p12 = scmp.ge.s32.totalorder %s750_s17, 2  ;;  %s363_s20 = scalar_lea.sflag [#allocation4], %s362_s29 }
 0x28f   : > { %p511_p0 = pnand %p1051_p12, %p1050_p6 }
 0x291   : > { %725 = dma.done.wait (!%p511_p0), %s363_s20, 128  }
 0x292   : > { %727 = vsyncadd (!%p511_p0), %s363_s20, 4294967168  ;;  %s20_s17 = sadd.s32 1, %s750_s17   ;;  %s1052_s12 = smov %s734_s13 }
 0x293   : > { %p17_p5 = scmp.ge.s32.totalorder %s20_s17, 4   ;;  %s1053_s13 = smov %s738_s14 }
 0x294   : > { %s1054_s14 = smov %s915_s4  ;;  %s1055_s15 = smov %s746_s16 }
 0x295   : > { %s1056_s16 = smov %s1058_s18  ;;  %19 = sbr.rel (!%p17_p5) target bundleno = 7 (0x7), region = 86 }
 0x29c   :  { %368 = vsyncpa [#allocation3], 1 }
 0x29d   :  { %370 = vsyncpa [#allocation3 + $0x1], 1 }
 0x29e   :  { %371 = vsyncpa [#allocation6], 1 }
 0x29f   :  { %372 = vsyncpa [#allocation4], 1 }
 0x2a0   :  { %374 = vsyncpa [#allocation4 + $0x1], 1 }

// kernel: transformer_forward.11
= control target key start
LH: loop header
LB: loop body
LE: loop exit
PB: predicated region body
PF: predicated region fallthrough
CT: control target
= control target key end

     0   :  { %10 = vsyncpa [#allocation3], 0  ;;  %s734_s0 = inlined_call_operand.hbm [shape: f32[16,32], index: 0, kind: input, shape index: {}]   ;;  %s735_s1 = inlined_call_operand.hbm [shape: f32[1,32], index: 1, kind: input, shape index: {}]   ;;  %s736_s2 = inlined_call_operand.hbm [shape: bf16[32,128], index: 2, kind: input, shape index: {}]   ;;  %s737_s3 = inlined_call_operand.hbm [shape: f32[1,64], index: 3, kind: input, shape index: {}]   ;;  %s738_s4 = inlined_call_operand.hbm [shape: bf16[64,32], index: 4, kind: input, shape index: {}]   ;;  %s739_s5 = inlined_call_operand.hbm [shape: f32[16,32], index: 5, kind: output, shape index: {}]  }
   0x1   :  { %11 = vsyncpa [#allocation6], 0 }
   0x2   :  { %12 = vsyncpa [#allocation9], 0 }
   0x3   :  { %13 = vsyncpa [#allocation4], 0  ;;  %s572_s18 = smov [#allocation5]   ;;  %s573_s20 = smov [#allocation8]  }
   0x4   :  { %s32_s19 = sshll.u32 %s572_s18, 4  ;;  %s54_s21 = sshll.u32 %s573_s20, 4  ;;  %s33_s19 = int_to_ptr.vmem [resolvable:$true] %s32_s19  ;;  %s55_s21 = int_to_ptr.vmem [resolvable:$true] %s54_s21 }
   0x5   :  { %s432_s24 = scalar_lea.hbm %s735_s1, 16 }
   0x6   :  { %p433_p0 = scmp.ne.s32.totalorder %s735_s1, %s432_s24  ;;  %p436_p1 = scmp.lt.u32.totalorder %s432_s24, %s735_s1 }
   0x8   :  { %p438_p2 = pnand %p436_p1, %p433_p0 }
   0xa   :  { %441 = shalt.err (!%p438_p2)
}
   0xb   :  { %s442_s29 = scalar_lea.vmem %s33_s19, 16  ;;  %s446_s30 = scalar_lea.vmem %s33_s19, 32 }
   0xc   :  { %p443_p3 = scmp.ne.s32.totalorder %s33_s19, %s442_s29  ;;  %p447_p4 = scmp.lt.s32.totalorder %s33_s19, %s33_s19 }
   0xd   :  { %p448_p5 = scmp.lt.s32.totalorder %s446_s30, %s442_s29 }
   0xf   :  { %p449_p6 = por %p448_p5, %p447_p4 }
  0x11   :  { %p450_p7 = pnand %p449_p6, %p443_p3 }
  0x13   :  { %453 = shalt.err (!%p450_p7)
}
  0x14   :  { %35 = dma.hbm_to_vmem [thread:$0]  %s735_s1, 16, %s33_s19, [#allocation6]  }
  0x15   :  { %s454_s10 = scalar_lea.hbm %s737_s3, 16 }
  0x16   :  { %p455_p8 = scmp.ne.s32.totalorder %s737_s3, %s454_s10  ;;  %p458_p9 = scmp.lt.u32.totalorder %s454_s10, %s737_s3 }
  0x18   :  { %p460_p10 = pnand %p458_p9, %p455_p8 }
  0x1a   :  { %463 = shalt.err (!%p460_p10)
}
  0x1b   :  { %s464_s15 = scalar_lea.vmem %s55_s21, 16  ;;  %s468_s16 = scalar_lea.vmem %s55_s21, 32 }
  0x1c   :  { %p465_p11 = scmp.ne.s32.totalorder %s55_s21, %s464_s15  ;;  %p469_p12 = scmp.lt.s32.totalorder %s55_s21, %s55_s21 }
  0x1d   :  { %p470_p13 = scmp.lt.s32.totalorder %s468_s16, %s464_s15 }
  0x1f   :  { %p471_p0 = por %p470_p13, %p469_p12 }
  0x21   :  { %p472_p1 = pnand %p471_p0, %p465_p11 }
  0x23   :  { %475 = shalt.err (!%p472_p1)
}
  0x24   :  { %57 = dma.hbm_to_vmem [thread:$0]  %s737_s3, 16, %s55_s21, [#allocation9]  }
  0x25   :  { %s574_s18 = smov [#allocation2]   ;;  %s476_s23 = scalar_lea.hbm %s734_s0, 256 }
  0x26   :  { %s19_s19 = sshll.u32 %s574_s18, 4  ;;  %p477_p2 = scmp.ne.s32.totalorder %s734_s0, %s476_s23  ;;  %s20_s19 = int_to_ptr.vmem [resolvable:$true] %s19_s19 }
  0x27   :  { %p480_p3 = scmp.lt.u32.totalorder %s476_s23, %s734_s0 }
  0x29   :  { %p482_p4 = pnand %p480_p3, %p477_p2 }
  0x2b   :  { %485 = shalt.err (!%p482_p4)
}
  0x2c   :  { %s486_s28 = scalar_lea.vmem %s20_s19, 256  ;;  %p491_p6 = scmp.lt.s32.totalorder %s20_s19, %s20_s19 }
  0x2d   :  { %p487_p5 = scmp.ne.s32.totalorder %s20_s19, %s486_s28  ;;  %p492_p7 = scmp.lt.s32.totalorder %s486_s28, %s486_s28 }
  0x2f   :  { %p493_p8 = por %p492_p7, %p491_p6 }
  0x31   :  { %p494_p9 = pnand %p493_p8, %p487_p5 }
  0x33   :  { %497 = shalt.err (!%p494_p9)
}
  0x34   :  { %s575_s3 = smov 128   ;;  %s576_s21 = smov 8  }
  0x35   :  { %25 = dma.hbm_to_vmem [thread:$0]  %s734_s0, 256, %s20_s19, [#allocation3], %s575_s3, %s575_s3, %s576_s21  }
  0x36   :  { %s577_s6 = smov [#allocation7]   ;;  %s498_s10 = scalar_lea.hbm %s736_s2, 256 }
  0x37   :  { %s41_s7 = sshll.u32 %s577_s6, 4  ;;  %p499_p10 = scmp.ne.s32.totalorder %s736_s2, %s498_s10  ;;  %s42_s7 = int_to_ptr.vmem [resolvable:$true] %s41_s7 }
  0x38   :  { %p502_p11 = scmp.lt.u32.totalorder %s498_s10, %s736_s2 }
  0x3a   :  { %p504_p12 = pnand %p502_p11, %p499_p10 }
  0x3c   :  { %507 = shalt.err (!%p504_p12)
}
  0x3d   :  { %s508_s15 = scalar_lea.vmem %s42_s7, 256  ;;  %p513_p0 = scmp.lt.s32.totalorder %s42_s7, %s42_s7 }
  0x3e   :  { %p509_p13 = scmp.ne.s32.totalorder %s42_s7, %s508_s15  ;;  %p514_p1 = scmp.lt.s32.totalorder %s508_s15, %s508_s15 }
  0x40   :  { %p515_p2 = por %p514_p1, %p513_p0 }
  0x42   :  { %p516_p3 = pnand %p515_p2, %p509_p13 }
  0x44   :  { %519 = shalt.err (!%p516_p3)
}
  0x45   :  { %s578_s0 = smov 64   ;;  %s579_s16 = smov 4  }
  0x46   :  { %47 = dma.hbm_to_vmem [thread:$0]  %s736_s2, 256, %s42_s7, [#allocation6], %s578_s0, %s578_s0, %s579_s16  }
  0x47   :  { %s580_s18 = smov [#allocation10]   ;;  %s520_s23 = scalar_lea.hbm %s738_s4, 512 }
  0x48   :  { %s63_s19 = sshll.u32 %s580_s18, 4  ;;  %p521_p4 = scmp.ne.s32.totalorder %s738_s4, %s520_s23  ;;  %s64_s19 = int_to_ptr.vmem [resolvable:$true] %s63_s19 }
  0x49   :  { %p524_p5 = scmp.lt.u32.totalorder %s520_s23, %s738_s4 }
  0x4b   :  { %p526_p6 = pnand %p524_p5, %p521_p4 }
  0x4d   :  { %529 = shalt.err (!%p526_p6)
}
  0x4e   :  { %s530_s28 = scalar_lea.vmem %s64_s19, 512  ;;  %p535_p8 = scmp.lt.s32.totalorder %s64_s19, %s64_s19 }
  0x4f   :  { %p531_p7 = scmp.ne.s32.totalorder %s64_s19, %s530_s28  ;;  %p536_p9 = scmp.lt.s32.totalorder %s530_s28, %s530_s28 }
  0x51   :  { %p537_p10 = por %p536_p9, %p535_p8 }
  0x53   :  { %p538_p11 = pnand %p537_p10, %p531_p7 }
  0x55   :  { %541 = shalt.err (!%p538_p11)
}
  0x56   :  { %69 = dma.hbm_to_vmem [thread:$0]  %s738_s4, 512, %s64_s19, [#allocation9], %s578_s0, %s578_s0, %s579_s16  }
  0x57   :  { %564 = dma.done.wait [#allocation3], 256  }
  0x58   :  { %565 = vsyncadd [#allocation3], 4294967040 }
  0x59   :  { %566 = dma.done.wait [#allocation6], 272  }
  0x5a   :  { %567 = vsyncadd [#allocation6], 4294967024 }
  0x5b   :  { %568 = dma.done.wait [#allocation9], 528  }
  0x5c   :  { %569 = vsyncadd [#allocation9], 4294966768  ;;  %vm89_vm0 = vcmask 261120   ;;  %v681_v0 = vld [vmem:[#allocation2] sm:$0xff]  ;;  %v683_v1 = vld [vmem:[#allocation2 + $0x8] sm:$0xff]  ;;  %v581_v15 = vmov 0.0  }
  0x5d   :  { %v90_v2 = vsel %vm89_vm0, %v681_v0, 0.0  ;;  %v93_v3 = vsel %vm89_vm0, %v683_v1, 0.0  ;;  %v414_v14 = vld [vmem:[#allocation7] sm:$0xff]   ;;  %382 = vmatprep.subr.bf16.mxu0 %v581_v15  ;;  %vm582_vm1 = vmmov 0   ;;  %v415_v16 = vld [vmem:[#allocation7 + $0x8] sm:$0xff]   ;;  %390 = vmatprep.subr.bf16.mxu1 %v581_v15  ;;  %vm215_vm2 = vcmask 523264  }
  0x5e   :  { %91 = vadd.xlane.f32.xlu0 %v90_v2  ;;  %386 = vmatprep.mubr.msk.bf16.mxu0 %vm582_vm1, %v581_v15  ;;  %v364_v26 = vld [vmem:[#allocation5] ss:$0 sm:$0xff]  ;;  %s583_s4 = smov [#allocation11]  }
  0x5f   :  { %383 = vmatpush3.bf16.msra.mxu0 %v414_v14  ;;  %398 = vmatprep.mubr.msk.bf16.mxu1 %vm582_vm1, %v581_v15  ;;  %s350_s30 = sshll.u32 %s583_s4, 4  ;;  %s351_s30 = int_to_ptr.vmem [resolvable:$true] %s350_s30 }
  0x60   :  { %384 = vmatprep.subr.bf16.mxu0 %v581_v15  ;;  %s542_s6 = scalar_lea.vmem %s351_s30, 256  ;;  %p547_p13 = scmp.lt.s32.totalorder %s351_s30, %s351_s30 }
  0x61   :  { %p543_p12 = scmp.ne.s32.totalorder %s351_s30, %s542_s6  ;;  %p548_p0 = scmp.lt.s32.totalorder %s542_s6, %s542_s6 }
  0x62   :  { %94 = vadd.xlane.f32.xlu0 %v93_v3  ;;  %v368_v3 = vld [vmem:[#allocation8] ss:$0 sm:$0xff] }
  0x63   :  { %385 = vmatpush3.bf16.msra.mxu0 %v415_v16  ;;  %p549_p1 = por %p548_p0, %p547_p13 }
  0x65   :  { %p550_p2 = pnand %p549_p1, %p543_p12 }
  0xeb   :  { %v92_v4 = vpop.xlane.xlu0 %91 }
  0xec   :  { %v97_v5 = vmul.f32 0.03125, %v92_v4  ;;  %v416_v4 = vld [vmem:[#allocation10] sm:$0xff]  }
  0xed   :  { %391 = vmatpush3.bf16.msra.mxu1 %v416_v4 }
  0xee   :  { %v99_v6 = vsub.f32 %v681_v0, %v97_v5  ;;  %v417_v5 = vld [vmem:[#allocation10 + $0x8] sm:$0xff]   ;;  %392 = vmatprep.subr.bf16.mxu1 %v581_v15 }
  0xef   :  { %v95_v7 = vpop.xlane.xlu0 %94 }
  0xf0   :  { %v98_v8 = vmul.f32 0.03125, %v95_v7  ;;  %v101_v9 = vmul.f32 %v99_v6, %v99_v6  ;;  %v419_v7 = vld [vmem:[#allocation10 + $0x18] sm:$0xff]  }
  0xf1   :  { %393 = vmatpush3.bf16.msra.mxu1 %v417_v5 }
  0xf2   :  { %v100_v10 = vsub.f32 %v683_v1, %v98_v8  ;;  %v103_v11 = vsel %vm89_vm0, %v101_v9, 0.0  ;;  %394 = vmatprep.subr.bf16.mxu1 %v581_v15 }
  0xf3   :  { %104 = vadd.xlane.f32.xlu1 %v103_v11 }
  0xf4   :  { %v102_v12 = vmul.f32 %v100_v10, %v100_v10 }
  0xf6   :  { %v106_v13 = vsel %vm89_vm0, %v102_v12, 0.0 }
  0xf7   :  { %107 = vadd.xlane.f32.xlu1 %v106_v13 }
 0x180   :  { %v105_v17 = vpop.xlane.xlu1 %104 }
 0x181   :  { %v109_v18 = vmul.f32 0.03125, %v105_v17 }
 0x183   :  { %v111_v19 = vadd.f32 1e-05, %v109_v18 }
 0x184   :  { %v108_v20 = vpop.xlane.xlu1 %107 }
 0x185   :  { %420 = vrsqrt.f32 %v111_v19  ;;  %v110_v21 = vmul.f32 0.03125, %v108_v20 }
 0x187   :  { %v112_v22 = vadd.f32 1e-05, %v110_v21 }
 0x189   :  { %422 = vrsqrt.f32 %v112_v22 }
 0x18f   :  { %v421_v23 = vpop.eup %420 }
 0x190   :  { %v115_v24 = vmul.f32 %v421_v23, %v99_v6  ;;  %v418_v6 = vld [vmem:[#allocation10 + $0x10] sm:$0xff]  }
 0x191   :  { %395 = vmatpush3.bf16.msra.mxu1 %v418_v6 }
 0x192   :  { %v123_v28 = vmul.f32 %v364_v26, %v115_v24  ;;  %396 = vmatprep.subr.bf16.mxu1 %v581_v15 }
 0x193   :  { %v423_v25 = vpop.eup %422 }
 0x194   :  { %v116_v27 = vmul.f32 %v423_v25, %v100_v10 }
 0x195   :  { %397 = vmatpush3.bf16.msra.mxu1 %v419_v7 }
 0x196   :  { %v124_v29 = vmul.f32 %v364_v26, %v116_v27 }
 0x198   :  { %v125_v30 = vpack.c.bf16 %v124_v29, %v123_v28 }
 0x19a   :  { %387 = vmatmul.mubr.msk.bf16.vlgmr.msra.gmra.mrb[0].mxu0 %vm89_vm0, %v125_v30 }
 0x26d   :  { %v179_v31 = vpop.f32.mrb[0].mxu0 }
 0x26e   :  { %v188_v32 = vmul.f32 0.70710677, %v179_v31  ;;  %v388_v33 = vpop.f32.mrb[1].mxu0  ;;  %v186_v38 = vmul.f32 0.5, %v179_v31 }
 0x26f   :  { %v182_v34 = vpop.f32.mrb[2].mxu0 }
 0x270   :  { %424 = verf.f32 %v188_v32  ;;  %v189_v35 = vmul.f32 0.70710677, %v182_v34  ;;  %v389_v36 = vpop.f32.mrb[3].mxu0  ;;  %v187_v42 = vmul.f32 0.5, %v182_v34 }
 0x272   :  { %426 = verf.f32 %v189_v35 }
 0x27a   :  { %v425_v37 = vpop.eup %424 }
 0x27b   :  { %v192_v39 = vadd.f32 1.0, %v425_v37 }
 0x27c   :  { %v427_v40 = vpop.eup %426 }
 0x27d   :  { %v194_v41 = vmul.f32 %v192_v39, %v186_v38  ;;  %v193_v43 = vadd.f32 1.0, %v427_v40 }
 0x27f   :  { %198 = vrot.lane.b32.xlu0 %v194_v41, %s578_s0  ;;  %v195_v44 = vmul.f32 %v193_v43, %v187_v42 }
 0x281   :  { %200 = vrot.lane.b32.xlu1 %v195_v44, %s578_s0 }
 0x2f1   :  { %v199_v45 = vpop.permute.xlu0 %198 }
 0x2f2   :  { %v204_v46 = vmul.f32 %v199_v45, %v179_v31 }
 0x2f3   :  { %v201_v47 = vpop.permute.xlu1 %200 }
 0x2f4   :  { %209 = vrot.lane.b32.xlu1 %v204_v46, %s578_s0  ;;  %v205_v48 = vmul.f32 %v201_v47, %v182_v34 }
 0x2f8   :  { %211 = vrot.lane.b32.xlu1 %v205_v48, %s578_s0 }
 0x366   :  { %v210_v49 = vpop.permute.xlu1 %209 }
 0x367   :  { %v216_v50 = vsel %vm215_vm2, %v210_v49, 0.0 }
 0x368   :  { %217 = vadd.xlane.f32.xlu0 %v216_v50 }
 0x36a   :  { %v212_v51 = vpop.permute.xlu1 %211 }
 0x36b   :  { %v219_v52 = vsel %vm215_vm2, %v212_v51, 0.0 }
 0x36c   :  { %220 = vadd.xlane.f32.xlu1 %v219_v52 }
 0x3f5   :  { %v218_v53 = vpop.xlane.xlu0 %217 }
 0x3f6   :  { %v223_v54 = vmul.f32 0.015625, %v218_v53 }
 0x3f8   :  { %v225_v55 = vsub.f32 %v204_v46, %v223_v54 }
 0x3f9   :  { %v221_v56 = vpop.xlane.xlu1 %220 }
 0x3fa   :  { %v224_v57 = vmul.f32 0.015625, %v221_v56  ;;  %v227_v58 = vmul.f32 %v225_v55, %v225_v55 }
 0x3fc   :  { %v226_v59 = vsub.f32 %v205_v48, %v224_v57  ;;  %231 = vrot.lane.b32.xlu0 %v227_v58, %s578_s0 }
 0x3fe   :  { %v228_v60 = vmul.f32 %v226_v59, %v226_v59 }
 0x400   :  { %233 = vrot.lane.b32.xlu1 %v228_v60, %s578_s0 }
 0x46e   :  { %v232_v61 = vpop.permute.xlu0 %231 }
 0x46f   :  { %v237_v62 = vsel %vm215_vm2, %v232_v61, 0.0 }
 0x470   :  { %238 = vadd.xlane.f32.xlu0 %v237_v62 }
 0x472   :  { %v234_v63 = vpop.permute.xlu1 %233 }
 0x473   :  { %v240_v2 = vsel %vm215_vm2, %v234_v63, 0.0 }
 0x474   :  { %241 = vadd.xlane.f32.xlu1 %v240_v2 }
 0x486   :  { %256 = vrot.lane.b32.xlu0 %v368_v3, %s578_s0 }
 0x4fd   :  { %v239_v8 = vpop.xlane.xlu0 %238 }
 0x4fe   :  { %v243_v9 = vmul.f32 0.015625, %v239_v8 }
 0x500   :  { %v245_v10 = vadd.f32 1e-05, %v243_v9 }
 0x501   :  { %v242_v11 = vpop.xlane.xlu1 %241  ;;  %v257_v18 = vpop.permute.xlu0 %256 }
 0x502   :  { %428 = vrsqrt.f32 %v245_v10  ;;  %v244_v12 = vmul.f32 0.015625, %v242_v11 }
 0x504   :  { %v246_v13 = vadd.f32 1e-05, %v244_v12 }
 0x506   :  { %430 = vrsqrt.f32 %v246_v13 }
 0x50c   :  { %v429_v14 = vpop.eup %428 }
 0x50d   :  { %v249_v16 = vmul.f32 %v429_v14, %v225_v55 }
 0x50f   :  { %v259_v20 = vmul.f32 %v257_v18, %v249_v16 }
 0x510   :  { %v431_v17 = vpop.eup %430 }
 0x511   :  { %v250_v19 = vmul.f32 %v431_v17, %v226_v59 }
 0x513   :  { %v260_v21 = vmul.f32 %v257_v18, %v250_v19 }
 0x515   :  { %v261_v22 = vpack.c.bf16 %v260_v21, %v259_v20 }
 0x517   :  { %271 = vrot.lane.b32.xlu1 %v261_v22, %s578_s0 }
 0x589   :  { %v272_v15 = vpop.permute.xlu1 %271 }
 0x58a   :  { %399 = vmatmul.mubr.msk.bf16.vlgmr.msra.gmra.mrb[0].mxu1 %vm215_vm2, %v272_v15 }
 0x65d   :  { %v334_v23 = vpop.f32.mrb[0].mxu1 }
 0x65e   :  { %v341_v24 = vadd.f32 %v334_v23, %v681_v0  ;;  %v400_v25 = vpop.f32.mrb[1].mxu1 }
 0x65f   :  { %v337_v26 = vpop.f32.mrb[2].mxu1 }
 0x660   :  { %343 = vst.msk [vmem:[#allocation11] sm:$0xff] %vm89_vm0, %v341_v24  ;;  %v342_v27 = vadd.f32 %v337_v26, %v683_v1  ;;  %v401_v28 = vpop.f32.mrb[3].mxu1 }
 0x662   :  { %344 = vst.msk [vmem:[#allocation11 + $0x8] sm:$0xff] %vm89_vm0, %v342_v27 }
 0x663   :  { %553 = shalt.err (!%p550_p2)
}
 0x664   :  { %s554_s9 = scalar_lea.hbm %s739_s5, 256 }
 0x665   :  { %p555_p3 = scmp.ne.s32.totalorder %s739_s5, %s554_s9  ;;  %p558_p4 = scmp.lt.u32.totalorder %s554_s9, %s739_s5 }
 0x667   :  { %p560_p5 = pnand %p558_p4, %p555_p3 }
 0x669   :  { %563 = shalt.err (!%p560_p5)
}
 0x66a   :  { %356 = dma.vmem_to_hbm [thread:$0]  %s351_s30, 256, %s739_s5, [#allocation4], %s575_s3, %s575_s3, %s576_s21  }
 0x66b   :  { %570 = dma.done.wait [#allocation4], 256  }
 0x66c   :  { %571 = vsyncadd [#allocation4], 4294967040 }
 0x66d   :  { %360 = vsyncpa [#allocation3], 1 }
 0x66e   :  { %361 = vsyncpa [#allocation6], 1 }
 0x66f   :  { %362 = vsyncpa [#allocation9], 1 }
 0x670   :  { %363 = vsyncpa [#allocation4], 1 }

</bundles_post_ra>
